<compile_context>
chip_gen: v6e
topology: v6e:2x2x1
jax: 0.10.0
libtpu: 0.0.40
codegen_flags: <defaults>
</compile_context>

<pallas_src>
import math

import jax
import jax.numpy as jnp
from jax.experimental import pallas as pl
from jax.experimental.pallas import tpu as pltpu

# ----------------------- small synthetic GPT-2 config -----------------------
VOCAB = 128          # vocab size (after "resize_token_embeddings")
N_EMBD = 64          # hidden size
N_HEAD = 4
N_LAYER = 2
SEQ = 8              # max_length
BATCH = 2
HEAD_DIM = N_EMBD // N_HEAD
LN_EPS = 1e-5


# ------------------------------ kernel helpers ------------------------------
def _layer_norm(x, g, b):
    mu = jnp.mean(x, axis=-1, keepdims=True)
    var = jnp.mean(jnp.square(x - mu), axis=-1, keepdims=True)
    return (x - mu) * jax.lax.rsqrt(var + LN_EPS) * g + b


def _gelu_new(x):
    # HF "gelu_new" (tanh approximation), f32 elementwise (v5e-friendly)
    c = math.sqrt(2.0 / math.pi)
    return 0.5 * x * (1.0 + jnp.tanh(c * (x + 0.044715 * x * x * x)))


# ---------------------- fused per-sequence forward kernel --------------------
def gpt2_seq_kernel(
    tok_ref, lab_ref, mask_ref,
    wte_ref, wpe_ref, lnf_g_ref, lnf_b_ref,
    ln1g_ref, ln1b_ref, wqkv_ref, bqkv_ref, pw_ref, pb_ref,
    ln2g_ref, ln2b_ref, fcw_ref, fcb_ref, mw_ref, mb_ref,
    logits_ref, nll_ref,
):
    T, C = wpe_ref.shape
    V = wte_ref.shape[0]
    H, hd = N_HEAD, HEAD_DIM
    scale = 1.0 / math.sqrt(hd)

    # ---- token embedding: bf16 one-hot(token) @ wte (lane-dense V) + pos add ----
    tok = tok_ref[0]                                              # (T, 1) int32
    vocab_iota = jax.lax.broadcasted_iota(jnp.int32, (T, V), 1)
    tok_oh = (vocab_iota == tok).astype(jnp.bfloat16)             # direct bf16 one-hot
    x = jnp.dot(tok_oh, wte_ref[...],
                preferred_element_type=jnp.float32) + wpe_ref[...]  # (T, C) f32

    # causal additive mask, broadcast hoisted out of the layer loop
    mask_b = jnp.broadcast_to(mask_ref[...][None], (H, T, T))     # (H, T, T) f32

    # ---- transformer blocks (static unroll; all weights VMEM-resident) ----
    # TODO(synk): at real GPT-2 depth/width, make the layer a grid axis ("arbitrary")
    # over the stacked (L, ...) weight refs and tile the LM head over V so weights
    # stream/double-buffer instead of being fully VMEM-resident (v7x: 64 MiB VMEM).
    for li in range(N_LAYER):
        # -- self-attention (pre-LN): single fused lane-dense QKV matmul --
        h = _layer_norm(x, ln1g_ref[li], ln1b_ref[li]).astype(jnp.bfloat16)
        qkv = jnp.dot(h, wqkv_ref[li],
                      preferred_element_type=jnp.float32) + bqkv_ref[li]   # (T, 3C)
        q = qkv[:, 0 * C:1 * C].reshape(T, H, hd)
        k = qkv[:, 1 * C:2 * C].reshape(T, H, hd)
        v = qkv[:, 2 * C:3 * C].reshape(T, H, hd)

        s = jnp.einsum('qhd,khd->hqk',
                       q.astype(jnp.bfloat16), k.astype(jnp.bfloat16),
                       preferred_element_type=jnp.float32) * scale + mask_b
        s = s - jnp.max(s, axis=-1, keepdims=True)
        p = jnp.exp(s)
        p = p / jnp.sum(p, axis=-1, keepdims=True)                # exact softmax

        o = jnp.einsum('hqk,khd->qhd',
                       p.astype(jnp.bfloat16), v.astype(jnp.bfloat16),
                       preferred_element_type=jnp.float32)        # (T, H, hd)
        merged = o.reshape(T, C).astype(jnp.bfloat16)             # HF merge_heads order
        x = x + jnp.dot(merged, pw_ref[li],
                        preferred_element_type=jnp.float32) + pb_ref[li]

        # -- MLP (pre-LN) --
        h2 = _layer_norm(x, ln2g_ref[li], ln2b_ref[li]).astype(jnp.bfloat16)
        f = jnp.dot(h2, fcw_ref[li],
                    preferred_element_type=jnp.float32) + fcb_ref[li]
        g = _gelu_new(f)
        x = x + jnp.dot(g.astype(jnp.bfloat16), mw_ref[li],
                        preferred_element_type=jnp.float32) + mb_ref[li]

    # ---- final LN + tied LM head against the single (V, C) wte copy ----
    hf = _layer_norm(x, lnf_g_ref[...], lnf_b_ref[...]).astype(jnp.bfloat16)
    logits = jax.lax.dot_general(
        hf, wte_ref[...],
        dimension_numbers=(((1,), (1,)), ((), ())),
        preferred_element_type=jnp.float32)                       # (T, V), lane-dense V
    logits_ref[0] = logits

    # ---- fused shifted cross-entropy: per-sequence NLL partial ----
    # Labels are pre-shifted per sequence in the wrapper; the last position of each
    # sequence is masked here, so the filler label never contributes.
    lab = lab_ref[0]                                              # (T, 1) int32
    lab_oh = (vocab_iota == lab).astype(jnp.float32)
    row = jax.lax.broadcasted_iota(jnp.int32, (T, 1), 0)
    valid = (row < (T - 1)).astype(jnp.float32)
    mx = jnp.max(logits, axis=-1, keepdims=True)
    lse = mx + jnp.log(jnp.sum(jnp.exp(logits - mx), axis=-1, keepdims=True))
    tgt = jnp.sum(logits * lab_oh, axis=-1, keepdims=True)
    nll = (lse - tgt) * valid                                     # (T, 1)
    nll_ref[...] = jnp.sum(nll, axis=0, keepdims=True)[None]      # (1, 1, 1)


# ------------------------------- parameters ----------------------------------
def init_params(key):
    ks = iter(jax.random.split(key, 2 + N_LAYER * 4))

    def nrm(shape, std=0.02):
        return jax.random.normal(next(ks), shape, jnp.float32) * std

    params = {
        "wte": nrm((VOCAB, N_EMBD)),
        "wpe": nrm((SEQ, N_EMBD), 0.01),
        "ln_f_g": jnp.ones((1, N_EMBD), jnp.float32),
        "ln_f_b": jnp.zeros((1, N_EMBD), jnp.float32),
        "blocks": [],
    }
    for _ in range(N_LAYER):
        params["blocks"].append({
            "ln1_g": jnp.ones((1, N_EMBD), jnp.float32),
            "ln1_b": jnp.zeros((1, N_EMBD), jnp.float32),
            "attn_w": nrm((N_EMBD, 3 * N_EMBD)),
            "attn_b": jnp.zeros((1, 3 * N_EMBD), jnp.float32),
            "attn_proj_w": nrm((N_EMBD, N_EMBD)),
            "attn_proj_b": jnp.zeros((1, N_EMBD), jnp.float32),
            "ln2_g": jnp.ones((1, N_EMBD), jnp.float32),
            "ln2_b": jnp.zeros((1, N_EMBD), jnp.float32),
            "fc_w": nrm((N_EMBD, 4 * N_EMBD)),
            "fc_b": jnp.zeros((1, 4 * N_EMBD), jnp.float32),
            "proj_w": nrm((4 * N_EMBD, N_EMBD)),
            "proj_b": jnp.zeros((1, N_EMBD), jnp.float32),
        })
    return params


# ----------------------- wrapper-side layout plumbing -------------------------
def _stack_blocks(blocks):
    """Stack per-layer params along a leading L axis; matmul weights to bf16."""
    def st(name, dtype=None):
        a = jnp.stack([b[name] for b in blocks], axis=0)
        return a.astype(dtype) if dtype is not None else a

    return {
        "ln1_g": st("ln1_g"), "ln1_b": st("ln1_b"),
        "wqkv": st("attn_w", jnp.bfloat16),        # (L, C, 3C) fused QKV
        "bqkv": st("attn_b"),                      # (L, 1, 3C)
        "pw": st("attn_proj_w", jnp.bfloat16),     # (L, C, C)
        "pb": st("attn_proj_b"),
        "ln2_g": st("ln2_g"), "ln2_b": st("ln2_b"),
        "fcw": st("fc_w", jnp.bfloat16), "fcb": st("fc_b"),
        "mw": st("proj_w", jnp.bfloat16), "mb": st("proj_b"),
    }


# ------------------------------ full forward ---------------------------------
def gpt2_forward(tokens, params):
    """GPT2LMHeadModel forward with labels == input_ids (as in the PyTorch module)."""
    B, T = tokens.shape
    V, C = params["wte"].shape

    tok3 = tokens.reshape(B, T, 1).astype(jnp.int32)
    # per-sequence shifted labels; final position is masked in-kernel (no leakage)
    lab3 = jnp.concatenate(
        [tokens[:, 1:], jnp.zeros((B, 1), tokens.dtype)], axis=1
    ).reshape(B, T, 1).astype(jnp.int32)

    r = jnp.arange(T)
    mask = jnp.where(r[:, None] >= r[None, :], 0.0, -1e9).astype(jnp.float32)  # (T, T)

    wte_bf = params["wte"].astype(jnp.bfloat16)     # single copy, also used as LM head
    wpe = params["wpe"][:T]                         # (T, C) f32
    blk = _stack_blocks(params["blocks"])

    def const_spec(arr):
        nd = arr.ndim
        return pl.BlockSpec(arr.shape, lambda b, _nd=nd: (0,) * _nd,
                            memory_space=pltpu.MemorySpace.VMEM)

    def seq_spec(shape):
        nd = len(shape)
        blk_shape = (1,) + tuple(shape[1:])
        return pl.BlockSpec(blk_shape,
                            lambda b, _nd=nd: (b,) + (0,) * (_nd - 1),
                            memory_space=pltpu.MemorySpace.VMEM)

    operands = (tok3, lab3, mask, wte_bf, wpe,
                params["ln_f_g"], params["ln_f_b"],
                blk["ln1_g"], blk["ln1_b"], blk["wqkv"], blk["bqkv"],
                blk["pw"], blk["pb"], blk["ln2_g"], blk["ln2_b"],
                blk["fcw"], blk["fcb"], blk["mw"], blk["mb"])

    in_specs = ([seq_spec(tok3.shape), seq_spec(lab3.shape)]
                + [const_spec(a) for a in operands[2:]])

    logits, nll_part = pl.pallas_call(
        gpt2_seq_kernel,
        grid=(B,),
        in_specs=in_specs,
        out_specs=(seq_spec((B, T, V)), seq_spec((B, 1, 1))),
        out_shape=(jax.ShapeDtypeStruct((B, T, V), jnp.float32),
                   jax.ShapeDtypeStruct((B, 1, 1), jnp.float32)),
        compiler_params=pltpu.CompilerParams(
            dimension_semantics=("parallel",),
            vmem_limit_bytes=32 * 1024 * 1024),
    )(*operands)

    # static denominator: B sequences * (T-1) predicted positions each
    loss = jnp.sum(nll_part) / (B * (T - 1))
    return loss, logits


# ----------------------------------- main -------------------------------------
if __name__ == "__main__":
    key = jax.random.PRNGKey(0)
    kp, kt = jax.random.split(key)
    params = init_params(kp)
    # synthetic "tokenized" batch (stands in for tokenizer output)
    tokens = jax.random.randint(kt, (BATCH, SEQ), 0, VOCAB, dtype=jnp.int32)

    fwd = jax.jit(gpt2_forward)
    loss, logits = fwd(tokens, params)
    jax.block_until_ready((loss, logits))
    assert logits.shape == (BATCH, SEQ, VOCAB)
    assert bool(jnp.isfinite(loss))
    print("KERNEL_OK")
</pallas_src>

<mosaic_0001>
module attributes {stable_mosaic.version = 11 : i64} {
  func.func @gpt2_seq_kernel(%arg0: i32, %arg1: memref<1x8x1xi32, #tpu.memory_space<vmem>>, %arg2: memref<1x8x1xi32, #tpu.memory_space<vmem>>, %arg3: memref<8x8xf32, #tpu.memory_space<vmem>>, %arg4: memref<128x64xbf16, #tpu.memory_space<vmem>>, %arg5: memref<8x64xf32, #tpu.memory_space<vmem>>, %arg6: memref<1x64xf32, #tpu.memory_space<vmem>>, %arg7: memref<1x64xf32, #tpu.memory_space<vmem>>, %arg8: memref<2x1x64xf32, #tpu.memory_space<vmem>>, %arg9: memref<2x1x64xf32, #tpu.memory_space<vmem>>, %arg10: memref<2x64x192xbf16, #tpu.memory_space<vmem>>, %arg11: memref<2x1x192xf32, #tpu.memory_space<vmem>>, %arg12: memref<2x64x64xbf16, #tpu.memory_space<vmem>>, %arg13: memref<2x1x64xf32, #tpu.memory_space<vmem>>, %arg14: memref<2x1x64xf32, #tpu.memory_space<vmem>>, %arg15: memref<2x1x64xf32, #tpu.memory_space<vmem>>, %arg16: memref<2x64x256xbf16, #tpu.memory_space<vmem>>, %arg17: memref<2x1x256xf32, #tpu.memory_space<vmem>>, %arg18: memref<2x256x64xbf16, #tpu.memory_space<vmem>>, %arg19: memref<2x1x64xf32, #tpu.memory_space<vmem>>, %arg20: memref<1x8x128xf32, #tpu.memory_space<vmem>>, %arg21: memref<1x1x1xf32, #tpu.memory_space<vmem>>) attributes {dimension_semantics = [#tpu.dimension_semantics<parallel>], iteration_bounds = array<i64: 2>, scalar_prefetch = 0 : i64, scratch_operands = 0 : i64, tpu.core_type = #tpu.core_type<tc>, window_params = [{transform_indices = @transform_0, window_bounds = array<i64: 1, 8, 1>}, {transform_indices = @transform_1, window_bounds = array<i64: 1, 8, 1>}, {pipeline_mode = #tpu.pipeline_mode<synchronous>, transform_indices = @transform_2, window_bounds = array<i64: 8, 8>}, {pipeline_mode = #tpu.pipeline_mode<synchronous>, transform_indices = @transform_3, window_bounds = array<i64: 128, 64>}, {pipeline_mode = #tpu.pipeline_mode<synchronous>, transform_indices = @transform_4, window_bounds = array<i64: 8, 64>}, {pipeline_mode = #tpu.pipeline_mode<synchronous>, transform_indices = @transform_5, window_bounds = array<i64: 1, 64>}, {pipeline_mode = #tpu.pipeline_mode<synchronous>, transform_indices = @transform_6, window_bounds = array<i64: 1, 64>}, {pipeline_mode = #tpu.pipeline_mode<synchronous>, transform_indices = @transform_7, window_bounds = array<i64: 2, 1, 64>}, {pipeline_mode = #tpu.pipeline_mode<synchronous>, transform_indices = @transform_8, window_bounds = array<i64: 2, 1, 64>}, {pipeline_mode = #tpu.pipeline_mode<synchronous>, transform_indices = @transform_9, window_bounds = array<i64: 2, 64, 192>}, {pipeline_mode = #tpu.pipeline_mode<synchronous>, transform_indices = @transform_10, window_bounds = array<i64: 2, 1, 192>}, {pipeline_mode = #tpu.pipeline_mode<synchronous>, transform_indices = @transform_11, window_bounds = array<i64: 2, 64, 64>}, {pipeline_mode = #tpu.pipeline_mode<synchronous>, transform_indices = @transform_12, window_bounds = array<i64: 2, 1, 64>}, {pipeline_mode = #tpu.pipeline_mode<synchronous>, transform_indices = @transform_13, window_bounds = array<i64: 2, 1, 64>}, {pipeline_mode = #tpu.pipeline_mode<synchronous>, transform_indices = @transform_14, window_bounds = array<i64: 2, 1, 64>}, {pipeline_mode = #tpu.pipeline_mode<synchronous>, transform_indices = @transform_15, window_bounds = array<i64: 2, 64, 256>}, {pipeline_mode = #tpu.pipeline_mode<synchronous>, transform_indices = @transform_16, window_bounds = array<i64: 2, 1, 256>}, {pipeline_mode = #tpu.pipeline_mode<synchronous>, transform_indices = @transform_17, window_bounds = array<i64: 2, 256, 64>}, {pipeline_mode = #tpu.pipeline_mode<synchronous>, transform_indices = @transform_18, window_bounds = array<i64: 2, 1, 64>}, {transform_indices = @transform_19, window_bounds = array<i64: 1, 8, 128>}, {transform_indices = @transform_20, window_bounds = array<i64: 1, 1, 1>}]} {
    %c0 = arith.constant 0 : index
    %c0_0 = arith.constant 0 : index
    %c0_1 = arith.constant 0 : index
    %0 = vector.load %arg1[%c0, %c0_0, %c0_1] : memref<1x8x1xi32, #tpu.memory_space<vmem>>, vector<1x8x1xi32>
    %1 = vector.shape_cast %0 : vector<1x8x1xi32> to vector<8x1xi32>
    %2 = tpu.iota {dimensions = array<i32: 1>} : vector<8x128xi32>
    %3 = vector.broadcast %1 : vector<8x1xi32> to vector<8x128xi32>
    %4 = arith.cmpi eq, %2, %3 : vector<8x128xi32>
    %5 = arith.extui %4 : vector<8x128xi1> to vector<8x128xi32>
    %6 = arith.sitofp %5 : vector<8x128xi32> to vector<8x128xf32>
    %7 = arith.truncf %6 : vector<8x128xf32> to vector<8x128xbf16>
    %c0_2 = arith.constant 0 : index
    %c0_3 = arith.constant 0 : index
    %8 = vector.load %arg4[%c0_2, %c0_3] : memref<128x64xbf16, #tpu.memory_space<vmem>>, vector<128x64xbf16>
    %cst = arith.constant dense<0.000000e+00> : vector<8x64xf32>
    %9 = tpu.matmul %7, %8, %cst {dimension_numbers = #tpu.dot_dimension_numbers<[1], [0], [0], [1], [0, 0, 1, 1], [], []>} : vector<8x128xbf16>, vector<128x64xbf16>, vector<8x64xf32> -> vector<8x64xf32>
    %c0_4 = arith.constant 0 : index
    %c0_5 = arith.constant 0 : index
    %10 = vector.load %arg5[%c0_4, %c0_5] : memref<8x64xf32, #tpu.memory_space<vmem>>, vector<8x64xf32>
    %11 = arith.addf %9, %10 : vector<8x64xf32>
    %c0_6 = arith.constant 0 : index
    %c0_7 = arith.constant 0 : index
    %12 = vector.load %arg3[%c0_6, %c0_7] : memref<8x8xf32, #tpu.memory_space<vmem>>, vector<8x8xf32>
    %13 = vector.shape_cast %12 : vector<8x8xf32> to vector<1x8x8xf32>
    %14 = vector.shape_cast %13 : vector<1x8x8xf32> to vector<1x8x8xf32>
    %15 = vector.broadcast %14 : vector<1x8x8xf32> to vector<4x8x8xf32>
    %c0_8 = arith.constant 0 : index
    %c0_9 = arith.constant 0 : index
    %c0_10 = arith.constant 0 : index
    %16 = vector.load %arg8[%c0_8, %c0_9, %c0_10] : memref<2x1x64xf32, #tpu.memory_space<vmem>>, vector<1x1x64xf32>
    %17 = vector.shape_cast %16 : vector<1x1x64xf32> to vector<1x64xf32>
    %c0_11 = arith.constant 0 : index
    %c0_12 = arith.constant 0 : index
    %c0_13 = arith.constant 0 : index
    %18 = vector.load %arg9[%c0_11, %c0_12, %c0_13] : memref<2x1x64xf32, #tpu.memory_space<vmem>>, vector<1x1x64xf32>
    %19 = vector.shape_cast %18 : vector<1x1x64xf32> to vector<1x64xf32>
    %cst_14 = arith.constant dense<0.000000e+00> : vector<8xf32>
    %20 = vector.multi_reduction <add>, %11, %cst_14 [1] : vector<8x64xf32> to vector<8xf32>
    %21 = vector.shape_cast %20 : vector<8xf32> to vector<8x1xf32>
    %cst_15 = arith.constant 6.400000e+01 : f32
    %22 = vector.broadcast %cst_15 : f32 to vector<8x1xf32>
    %23 = arith.divf %21, %22 : vector<8x1xf32>
    %24 = vector.broadcast %23 : vector<8x1xf32> to vector<8x64xf32>
    %25 = arith.subf %11, %24 : vector<8x64xf32>
    %26 = arith.mulf %25, %25 : vector<8x64xf32>
    %cst_16 = arith.constant dense<0.000000e+00> : vector<8xf32>
    %27 = vector.multi_reduction <add>, %26, %cst_16 [1] : vector<8x64xf32> to vector<8xf32>
    %28 = vector.shape_cast %27 : vector<8xf32> to vector<8x1xf32>
    %cst_17 = arith.constant 6.400000e+01 : f32
    %29 = vector.broadcast %cst_17 : f32 to vector<8x1xf32>
    %30 = arith.divf %28, %29 : vector<8x1xf32>
    %31 = vector.broadcast %23 : vector<8x1xf32> to vector<8x64xf32>
    %32 = arith.subf %11, %31 : vector<8x64xf32>
    %cst_18 = arith.constant 9.99999974E-6 : f32
    %33 = vector.broadcast %cst_18 : f32 to vector<8x1xf32>
    %34 = arith.addf %30, %33 : vector<8x1xf32>
    %35 = math.rsqrt %34 : vector<8x1xf32>
    %36 = vector.broadcast %35 : vector<8x1xf32> to vector<8x64xf32>
    %37 = arith.mulf %32, %36 : vector<8x64xf32>
    %38 = vector.broadcast %17 : vector<1x64xf32> to vector<8x64xf32>
    %39 = arith.mulf %37, %38 : vector<8x64xf32>
    %40 = vector.broadcast %19 : vector<1x64xf32> to vector<8x64xf32>
    %41 = arith.addf %39, %40 : vector<8x64xf32>
    %42 = arith.truncf %41 : vector<8x64xf32> to vector<8x64xbf16>
    %c0_19 = arith.constant 0 : index
    %c0_20 = arith.constant 0 : index
    %c0_21 = arith.constant 0 : index
    %43 = vector.load %arg10[%c0_19, %c0_20, %c0_21] : memref<2x64x192xbf16, #tpu.memory_space<vmem>>, vector<1x64x192xbf16>
    %44 = vector.shape_cast %43 : vector<1x64x192xbf16> to vector<64x192xbf16>
    %cst_22 = arith.constant dense<0.000000e+00> : vector<8x192xf32>
    %45 = tpu.matmul %42, %44, %cst_22 {dimension_numbers = #tpu.dot_dimension_numbers<[1], [0], [0], [1], [0, 0, 1, 1], [], []>} : vector<8x64xbf16>, vector<64x192xbf16>, vector<8x192xf32> -> vector<8x192xf32>
    %c0_23 = arith.constant 0 : index
    %c0_24 = arith.constant 0 : index
    %c0_25 = arith.constant 0 : index
    %46 = vector.load %arg11[%c0_23, %c0_24, %c0_25] : memref<2x1x192xf32, #tpu.memory_space<vmem>>, vector<1x1x192xf32>
    %47 = vector.shape_cast %46 : vector<1x1x192xf32> to vector<1x192xf32>
    %48 = vector.broadcast %47 : vector<1x192xf32> to vector<8x192xf32>
    %49 = arith.addf %45, %48 : vector<8x192xf32>
    %50 = vector.extract_strided_slice %49 {offsets = [0, 0], sizes = [8, 64], strides = [1, 1]} : vector<8x192xf32> to vector<8x64xf32>
    %51 = vector.shape_cast %50 : vector<8x64xf32> to vector<8x4x16xf32>
    %52 = vector.extract_strided_slice %49 {offsets = [0, 64], sizes = [8, 64], strides = [1, 1]} : vector<8x192xf32> to vector<8x64xf32>
    %53 = vector.shape_cast %52 : vector<8x64xf32> to vector<8x4x16xf32>
    %54 = vector.extract_strided_slice %49 {offsets = [0, 128], sizes = [8, 64], strides = [1, 1]} : vector<8x192xf32> to vector<8x64xf32>
    %55 = vector.shape_cast %54 : vector<8x64xf32> to vector<8x4x16xf32>
    %56 = arith.truncf %51 : vector<8x4x16xf32> to vector<8x4x16xbf16>
    %57 = arith.truncf %53 : vector<8x4x16xf32> to vector<8x4x16xbf16>
    "tpu.trace_start"() <{level = 10 : i32, message = "qhd,khd->hqk"}> : () -> ()
    %cst_26 = arith.constant dense<0.000000e+00> : vector<4x8x8xf32>
    %58 = tpu.matmul %56, %57, %cst_26 {dimension_numbers = #tpu.dot_dimension_numbers<[2], [2], [0], [0], [0, 1, 0, 0, 1, 0], [1], [1]>} : vector<8x4x16xbf16>, vector<8x4x16xbf16>, vector<4x8x8xf32> -> vector<4x8x8xf32>
    "tpu.trace_stop"() : () -> ()
    %cst_27 = arith.constant 2.500000e-01 : f32
    %59 = vector.broadcast %cst_27 : f32 to vector<4x8x8xf32>
    %60 = arith.mulf %58, %59 : vector<4x8x8xf32>
    %61 = arith.addf %60, %15 : vector<4x8x8xf32>
    %cst_28 = arith.constant dense<0xFF800000> : vector<4x8xf32>
    %62 = vector.multi_reduction <maximumf>, %61, %cst_28 [2] : vector<4x8x8xf32> to vector<4x8xf32>
    %63 = vector.shape_cast %62 : vector<4x8xf32> to vector<4x8x1xf32>
    %64 = vector.broadcast %63 : vector<4x8x1xf32> to vector<4x8x8xf32>
    %65 = arith.subf %61, %64 : vector<4x8x8xf32>
    %66 = math.exp %65 : vector<4x8x8xf32>
    %cst_29 = arith.constant dense<0.000000e+00> : vector<4x8xf32>
    %67 = vector.multi_reduction <add>, %66, %cst_29 [2] : vector<4x8x8xf32> to vector<4x8xf32>
    %68 = vector.shape_cast %67 : vector<4x8xf32> to vector<4x8x1xf32>
    %69 = vector.broadcast %68 : vector<4x8x1xf32> to vector<4x8x8xf32>
    %70 = arith.divf %66, %69 : vector<4x8x8xf32>
    %71 = arith.truncf %70 : vector<4x8x8xf32> to vector<4x8x8xbf16>
    %72 = arith.truncf %55 : vector<8x4x16xf32> to vector<8x4x16xbf16>
    "tpu.trace_start"() <{level = 10 : i32, message = "hqk,khd->qhd"}> : () -> ()
    %cst_30 = arith.constant dense<0.000000e+00> : vector<4x16x8xf32>
    %73 = tpu.matmul %72, %71, %cst_30 {dimension_numbers = #tpu.dot_dimension_numbers<[0], [2], [2], [1], [0, 1, 0, 2, 1, 1], [1], [0]>} : vector<8x4x16xbf16>, vector<4x8x8xbf16>, vector<4x16x8xf32> -> vector<4x16x8xf32>
    %74 = tpu.transpose %73, [2, 0, 1] : vector<4x16x8xf32> -> vector<8x4x16xf32>
    "tpu.trace_stop"() : () -> ()
    %75 = vector.shape_cast %74 : vector<8x4x16xf32> to vector<8x64xf32>
    %76 = arith.truncf %75 : vector<8x64xf32> to vector<8x64xbf16>
    %c0_31 = arith.constant 0 : index
    %c0_32 = arith.constant 0 : index
    %c0_33 = arith.constant 0 : index
    %77 = vector.load %arg12[%c0_31, %c0_32, %c0_33] : memref<2x64x64xbf16, #tpu.memory_space<vmem>>, vector<1x64x64xbf16>
    %78 = vector.shape_cast %77 : vector<1x64x64xbf16> to vector<64x64xbf16>
    %cst_34 = arith.constant dense<0.000000e+00> : vector<8x64xf32>
    %79 = tpu.matmul %76, %78, %cst_34 {dimension_numbers = #tpu.dot_dimension_numbers<[1], [0], [0], [1], [0, 0, 1, 1], [], []>} : vector<8x64xbf16>, vector<64x64xbf16>, vector<8x64xf32> -> vector<8x64xf32>
    %80 = arith.addf %11, %79 : vector<8x64xf32>
    %c0_35 = arith.constant 0 : index
    %c0_36 = arith.constant 0 : index
    %c0_37 = arith.constant 0 : index
    %81 = vector.load %arg13[%c0_35, %c0_36, %c0_37] : memref<2x1x64xf32, #tpu.memory_space<vmem>>, vector<1x1x64xf32>
    %82 = vector.shape_cast %81 : vector<1x1x64xf32> to vector<1x64xf32>
    %83 = vector.broadcast %82 : vector<1x64xf32> to vector<8x64xf32>
    %84 = arith.addf %80, %83 : vector<8x64xf32>
    %c0_38 = arith.constant 0 : index
    %c0_39 = arith.constant 0 : index
    %c0_40 = arith.constant 0 : index
    %85 = vector.load %arg14[%c0_38, %c0_39, %c0_40] : memref<2x1x64xf32, #tpu.memory_space<vmem>>, vector<1x1x64xf32>
    %86 = vector.shape_cast %85 : vector<1x1x64xf32> to vector<1x64xf32>
    %c0_41 = arith.constant 0 : index
    %c0_42 = arith.constant 0 : index
    %c0_43 = arith.constant 0 : index
    %87 = vector.load %arg15[%c0_41, %c0_42, %c0_43] : memref<2x1x64xf32, #tpu.memory_space<vmem>>, vector<1x1x64xf32>
    %88 = vector.shape_cast %87 : vector<1x1x64xf32> to vector<1x64xf32>
    %cst_44 = arith.constant dense<0.000000e+00> : vector<8xf32>
    %89 = vector.multi_reduction <add>, %84, %cst_44 [1] : vector<8x64xf32> to vector<8xf32>
    %90 = vector.shape_cast %89 : vector<8xf32> to vector<8x1xf32>
    %cst_45 = arith.constant 6.400000e+01 : f32
    %91 = vector.broadcast %cst_45 : f32 to vector<8x1xf32>
    %92 = arith.divf %90, %91 : vector<8x1xf32>
    %93 = vector.broadcast %92 : vector<8x1xf32> to vector<8x64xf32>
    %94 = arith.subf %84, %93 : vector<8x64xf32>
    %95 = arith.mulf %94, %94 : vector<8x64xf32>
    %cst_46 = arith.constant dense<0.000000e+00> : vector<8xf32>
    %96 = vector.multi_reduction <add>, %95, %cst_46 [1] : vector<8x64xf32> to vector<8xf32>
    %97 = vector.shape_cast %96 : vector<8xf32> to vector<8x1xf32>
    %cst_47 = arith.constant 6.400000e+01 : f32
    %98 = vector.broadcast %cst_47 : f32 to vector<8x1xf32>
    %99 = arith.divf %97, %98 : vector<8x1xf32>
    %100 = vector.broadcast %92 : vector<8x1xf32> to vector<8x64xf32>
    %101 = arith.subf %84, %100 : vector<8x64xf32>
    %cst_48 = arith.constant 9.99999974E-6 : f32
    %102 = vector.broadcast %cst_48 : f32 to vector<8x1xf32>
    %103 = arith.addf %99, %102 : vector<8x1xf32>
    %104 = math.rsqrt %103 : vector<8x1xf32>
    %105 = vector.broadcast %104 : vector<8x1xf32> to vector<8x64xf32>
    %106 = arith.mulf %101, %105 : vector<8x64xf32>
    %107 = vector.broadcast %86 : vector<1x64xf32> to vector<8x64xf32>
    %108 = arith.mulf %106, %107 : vector<8x64xf32>
    %109 = vector.broadcast %88 : vector<1x64xf32> to vector<8x64xf32>
    %110 = arith.addf %108, %109 : vector<8x64xf32>
    %111 = arith.truncf %110 : vector<8x64xf32> to vector<8x64xbf16>
    %c0_49 = arith.constant 0 : index
    %c0_50 = arith.constant 0 : index
    %c0_51 = arith.constant 0 : index
    %112 = vector.load %arg16[%c0_49, %c0_50, %c0_51] : memref<2x64x256xbf16, #tpu.memory_space<vmem>>, vector<1x64x256xbf16>
    %113 = vector.shape_cast %112 : vector<1x64x256xbf16> to vector<64x256xbf16>
    %cst_52 = arith.constant dense<0.000000e+00> : vector<8x256xf32>
    %114 = tpu.matmul %111, %113, %cst_52 {dimension_numbers = #tpu.dot_dimension_numbers<[1], [0], [0], [1], [0, 0, 1, 1], [], []>} : vector<8x64xbf16>, vector<64x256xbf16>, vector<8x256xf32> -> vector<8x256xf32>
    %c0_53 = arith.constant 0 : index
    %c0_54 = arith.constant 0 : index
    %c0_55 = arith.constant 0 : index
    %115 = vector.load %arg17[%c0_53, %c0_54, %c0_55] : memref<2x1x256xf32, #tpu.memory_space<vmem>>, vector<1x1x256xf32>
    %116 = vector.shape_cast %115 : vector<1x1x256xf32> to vector<1x256xf32>
    %117 = vector.broadcast %116 : vector<1x256xf32> to vector<8x256xf32>
    %118 = arith.addf %114, %117 : vector<8x256xf32>
    %cst_56 = arith.constant 5.000000e-01 : f32
    %119 = vector.broadcast %cst_56 : f32 to vector<8x256xf32>
    %120 = arith.mulf %119, %118 : vector<8x256xf32>
    %cst_57 = arith.constant 4.471500e-02 : f32
    %121 = vector.broadcast %cst_57 : f32 to vector<8x256xf32>
    %122 = arith.mulf %121, %118 : vector<8x256xf32>
    %123 = arith.mulf %122, %118 : vector<8x256xf32>
    %124 = arith.mulf %123, %118 : vector<8x256xf32>
    %125 = arith.addf %118, %124 : vector<8x256xf32>
    %cst_58 = arith.constant 0.797884583 : f32
    %126 = vector.broadcast %cst_58 : f32 to vector<8x256xf32>
    %127 = arith.mulf %126, %125 : vector<8x256xf32>
    %128 = math.tanh %127 : vector<8x256xf32>
    %cst_59 = arith.constant 1.000000e+00 : f32
    %129 = vector.broadcast %cst_59 : f32 to vector<8x256xf32>
    %130 = arith.addf %129, %128 : vector<8x256xf32>
    %131 = arith.mulf %120, %130 : vector<8x256xf32>
    %132 = arith.truncf %131 : vector<8x256xf32> to vector<8x256xbf16>
    %c0_60 = arith.constant 0 : index
    %c0_61 = arith.constant 0 : index
    %c0_62 = arith.constant 0 : index
    %133 = vector.load %arg18[%c0_60, %c0_61, %c0_62] : memref<2x256x64xbf16, #tpu.memory_space<vmem>>, vector<1x256x64xbf16>
    %134 = vector.shape_cast %133 : vector<1x256x64xbf16> to vector<256x64xbf16>
    %cst_63 = arith.constant dense<0.000000e+00> : vector<8x64xf32>
    %135 = tpu.matmul %132, %134, %cst_63 {dimension_numbers = #tpu.dot_dimension_numbers<[1], [0], [0], [1], [0, 0, 1, 1], [], []>} : vector<8x256xbf16>, vector<256x64xbf16>, vector<8x64xf32> -> vector<8x64xf32>
    %136 = arith.addf %84, %135 : vector<8x64xf32>
    %c0_64 = arith.constant 0 : index
    %c0_65 = arith.constant 0 : index
    %c0_66 = arith.constant 0 : index
    %137 = vector.load %arg19[%c0_64, %c0_65, %c0_66] : memref<2x1x64xf32, #tpu.memory_space<vmem>>, vector<1x1x64xf32>
    %138 = vector.shape_cast %137 : vector<1x1x64xf32> to vector<1x64xf32>
    %139 = vector.broadcast %138 : vector<1x64xf32> to vector<8x64xf32>
    %140 = arith.addf %136, %139 : vector<8x64xf32>
    %c1 = arith.constant 1 : index
    %c0_67 = arith.constant 0 : index
    %c0_68 = arith.constant 0 : index
    %141 = vector.load %arg8[%c1, %c0_67, %c0_68] : memref<2x1x64xf32, #tpu.memory_space<vmem>>, vector<1x1x64xf32>
    %142 = vector.shape_cast %141 : vector<1x1x64xf32> to vector<1x64xf32>
    %c1_69 = arith.constant 1 : index
    %c0_70 = arith.constant 0 : index
    %c0_71 = arith.constant 0 : index
    %143 = vector.load %arg9[%c1_69, %c0_70, %c0_71] : memref<2x1x64xf32, #tpu.memory_space<vmem>>, vector<1x1x64xf32>
    %144 = vector.shape_cast %143 : vector<1x1x64xf32> to vector<1x64xf32>
    %cst_72 = arith.constant dense<0.000000e+00> : vector<8xf32>
    %145 = vector.multi_reduction <add>, %140, %cst_72 [1] : vector<8x64xf32> to vector<8xf32>
    %146 = vector.shape_cast %145 : vector<8xf32> to vector<8x1xf32>
    %cst_73 = arith.constant 6.400000e+01 : f32
    %147 = vector.broadcast %cst_73 : f32 to vector<8x1xf32>
    %148 = arith.divf %146, %147 : vector<8x1xf32>
    %149 = vector.broadcast %148 : vector<8x1xf32> to vector<8x64xf32>
    %150 = arith.subf %140, %149 : vector<8x64xf32>
    %151 = arith.mulf %150, %150 : vector<8x64xf32>
    %cst_74 = arith.constant dense<0.000000e+00> : vector<8xf32>
    %152 = vector.multi_reduction <add>, %151, %cst_74 [1] : vector<8x64xf32> to vector<8xf32>
    %153 = vector.shape_cast %152 : vector<8xf32> to vector<8x1xf32>
    %cst_75 = arith.constant 6.400000e+01 : f32
    %154 = vector.broadcast %cst_75 : f32 to vector<8x1xf32>
    %155 = arith.divf %153, %154 : vector<8x1xf32>
    %156 = vector.broadcast %148 : vector<8x1xf32> to vector<8x64xf32>
    %157 = arith.subf %140, %156 : vector<8x64xf32>
    %cst_76 = arith.constant 9.99999974E-6 : f32
    %158 = vector.broadcast %cst_76 : f32 to vector<8x1xf32>
    %159 = arith.addf %155, %158 : vector<8x1xf32>
    %160 = math.rsqrt %159 : vector<8x1xf32>
    %161 = vector.broadcast %160 : vector<8x1xf32> to vector<8x64xf32>
    %162 = arith.mulf %157, %161 : vector<8x64xf32>
    %163 = vector.broadcast %142 : vector<1x64xf32> to vector<8x64xf32>
    %164 = arith.mulf %162, %163 : vector<8x64xf32>
    %165 = vector.broadcast %144 : vector<1x64xf32> to vector<8x64xf32>
    %166 = arith.addf %164, %165 : vector<8x64xf32>
    %167 = arith.truncf %166 : vector<8x64xf32> to vector<8x64xbf16>
    %c1_77 = arith.constant 1 : index
    %c0_78 = arith.constant 0 : index
    %c0_79 = arith.constant 0 : index
    %168 = vector.load %arg10[%c1_77, %c0_78, %c0_79] : memref<2x64x192xbf16, #tpu.memory_space<vmem>>, vector<1x64x192xbf16>
    %169 = vector.shape_cast %168 : vector<1x64x192xbf16> to vector<64x192xbf16>
    %cst_80 = arith.constant dense<0.000000e+00> : vector<8x192xf32>
    %170 = tpu.matmul %167, %169, %cst_80 {dimension_numbers = #tpu.dot_dimension_numbers<[1], [0], [0], [1], [0, 0, 1, 1], [], []>} : vector<8x64xbf16>, vector<64x192xbf16>, vector<8x192xf32> -> vector<8x192xf32>
    %c1_81 = arith.constant 1 : index
    %c0_82 = arith.constant 0 : index
    %c0_83 = arith.constant 0 : index
    %171 = vector.load %arg11[%c1_81, %c0_82, %c0_83] : memref<2x1x192xf32, #tpu.memory_space<vmem>>, vector<1x1x192xf32>
    %172 = vector.shape_cast %171 : vector<1x1x192xf32> to vector<1x192xf32>
    %173 = vector.broadcast %172 : vector<1x192xf32> to vector<8x192xf32>
    %174 = arith.addf %170, %173 : vector<8x192xf32>
    %175 = vector.extract_strided_slice %174 {offsets = [0, 0], sizes = [8, 64], strides = [1, 1]} : vector<8x192xf32> to vector<8x64xf32>
    %176 = vector.shape_cast %175 : vector<8x64xf32> to vector<8x4x16xf32>
    %177 = vector.extract_strided_slice %174 {offsets = [0, 64], sizes = [8, 64], strides = [1, 1]} : vector<8x192xf32> to vector<8x64xf32>
    %178 = vector.shape_cast %177 : vector<8x64xf32> to vector<8x4x16xf32>
    %179 = vector.extract_strided_slice %174 {offsets = [0, 128], sizes = [8, 64], strides = [1, 1]} : vector<8x192xf32> to vector<8x64xf32>
    %180 = vector.shape_cast %179 : vector<8x64xf32> to vector<8x4x16xf32>
    %181 = arith.truncf %176 : vector<8x4x16xf32> to vector<8x4x16xbf16>
    %182 = arith.truncf %178 : vector<8x4x16xf32> to vector<8x4x16xbf16>
    "tpu.trace_start"() <{level = 10 : i32, message = "qhd,khd->hqk"}> : () -> ()
    %cst_84 = arith.constant dense<0.000000e+00> : vector<4x8x8xf32>
    %183 = tpu.matmul %181, %182, %cst_84 {dimension_numbers = #tpu.dot_dimension_numbers<[2], [2], [0], [0], [0, 1, 0, 0, 1, 0], [1], [1]>} : vector<8x4x16xbf16>, vector<8x4x16xbf16>, vector<4x8x8xf32> -> vector<4x8x8xf32>
    "tpu.trace_stop"() : () -> ()
    %cst_85 = arith.constant 2.500000e-01 : f32
    %184 = vector.broadcast %cst_85 : f32 to vector<4x8x8xf32>
    %185 = arith.mulf %183, %184 : vector<4x8x8xf32>
    %186 = arith.addf %185, %15 : vector<4x8x8xf32>
    %cst_86 = arith.constant dense<0xFF800000> : vector<4x8xf32>
    %187 = vector.multi_reduction <maximumf>, %186, %cst_86 [2] : vector<4x8x8xf32> to vector<4x8xf32>
    %188 = vector.shape_cast %187 : vector<4x8xf32> to vector<4x8x1xf32>
    %189 = vector.broadcast %188 : vector<4x8x1xf32> to vector<4x8x8xf32>
    %190 = arith.subf %186, %189 : vector<4x8x8xf32>
    %191 = math.exp %190 : vector<4x8x8xf32>
    %cst_87 = arith.constant dense<0.000000e+00> : vector<4x8xf32>
    %192 = vector.multi_reduction <add>, %191, %cst_87 [2] : vector<4x8x8xf32> to vector<4x8xf32>
    %193 = vector.shape_cast %192 : vector<4x8xf32> to vector<4x8x1xf32>
    %194 = vector.broadcast %193 : vector<4x8x1xf32> to vector<4x8x8xf32>
    %195 = arith.divf %191, %194 : vector<4x8x8xf32>
    %196 = arith.truncf %195 : vector<4x8x8xf32> to vector<4x8x8xbf16>
    %197 = arith.truncf %180 : vector<8x4x16xf32> to vector<8x4x16xbf16>
    "tpu.trace_start"() <{level = 10 : i32, message = "hqk,khd->qhd"}> : () -> ()
    %cst_88 = arith.constant dense<0.000000e+00> : vector<4x16x8xf32>
    %198 = tpu.matmul %197, %196, %cst_88 {dimension_numbers = #tpu.dot_dimension_numbers<[0], [2], [2], [1], [0, 1, 0, 2, 1, 1], [1], [0]>} : vector<8x4x16xbf16>, vector<4x8x8xbf16>, vector<4x16x8xf32> -> vector<4x16x8xf32>
    %199 = tpu.transpose %198, [2, 0, 1] : vector<4x16x8xf32> -> vector<8x4x16xf32>
    "tpu.trace_stop"() : () -> ()
    %200 = vector.shape_cast %199 : vector<8x4x16xf32> to vector<8x64xf32>
    %201 = arith.truncf %200 : vector<8x64xf32> to vector<8x64xbf16>
    %c1_89 = arith.constant 1 : index
    %c0_90 = arith.constant 0 : index
    %c0_91 = arith.constant 0 : index
    %202 = vector.load %arg12[%c1_89, %c0_90, %c0_91] : memref<2x64x64xbf16, #tpu.memory_space<vmem>>, vector<1x64x64xbf16>
    %203 = vector.shape_cast %202 : vector<1x64x64xbf16> to vector<64x64xbf16>
    %cst_92 = arith.constant dense<0.000000e+00> : vector<8x64xf32>
    %204 = tpu.matmul %201, %203, %cst_92 {dimension_numbers = #tpu.dot_dimension_numbers<[1], [0], [0], [1], [0, 0, 1, 1], [], []>} : vector<8x64xbf16>, vector<64x64xbf16>, vector<8x64xf32> -> vector<8x64xf32>
    %205 = arith.addf %140, %204 : vector<8x64xf32>
    %c1_93 = arith.constant 1 : index
    %c0_94 = arith.constant 0 : index
    %c0_95 = arith.constant 0 : index
    %206 = vector.load %arg13[%c1_93, %c0_94, %c0_95] : memref<2x1x64xf32, #tpu.memory_space<vmem>>, vector<1x1x64xf32>
    %207 = vector.shape_cast %206 : vector<1x1x64xf32> to vector<1x64xf32>
    %208 = vector.broadcast %207 : vector<1x64xf32> to vector<8x64xf32>
    %209 = arith.addf %205, %208 : vector<8x64xf32>
    %c1_96 = arith.constant 1 : index
    %c0_97 = arith.constant 0 : index
    %c0_98 = arith.constant 0 : index
    %210 = vector.load %arg14[%c1_96, %c0_97, %c0_98] : memref<2x1x64xf32, #tpu.memory_space<vmem>>, vector<1x1x64xf32>
    %211 = vector.shape_cast %210 : vector<1x1x64xf32> to vector<1x64xf32>
    %c1_99 = arith.constant 1 : index
    %c0_100 = arith.constant 0 : index
    %c0_101 = arith.constant 0 : index
    %212 = vector.load %arg15[%c1_99, %c0_100, %c0_101] : memref<2x1x64xf32, #tpu.memory_space<vmem>>, vector<1x1x64xf32>
    %213 = vector.shape_cast %212 : vector<1x1x64xf32> to vector<1x64xf32>
    %cst_102 = arith.constant dense<0.000000e+00> : vector<8xf32>
    %214 = vector.multi_reduction <add>, %209, %cst_102 [1] : vector<8x64xf32> to vector<8xf32>
    %215 = vector.shape_cast %214 : vector<8xf32> to vector<8x1xf32>
    %cst_103 = arith.constant 6.400000e+01 : f32
    %216 = vector.broadcast %cst_103 : f32 to vector<8x1xf32>
    %217 = arith.divf %215, %216 : vector<8x1xf32>
    %218 = vector.broadcast %217 : vector<8x1xf32> to vector<8x64xf32>
    %219 = arith.subf %209, %218 : vector<8x64xf32>
    %220 = arith.mulf %219, %219 : vector<8x64xf32>
    %cst_104 = arith.constant dense<0.000000e+00> : vector<8xf32>
    %221 = vector.multi_reduction <add>, %220, %cst_104 [1] : vector<8x64xf32> to vector<8xf32>
    %222 = vector.shape_cast %221 : vector<8xf32> to vector<8x1xf32>
    %cst_105 = arith.constant 6.400000e+01 : f32
    %223 = vector.broadcast %cst_105 : f32 to vector<8x1xf32>
    %224 = arith.divf %222, %223 : vector<8x1xf32>
    %225 = vector.broadcast %217 : vector<8x1xf32> to vector<8x64xf32>
    %226 = arith.subf %209, %225 : vector<8x64xf32>
    %cst_106 = arith.constant 9.99999974E-6 : f32
    %227 = vector.broadcast %cst_106 : f32 to vector<8x1xf32>
    %228 = arith.addf %224, %227 : vector<8x1xf32>
    %229 = math.rsqrt %228 : vector<8x1xf32>
    %230 = vector.broadcast %229 : vector<8x1xf32> to vector<8x64xf32>
    %231 = arith.mulf %226, %230 : vector<8x64xf32>
    %232 = vector.broadcast %211 : vector<1x64xf32> to vector<8x64xf32>
    %233 = arith.mulf %231, %232 : vector<8x64xf32>
    %234 = vector.broadcast %213 : vector<1x64xf32> to vector<8x64xf32>
    %235 = arith.addf %233, %234 : vector<8x64xf32>
    %236 = arith.truncf %235 : vector<8x64xf32> to vector<8x64xbf16>
    %c1_107 = arith.constant 1 : index
    %c0_108 = arith.constant 0 : index
    %c0_109 = arith.constant 0 : index
    %237 = vector.load %arg16[%c1_107, %c0_108, %c0_109] : memref<2x64x256xbf16, #tpu.memory_space<vmem>>, vector<1x64x256xbf16>
    %238 = vector.shape_cast %237 : vector<1x64x256xbf16> to vector<64x256xbf16>
    %cst_110 = arith.constant dense<0.000000e+00> : vector<8x256xf32>
    %239 = tpu.matmul %236, %238, %cst_110 {dimension_numbers = #tpu.dot_dimension_numbers<[1], [0], [0], [1], [0, 0, 1, 1], [], []>} : vector<8x64xbf16>, vector<64x256xbf16>, vector<8x256xf32> -> vector<8x256xf32>
    %c1_111 = arith.constant 1 : index
    %c0_112 = arith.constant 0 : index
    %c0_113 = arith.constant 0 : index
    %240 = vector.load %arg17[%c1_111, %c0_112, %c0_113] : memref<2x1x256xf32, #tpu.memory_space<vmem>>, vector<1x1x256xf32>
    %241 = vector.shape_cast %240 : vector<1x1x256xf32> to vector<1x256xf32>
    %242 = vector.broadcast %241 : vector<1x256xf32> to vector<8x256xf32>
    %243 = arith.addf %239, %242 : vector<8x256xf32>
    %cst_114 = arith.constant 5.000000e-01 : f32
    %244 = vector.broadcast %cst_114 : f32 to vector<8x256xf32>
    %245 = arith.mulf %244, %243 : vector<8x256xf32>
    %cst_115 = arith.constant 4.471500e-02 : f32
    %246 = vector.broadcast %cst_115 : f32 to vector<8x256xf32>
    %247 = arith.mulf %246, %243 : vector<8x256xf32>
    %248 = arith.mulf %247, %243 : vector<8x256xf32>
    %249 = arith.mulf %248, %243 : vector<8x256xf32>
    %250 = arith.addf %243, %249 : vector<8x256xf32>
    %cst_116 = arith.constant 0.797884583 : f32
    %251 = vector.broadcast %cst_116 : f32 to vector<8x256xf32>
    %252 = arith.mulf %251, %250 : vector<8x256xf32>
    %253 = math.tanh %252 : vector<8x256xf32>
    %cst_117 = arith.constant 1.000000e+00 : f32
    %254 = vector.broadcast %cst_117 : f32 to vector<8x256xf32>
    %255 = arith.addf %254, %253 : vector<8x256xf32>
    %256 = arith.mulf %245, %255 : vector<8x256xf32>
    %257 = arith.truncf %256 : vector<8x256xf32> to vector<8x256xbf16>
    %c1_118 = arith.constant 1 : index
    %c0_119 = arith.constant 0 : index
    %c0_120 = arith.constant 0 : index
    %258 = vector.load %arg18[%c1_118, %c0_119, %c0_120] : memref<2x256x64xbf16, #tpu.memory_space<vmem>>, vector<1x256x64xbf16>
    %259 = vector.shape_cast %258 : vector<1x256x64xbf16> to vector<256x64xbf16>
    %cst_121 = arith.constant dense<0.000000e+00> : vector<8x64xf32>
    %260 = tpu.matmul %257, %259, %cst_121 {dimension_numbers = #tpu.dot_dimension_numbers<[1], [0], [0], [1], [0, 0, 1, 1], [], []>} : vector<8x256xbf16>, vector<256x64xbf16>, vector<8x64xf32> -> vector<8x64xf32>
    %261 = arith.addf %209, %260 : vector<8x64xf32>
    %c1_122 = arith.constant 1 : index
    %c0_123 = arith.constant 0 : index
    %c0_124 = arith.constant 0 : index
    %262 = vector.load %arg19[%c1_122, %c0_123, %c0_124] : memref<2x1x64xf32, #tpu.memory_space<vmem>>, vector<1x1x64xf32>
    %263 = vector.shape_cast %262 : vector<1x1x64xf32> to vector<1x64xf32>
    %264 = vector.broadcast %263 : vector<1x64xf32> to vector<8x64xf32>
    %265 = arith.addf %261, %264 : vector<8x64xf32>
    %c0_125 = arith.constant 0 : index
    %c0_126 = arith.constant 0 : index
    %266 = vector.load %arg6[%c0_125, %c0_126] : memref<1x64xf32, #tpu.memory_space<vmem>>, vector<1x64xf32>
    %c0_127 = arith.constant 0 : index
    %c0_128 = arith.constant 0 : index
    %267 = vector.load %arg7[%c0_127, %c0_128] : memref<1x64xf32, #tpu.memory_space<vmem>>, vector<1x64xf32>
    %cst_129 = arith.constant dense<0.000000e+00> : vector<8xf32>
    %268 = vector.multi_reduction <add>, %265, %cst_129 [1] : vector<8x64xf32> to vector<8xf32>
    %269 = vector.shape_cast %268 : vector<8xf32> to vector<8x1xf32>
    %cst_130 = arith.constant 6.400000e+01 : f32
    %270 = vector.broadcast %cst_130 : f32 to vector<8x1xf32>
    %271 = arith.divf %269, %270 : vector<8x1xf32>
    %272 = vector.broadcast %271 : vector<8x1xf32> to vector<8x64xf32>
    %273 = arith.subf %265, %272 : vector<8x64xf32>
    %274 = arith.mulf %273, %273 : vector<8x64xf32>
    %cst_131 = arith.constant dense<0.000000e+00> : vector<8xf32>
    %275 = vector.multi_reduction <add>, %274, %cst_131 [1] : vector<8x64xf32> to vector<8xf32>
    %276 = vector.shape_cast %275 : vector<8xf32> to vector<8x1xf32>
    %cst_132 = arith.constant 6.400000e+01 : f32
    %277 = vector.broadcast %cst_132 : f32 to vector<8x1xf32>
    %278 = arith.divf %276, %277 : vector<8x1xf32>
    %279 = vector.broadcast %271 : vector<8x1xf32> to vector<8x64xf32>
    %280 = arith.subf %265, %279 : vector<8x64xf32>
    %cst_133 = arith.constant 9.99999974E-6 : f32
    %281 = vector.broadcast %cst_133 : f32 to vector<8x1xf32>
    %282 = arith.addf %278, %281 : vector<8x1xf32>
    %283 = math.rsqrt %282 : vector<8x1xf32>
    %284 = vector.broadcast %283 : vector<8x1xf32> to vector<8x64xf32>
    %285 = arith.mulf %280, %284 : vector<8x64xf32>
    %286 = vector.broadcast %266 : vector<1x64xf32> to vector<8x64xf32>
    %287 = arith.mulf %285, %286 : vector<8x64xf32>
    %288 = vector.broadcast %267 : vector<1x64xf32> to vector<8x64xf32>
    %289 = arith.addf %287, %288 : vector<8x64xf32>
    %290 = arith.truncf %289 : vector<8x64xf32> to vector<8x64xbf16>
    %c0_134 = arith.constant 0 : index
    %c0_135 = arith.constant 0 : index
    %291 = vector.load %arg4[%c0_134, %c0_135] : memref<128x64xbf16, #tpu.memory_space<vmem>>, vector<128x64xbf16>
    %cst_136 = arith.constant dense<0.000000e+00> : vector<8x128xf32>
    %292 = tpu.matmul %290, %291, %cst_136 {dimension_numbers = #tpu.dot_dimension_numbers<[1], [1], [0], [0], [0, 0, 1, 0], [], []>} : vector<8x64xbf16>, vector<128x64xbf16>, vector<8x128xf32> -> vector<8x128xf32>
    %c0_137 = arith.constant 0 : index
    %c0_138 = arith.constant 0 : index
    %c0_139 = arith.constant 0 : index
    %293 = vector.load %arg20[%c0_137, %c0_138, %c0_139] : memref<1x8x128xf32, #tpu.memory_space<vmem>>, vector<1x8x128xf32>
    %294 = vector.shape_cast %293 : vector<1x8x128xf32> to vector<8x128xf32>
    %295 = vector.shape_cast %292 : vector<8x128xf32> to vector<1x8x128xf32>
    tpu.vector_store %arg20[%c0_137, %c0_138, %c0_139], %295 {strides = array<i32>} : memref<1x8x128xf32, #tpu.memory_space<vmem>>, vector<1x8x128xf32>,
    %c0_140 = arith.constant 0 : index
    %c0_141 = arith.constant 0 : index
    %c0_142 = arith.constant 0 : index
    %296 = vector.load %arg2[%c0_140, %c0_141, %c0_142] : memref<1x8x1xi32, #tpu.memory_space<vmem>>, vector<1x8x1xi32>
    %297 = vector.shape_cast %296 : vector<1x8x1xi32> to vector<8x1xi32>
    %298 = vector.broadcast %297 : vector<8x1xi32> to vector<8x128xi32>
    %299 = arith.cmpi eq, %2, %298 : vector<8x128xi32>
    %300 = arith.extui %299 : vector<8x128xi1> to vector<8x128xi32>
    %301 = arith.sitofp %300 : vector<8x128xi32> to vector<8x128xf32>
    %302 = tpu.iota {dimensions = array<i32: 0>} : vector<8x1xi32>
    %c7_i32 = arith.constant 7 : i32
    %303 = vector.broadcast %c7_i32 : i32 to vector<8x1xi32>
    %304 = arith.cmpi slt, %302, %303 : vector<8x1xi32>
    %305 = arith.extui %304 : vector<8x1xi1> to vector<8x1xi32>
    %306 = arith.sitofp %305 : vector<8x1xi32> to vector<8x1xf32>
    %cst_143 = arith.constant dense<0xFF800000> : vector<8xf32>
    %307 = vector.multi_reduction <maximumf>, %292, %cst_143 [1] : vector<8x128xf32> to vector<8xf32>
    %308 = vector.shape_cast %307 : vector<8xf32> to vector<8x1xf32>
    %309 = vector.broadcast %308 : vector<8x1xf32> to vector<8x128xf32>
    %310 = arith.subf %292, %309 : vector<8x128xf32>
    %311 = math.exp %310 : vector<8x128xf32>
    %cst_144 = arith.constant dense<0.000000e+00> : vector<8xf32>
    %312 = vector.multi_reduction <add>, %311, %cst_144 [1] : vector<8x128xf32> to vector<8xf32>
    %313 = vector.shape_cast %312 : vector<8xf32> to vector<8x1xf32>
    %314 = math.log %313 : vector<8x1xf32>
    %315 = arith.addf %308, %314 : vector<8x1xf32>
    %316 = arith.mulf %292, %301 : vector<8x128xf32>
    %cst_145 = arith.constant dense<0.000000e+00> : vector<8xf32>
    %317 = vector.multi_reduction <add>, %316, %cst_145 [1] : vector<8x128xf32> to vector<8xf32>
    %318 = vector.shape_cast %317 : vector<8xf32> to vector<8x1xf32>
    %319 = arith.subf %315, %318 : vector<8x1xf32>
    %320 = arith.mulf %319, %306 : vector<8x1xf32>
    %cst_146 = arith.constant dense<0.000000e+00> : vector<1xf32>
    %321 = vector.multi_reduction <add>, %320, %cst_146 [0] : vector<8x1xf32> to vector<1xf32>
    %322 = vector.shape_cast %321 : vector<1xf32> to vector<1x1xf32>
    %323 = vector.shape_cast %322 : vector<1x1xf32> to vector<1x1x1xf32>
    %c0_147 = arith.constant 0 : index
    %c0_148 = arith.constant 0 : index
    %c0_149 = arith.constant 0 : index
    %324 = vector.load %arg21[%c0_147, %c0_148, %c0_149] : memref<1x1x1xf32, #tpu.memory_space<vmem>>, vector<1x1x1xf32>
    tpu.vector_store %arg21[%c0_147, %c0_148, %c0_149], %323 {strides = array<i32>} : memref<1x1x1xf32, #tpu.memory_space<vmem>>, vector<1x1x1xf32>,
    return
  }
  func.func @transform_0(%arg0: i32) -> (i32, i32, i32) {
    %c0_i32 = arith.constant 0 : i32
    %c0_i32_0 = arith.constant 0 : i32
    %c0_i32_1 = arith.constant 0 : i32
    return %arg0, %c0_i32, %c0_i32_0 : i32, i32, i32
  }
  func.func @transform_1(%arg0: i32) -> (i32, i32, i32) {
    %c0_i32 = arith.constant 0 : i32
    %c0_i32_0 = arith.constant 0 : i32
    %c0_i32_1 = arith.constant 0 : i32
    return %arg0, %c0_i32, %c0_i32_0 : i32, i32, i32
  }
  func.func @transform_2(%arg0: i32) -> (i32, i32) {
    %c0_i32 = arith.constant 0 : i32
    %c0_i32_0 = arith.constant 0 : i32
    %c0_i32_1 = arith.constant 0 : i32
    return %c0_i32, %c0_i32_0 : i32, i32
  }
  func.func @transform_3(%arg0: i32) -> (i32, i32) {
    %c0_i32 = arith.constant 0 : i32
    %c0_i32_0 = arith.constant 0 : i32
    %c0_i32_1 = arith.constant 0 : i32
    return %c0_i32, %c0_i32_0 : i32, i32
  }
  func.func @transform_4(%arg0: i32) -> (i32, i32) {
    %c0_i32 = arith.constant 0 : i32
    %c0_i32_0 = arith.constant 0 : i32
    %c0_i32_1 = arith.constant 0 : i32
    return %c0_i32, %c0_i32_0 : i32, i32
  }
  func.func @transform_5(%arg0: i32) -> (i32, i32) {
    %c0_i32 = arith.constant 0 : i32
    %c0_i32_0 = arith.constant 0 : i32
    %c0_i32_1 = arith.constant 0 : i32
    return %c0_i32, %c0_i32_0 : i32, i32
  }
  func.func @transform_6(%arg0: i32) -> (i32, i32) {
    %c0_i32 = arith.constant 0 : i32
    %c0_i32_0 = arith.constant 0 : i32
    %c0_i32_1 = arith.constant 0 : i32
    return %c0_i32, %c0_i32_0 : i32, i32
  }
  func.func @transform_7(%arg0: i32) -> (i32, i32, i32) {
    %c0_i32 = arith.constant 0 : i32
    %c0_i32_0 = arith.constant 0 : i32
    %c0_i32_1 = arith.constant 0 : i32
    %c0_i32_2 = arith.constant 0 : i32
    return %c0_i32, %c0_i32_0, %c0_i32_1 : i32, i32, i32
  }
  func.func @transform_8(%arg0: i32) -> (i32, i32, i32) {
    %c0_i32 = arith.constant 0 : i32
    %c0_i32_0 = arith.constant 0 : i32
    %c0_i32_1 = arith.constant 0 : i32
    %c0_i32_2 = arith.constant 0 : i32
    return %c0_i32, %c0_i32_0, %c0_i32_1 : i32, i32, i32
  }
  func.func @transform_9(%arg0: i32) -> (i32, i32, i32) {
    %c0_i32 = arith.constant 0 : i32
    %c0_i32_0 = arith.constant 0 : i32
    %c0_i32_1 = arith.constant 0 : i32
    %c0_i32_2 = arith.constant 0 : i32
    return %c0_i32, %c0_i32_0, %c0_i32_1 : i32, i32, i32
  }
  func.func @transform_10(%arg0: i32) -> (i32, i32, i32) {
    %c0_i32 = arith.constant 0 : i32
    %c0_i32_0 = arith.constant 0 : i32
    %c0_i32_1 = arith.constant 0 : i32
    %c0_i32_2 = arith.constant 0 : i32
    return %c0_i32, %c0_i32_0, %c0_i32_1 : i32, i32, i32
  }
  func.func @transform_11(%arg0: i32) -> (i32, i32, i32) {
    %c0_i32 = arith.constant 0 : i32
    %c0_i32_0 = arith.constant 0 : i32
    %c0_i32_1 = arith.constant 0 : i32
    %c0_i32_2 = arith.constant 0 : i32
    return %c0_i32, %c0_i32_0, %c0_i32_1 : i32, i32, i32
  }
  func.func @transform_12(%arg0: i32) -> (i32, i32, i32) {
    %c0_i32 = arith.constant 0 : i32
    %c0_i32_0 = arith.constant 0 : i32
    %c0_i32_1 = arith.constant 0 : i32
    %c0_i32_2 = arith.constant 0 : i32
    return %c0_i32, %c0_i32_0, %c0_i32_1 : i32, i32, i32
  }
  func.func @transform_13(%arg0: i32) -> (i32, i32, i32) {
    %c0_i32 = arith.constant 0 : i32
    %c0_i32_0 = arith.constant 0 : i32
    %c0_i32_1 = arith.constant 0 : i32
    %c0_i32_2 = arith.constant 0 : i32
    return %c0_i32, %c0_i32_0, %c0_i32_1 : i32, i32, i32
  }
  func.func @transform_14(%arg0: i32) -> (i32, i32, i32) {
    %c0_i32 = arith.constant 0 : i32
    %c0_i32_0 = arith.constant 0 : i32
    %c0_i32_1 = arith.constant 0 : i32
    %c0_i32_2 = arith.constant 0 : i32
    return %c0_i32, %c0_i32_0, %c0_i32_1 : i32, i32, i32
  }
  func.func @transform_15(%arg0: i32) -> (i32, i32, i32) {
    %c0_i32 = arith.constant 0 : i32
    %c0_i32_0 = arith.constant 0 : i32
    %c0_i32_1 = arith.constant 0 : i32
    %c0_i32_2 = arith.constant 0 : i32
    return %c0_i32, %c0_i32_0, %c0_i32_1 : i32, i32, i32
  }
  func.func @transform_16(%arg0: i32) -> (i32, i32, i32) {
    %c0_i32 = arith.constant 0 : i32
    %c0_i32_0 = arith.constant 0 : i32
    %c0_i32_1 = arith.constant 0 : i32
    %c0_i32_2 = arith.constant 0 : i32
    return %c0_i32, %c0_i32_0, %c0_i32_1 : i32, i32, i32
  }
  func.func @transform_17(%arg0: i32) -> (i32, i32, i32) {
    %c0_i32 = arith.constant 0 : i32
    %c0_i32_0 = arith.constant 0 : i32
    %c0_i32_1 = arith.constant 0 : i32
    %c0_i32_2 = arith.constant 0 : i32
    return %c0_i32, %c0_i32_0, %c0_i32_1 : i32, i32, i32
  }
  func.func @transform_18(%arg0: i32) -> (i32, i32, i32) {
    %c0_i32 = arith.constant 0 : i32
    %c0_i32_0 = arith.constant 0 : i32
    %c0_i32_1 = arith.constant 0 : i32
    %c0_i32_2 = arith.constant 0 : i32
    return %c0_i32, %c0_i32_0, %c0_i32_1 : i32, i32, i32
  }
  func.func @transform_19(%arg0: i32) -> (i32, i32, i32) {
    %c0_i32 = arith.constant 0 : i32
    %c0_i32_0 = arith.constant 0 : i32
    %c0_i32_1 = arith.constant 0 : i32
    return %arg0, %c0_i32, %c0_i32_0 : i32, i32, i32
  }
  func.func @transform_20(%arg0: i32) -> (i32, i32, i32) {
    %c0_i32 = arith.constant 0 : i32
    %c0_i32_0 = arith.constant 0 : i32
    %c0_i32_1 = arith.constant 0 : i32
    return %arg0, %c0_i32, %c0_i32_0 : i32, i32, i32
  }
}

</mosaic_0001>

<bundles_post_ra>
// kernel: gpt2_forward.1
= control target key start
LH: loop header
LB: loop body
LE: loop exit
PB: predicated region body
PF: predicated region fallthrough
CT: control target
= control target key end

     0   :  { %s8846_s0 = inlined_call_operand.vmem [shape: s32[2,8,1], index: 0, kind: input, shape index: {}]   ;;  %s8847_s1 = inlined_call_operand.vmem [shape: s32[2,8,1], index: 1, kind: input, shape index: {}]   ;;  %s8848_s2 = inlined_call_operand.vmem [shape: f32[8,8], index: 2, kind: input, shape index: {}]   ;;  %s8849_s3 = inlined_call_operand.vmem [shape: bf16[128,64], index: 3, kind: input, shape index: {}]   ;;  %s8850_s4 = inlined_call_operand.vmem [shape: f32[8,64], index: 4, kind: input, shape index: {}]   ;;  %s8851_s5 = inlined_call_operand.vmem [shape: f32[1,64], index: 5, kind: input, shape index: {}]   ;;  %s8852_s6 = inlined_call_operand.vmem [shape: f32[1,64], index: 6, kind: input, shape index: {}]   ;;  %s8853_s7 = inlined_call_operand.vmem [shape: f32[2,1,64], index: 7, kind: input, shape index: {}]   ;;  %s8854_s8 = inlined_call_operand.vmem [shape: f32[2,1,64], index: 8, kind: input, shape index: {}]   ;;  %s8855_s9 = inlined_call_operand.vmem [shape: bf16[2,64,192], index: 9, kind: input, shape index: {}]   ;;  %s8856_s10 = inlined_call_operand.vmem [shape: f32[2,1,192], index: 10, kind: input, shape index: {}]   ;;  %s8857_s11 = inlined_call_operand.vmem [shape: bf16[2,64,64], index: 11, kind: input, shape index: {}]   ;;  %s8858_s12 = inlined_call_operand.vmem [shape: f32[2,1,64], index: 12, kind: input, shape index: {}]   ;;  %s8859_s13 = inlined_call_operand.vmem [shape: f32[2,1,64], index: 13, kind: input, shape index: {}]   ;;  %s8860_s14 = inlined_call_operand.vmem [shape: f32[2,1,64], index: 14, kind: input, shape index: {}]   ;;  %s8861_s15 = inlined_call_operand.vmem [shape: bf16[2,64,256], index: 15, kind: input, shape index: {}]   ;;  %s8862_s16 = inlined_call_operand.vmem [shape: f32[2,1,256], index: 16, kind: input, shape index: {}]   ;;  %s8863_s17 = inlined_call_operand.vmem [shape: bf16[2,256,64], index: 17, kind: input, shape index: {}]   ;;  %s8864_s18 = inlined_call_operand.vmem [shape: f32[2,1,64], index: 18, kind: input, shape index: {}]   ;;  %s8865_s19 = inlined_call_operand.hbm [shape: f32[2,8,128], index: 19, kind: output, shape index: {0}]   ;;  %s8866_s20 = inlined_call_operand.vmem [shape: f32[2,1,1], index: 20, kind: output, shape index: {1}]  }
   0x1   :  { %8888 = sst [smem:[#allocation11_spill]] %s8846_s0 }
   0x2   :  { %8889 = sst [smem:[#allocation12_spill]] %s8847_s1 }
   0x3   :  { %8890 = sst [smem:[#allocation13_spill]] %s8848_s2 }
   0x4   :  { %8891 = sst [smem:[#allocation14_spill]] %s8849_s3 }
   0x5   :  { %8892 = sst [smem:[#allocation15_spill]] %s8850_s4 }
   0x6   :  { %8893 = sst [smem:[#allocation16_spill]] %s8851_s5 }
   0x7   :  { %8894 = sst [smem:[#allocation17_spill]] %s8866_s20 }
   0x8   :  { %26 = vsyncpa [#allocation3], 0 }
   0x9   :  { %28 = vsyncpa [#allocation3 + $0x1], 0  ;;  %s7758_s1 = smov 0   ;;  %s7760_s22 = smov 0  }
   0xa   :  { %s7762_s23 = smov 0   ;;  %s7764_s24 = smov 0  }
   0xb LB: > { %8895 = sst [smem:[#allocation5_spill]] %s7625_s1  ;;  %s7779_s2 = sadd.s32 4294967295, %s7637_s24   ;;  %s7637_s24 = sphi %s7764_s24, %s8922_s24   ;;  %s7633_s23 = sphi %s7762_s23, %s8924_s23   ;;  %s7629_s22 = sphi %s7760_s22, %s8926_s22   ;;  %s7625_s1 = sphi %s7758_s1, %s8925_s1  }
   0xc   : > { %8896 = sst [smem:[#allocation6_spill]] %s7633_s23  ;;  %s6883_s25 = sadd.s32 4294967294, %s7637_s24  }
   0xd   : > { %8897 = sst [smem:[#allocation7_spill]] %s7637_s24  ;;  %s7783_s3 = sadd.s32 1, %s7637_s24  }
   0xe   : > { %8898 = sst [smem:[#allocation8_spill]] %s7783_s3  ;;  %s450_s26 = sadd.s32 1, %s7633_s23 }
   0xf   : > { %s447_s27 = ssub.s32 %s7637_s24, %s7783_s3  ;;  %p460_p0 = scmp.ne.s32.totalorder %s7633_s23, %s7629_s22 }
  0x10   : > { %p448_p1 = scmp.eq.s32.totalorder %s447_s27, 0  ;;  %p461_p2 = scmp.eq.s32.totalorder %s7779_s2, 1 }
  0x11   : > { %p466_p3 = scmp.ne.s32.totalorder %s7629_s22, %s7625_s1  ;;  %p467_p4 = scmp.eq.s32.totalorder %s6883_s25, 1 }
  0x12   : > { %s7794_s28 = scalar_select %p448_p1, %s7633_s23, %s450_s26  }
  0x13   : > { %p7796_p5 = por %p461_p2, %p460_p0  ;;  %p7800_p6 = por %p467_p4, %p466_p3 }
  0x14   : > { %8899 = sst [smem:[#allocation9_spill]] %s7794_s28  ;;  %p6886_p7 = scmp.ge.s32.totalorder %s7637_s24, 1 }
  0x15   : > { %s8901_s29 = scalar_select %p7800_p6, 1, 0 }
  0x16   : > { %p576_p8 = scmp.lt.s32.totalorder %s7637_s24, 3 }
  0x17   : > { %8902 = sst [smem:[#allocation10_spill]] %s8901_s29 }
  0x18   : > { %p577_p9 = pnand %p6886_p7, %p576_p8 }
  0x19   : > { %p640_p10 = scmp.lt.s32.totalorder (!%p577_p9), %s7779_s2, 1  ;;  %s8903_s21 = sld [smem:[#allocation14_spill]] (!%p577_p9) }
  0x1a   : > { %580 = sbr.rel (%p577_p9) target bundleno = 7187 (0x1c13), region = 96  ;;  %s8904_s23 = sld [smem:[#allocation11_spill]] (!%p577_p9) }
  0x1b   : > { %s8883_s0 = smov (!%p577_p9), 112   ;;  %s8885_s26 = smov (!%p577_p9), 96  }
  0x1c   : > { %s8881_s27 = smov (!%p577_p9), 80   ;;  %s8906_s1 = sld [smem:[#allocation13_spill]] (!%p577_p9) }
  0x1d   : > { %s8876_s28 = smov (!%p577_p9), 48   ;;  %s8910_s29 = smov (!%p577_p9), 80  }
  0x1e   : > { %s8911_s24 = smov (!%p577_p9), 64   ;;  %s8916_s20 = sld [smem:[#allocation12_spill]] (!%p577_p9) }
  0x1f   : > { %v7418_v0 = vld [vmem:[%s8903_s21 + $0x38] sm:$0xff]   ;;  %v7639_v1 = vmov 0   ;;  %v7640_v2 = vmov 0.0   ;;  %s7813_s25 = scalar_select %p640_p10, %s7779_s2, 1  ;;  %v7419_v3 = vld [vmem:[%s8903_s21 + $0x30] sm:$0xff]   ;;  %v7420_v5 = vld [vmem:[%s8903_s21 + $0x28] sm:$0xff]   ;;  %v653_v11 = vlaneseq }
  0x20   : > { %7416 = vset.pattern.permute.xlu0 %v7639_v1  ;;  %7204 = vmatprep.subr.bf16.mxu0 %v7640_v2  ;;  %vm7641_vm0 = vmmov 0   ;;  %v7421_v6 = vld [vmem:[%s8903_s21 + $0x20] sm:$0xff]   ;;  %v7422_v7 = vld [vmem:[%s8903_s21 + $0x18] sm:$0xff]   ;;  %v7423_v8 = vld [vmem:[%s8903_s21 + $0x10] sm:$0xff]   ;;  %v7642_v14 = vmov 1.0|1.0  }
  0x21   : > { %7205 = vmatpush3.bf16.msra.mxu0 %v7418_v0  ;;  %7224 = vmatprep.subr.bf16.mxu1 %v7640_v2  ;;  %s8874_s30 = sshll.u32 %s7813_s25, 3  ;;  %v7424_v9 = vld [vmem:[%s8903_s21 + $0x8] sm:$0xff]   ;;  %v7425_v10 = vld [vmem:[%s8903_s21] sm:$0xff]   ;;  %v7854_v12 = vand.u32 127, %v653_v11  ;;  %vm770_vm3 = vcmask 523264   ;;  %v7901_v45 = vshrl.u32 %v653_v11, 7 }
  0x22   : > { %7206 = vmatprep.subr.bf16.mxu0 %v7640_v2  ;;  %s643_s3 = scalar_lea.vmem %s8904_s23, %s8874_s30  ;;  %7220 = vmatprep.mubr.msk.bf16.mxu0 %vm7641_vm0, %v7640_v2  ;;  %v7426_v27 = vld [vmem:[%s8855_s9 + $0x30] ss:$8 sps:$4 sm:$0xff]   ;;  %v7428_v28 = vld [vmem:[%s8855_s9 + $0x34] ss:$8 sps:$4 sm:$0xff]   ;;  %v7431_v29 = vld [vmem:[%s8855_s9 + $0x24] ss:$8 sps:$4 sm:$0xff]  }
  0x23   : > { %v652_v4 = vld [vmem:[%s643_s3] sm:$0xff]  ;;  %7226 = vmatprep.mubr.msk.bf16.mxu1 %vm7641_vm0, %v7640_v2  ;;  %s8905_s3 = sld [smem:[#allocation15_spill]]  ;;  %v7434_v31 = vld [vmem:[%s8855_s9 + $0x14] ss:$8 sps:$4 sm:$0xff]   ;;  %v7432_v32 = vld [vmem:[%s8855_s9 + $0x10] ss:$8 sps:$4 sm:$0xff]  }
  0x24   : > { %656 = vperm.xlu0 %7416, %v652_v4   ;;  %v7429_v30 = vld [vmem:[%s8855_s9 + $0x20] ss:$8 sps:$4 sm:$0xff]   ;;  %v7437_v33 = vld [vmem:[%s8855_s9 + $0x4] ss:$8 sps:$4 sm:$0xff]   ;;  %v7904_v46 = vsub.s32 0, %v7901_v45  ;;  %s8879_s23 = smov 64  }
  0x25   : > { %7207 = vmatpush3.bf16.msra.mxu0 %v7419_v3  ;;  %v7435_v34 = vld [vmem:[%s8855_s9] ss:$8 sps:$4 sm:$0xff]   ;;  %v7647_v58 = vmov 1983009808   ;;  %v7648_v63 = vmov 1934713408  }
  0x26   : > { %7208 = vmatprep.subr.bf16.mxu0 %v7640_v2  ;;  %v6901_v39 = vld [vmem:[%s8853_s7] ss:$0 sm:$0xff]  ;;  %v917_v59 = vunpack.c.l.s4 %v7647_v58  ;;  %v949_v0 = vunpack.c.l.s4 %v7648_v63  ;;  %vm1886_vm4 = vcmask 130048   ;;  %vm2067_vm5 = vcmask 64512   ;;  %s8878_s30 = smov 32   ;;  %s8917_s5 = sld [smem:[#allocation16_spill]] }
  0x27   : > { %v6902_v41 = vld [vmem:[%s8854_s8] ss:$0 sm:$0xff]  ;;  %vm3253_vm6 = vcmask 261120   ;;  %vm3255_vm7 = vcmask 392192  }
  0x28   : > { %v7909_v47 = vld [vmem:[%s8856_s10] sm:$0x3]  ;;  %v918_v62 = vunpack.c.0.s8 %v917_v59 }
  0x29   : > { %7209 = vmatpush3.bf16.msra.mxu0 %v7420_v5  ;;  %v678_v15 = vld [vmem:[%s8905_s3] sm:$0xff]  ;;  %v813_v48 = vrot.slane %v7909_v47, %v7904_v46  ;;  %s8907_s3 = smov %s8906_s1 }
  0x2a   : > { %7210 = vmatprep.subr.bf16.mxu0 %v7640_v2 }
  0x2d   : > { %7211 = vmatpush3.bf16.msra.mxu0 %v7421_v6  ;;  %v7938_v6 = vsub.s32 %v918_v62, %v7901_v45 }
  0x2e   : > { %7212 = vmatprep.subr.bf16.mxu0 %v7640_v2 }
  0x31   : > { %7213 = vmatpush3.bf16.msra.mxu0 %v7422_v7  ;;  %v950_v7 = vunpack.c.0.s8 %v949_v0 }
  0x32   : > { %7214 = vmatprep.subr.bf16.mxu0 %v7640_v2 }
  0x35   : > { %7215 = vmatpush3.bf16.msra.mxu0 %v7423_v8 }
  0x36   : > { %7216 = vmatprep.subr.bf16.mxu0 %v7640_v2 }
  0x39   : > { %7217 = vmatpush3.bf16.msra.mxu0 %v7424_v9 }
  0x3a   : > { %7218 = vmatprep.subr.bf16.mxu0 %v7640_v2 }
  0x3d   : > { %7219 = vmatpush3.bf16.msra.mxu0 %v7425_v10 }
  0x3e   : > { %871 = vmatprep.subr.bf16.mxu0 %v7428_v28 }
  0x9f   : > { %v657_v13 = vpop.permute.xlu0 %656 }
  0xa0   : > { %vm658_vm1 = vcmp.eq.s32.totalorder %v7854_v12, %v657_v13 }
  0xa1   : > { %vm6899_vm2 = vmpackc.low %vm658_vm1, %vm658_vm1 }
  0xa2   : > { %7221 = vmatmul.mubr.msk.bf16.vlgmr.msra.gmra.mxu0 %vm6899_vm2, %v7642_v14 }
  0xa3   : > { %895 = vmatprep.mubr.bf16.mxu0 %v7639_v1  ;;  %872 = vmatpush1.bf16.msra.mxu0 %v7426_v27 }
  0xa4   : > { %873 = vmatprep.subr.bf16.mxu0 %v7431_v29 }
  0xa7   : > { %874 = vmatpush1.bf16.msra.mxu0 %v7429_v30 }
  0xa8   : > { %875 = vmatprep.subr.bf16.mxu0 %v7434_v31 }
  0xab   : > { %876 = vmatpush1.bf16.msra.mxu0 %v7432_v32 }
  0xac   : > { %877 = vmatprep.subr.bf16.mxu0 %v7437_v33 }
  0xaf   : > { %878 = vmatpush1.bf16.msra.mxu0 %v7435_v34 }
  0xb0   : > { %7236 = vmatprep.subr.bf16.mxu0 %v7640_v2 }
 0x162   : > { %v761_v16 = vpop.f32.mrf.mxu0 }
 0x163   : > { %v7861_v17 = vadd.f32 %v761_v16, %v678_v15  ;;  %v7945_v15 = vsub.s32 %v950_v7, %v7901_v45 }
 0x164   : > { %v7222_v18 = vpop.f32.mrf.mxu0 }
 0x165   : > { %v771_v19 = vsel %vm770_vm3, %v7861_v17, 0.0 }
 0x166   : > { %772 = vadd.xlane.f32.xlu0 %v771_v19  ;;  %v764_v20 = vpop.f32.mrf.mxu0 }
 0x168   : > { %v7223_v21 = vpop.f32.mrf.mxu0 }
 0x1ef   : > { %v773_v22 = vpop.xlane.xlu0 %772 }
 0x1f0   : > { %v775_v23 = vmul.f32 0.015625, %v773_v22 }
 0x1f2   : > { %v776_v24 = vsub.f32 %v7861_v17, %v775_v23 }
 0x1f4   : > { %v777_v25 = vmul.f32 %v776_v24, %v776_v24 }
 0x1f6   : > { %v778_v26 = vsel %vm770_vm3, %v777_v25, 0.0 }
 0x1f7   : > { %779 = vadd.xlane.f32.xlu1 %v778_v26 }
 0x280   : > { %v780_v35 = vpop.xlane.xlu1 %779 }
 0x281   : > { %v781_v36 = vmul.f32 0.015625, %v780_v35 }
 0x283   : > { %v782_v37 = vadd.f32 1e-05, %v781_v36 }
 0x285   : > { %7522 = vrsqrt.f32 %v782_v37 }
 0x292   : > { %v7523_v38 = vpop.eup %7522 }
 0x293   : > { %v784_v40 = vmul.f32 %v7523_v38, %v776_v24 }
 0x295   : > { %v791_v42 = vmul.f32 %v6901_v39, %v784_v40 }
 0x297   : > { %v798_v43 = vadd.f32 %v6902_v41, %v791_v42 }
 0x299   : > { %v799_v44 = vpack.c.bf16 %v798_v43, %v798_v43 }
 0x29b   : > { %6911 = vmatmul.mubr.msk.bf16.vlgmr.msra.gmra.mxu0 %vm770_vm3, %v799_v44 }
 0x29c   : > { %7238 = vmatprep.mubr.msk.bf16.mxu0 %vm7641_vm0, %v7640_v2 }
 0x35b   : > { %v897_v49 = vpop.f32.mrf.mxu0 }
 0x35c   : > { %v7913_v50 = vadd.f32 %v897_v49, %v813_v48 }
 0x35d   : > { %v7915_v51 = vpop.f32.mrf.mxu0 }
 0x35e   : > { %905 = vrot.lane.b32.xlu1 %v7913_v50, %s8883_s0 }
 0x35f   : > { %v901_v52 = vpop.f32.mrf.mxu0 }
 0x361   : > { %v902_v53 = vpop.f32.mrf.mxu0 }
 0x362   : > { %908 = vrot.lane.b32.xlu1 %v7913_v50, %s8885_s26 }
 0x366   : > { %911 = vrot.lane.b32.xlu1 %v7913_v50, %s8881_s27 }
 0x36a   : > { %982 = vrot.lane.b32.xlu1 %v7913_v50, %s8879_s23 }
 0x3d0   : > { %v7925_v54 = vpop.permute.xlu1 %905 }
 0x3d1   : > { %984 = vrot.lane.b32.xlu1 %v7925_v54, %s8879_s23 }
 0x3d4   : > { %v7929_v55 = vpop.permute.xlu1 %908 }
 0x3d5   : > { %986 = vrot.lane.b32.xlu0 %v7929_v55, %s8879_s23 }
 0x3d8   : > { %v7933_v56 = vpop.permute.xlu1 %911 }
 0x3d9   : > { %988 = vrot.lane.b32.xlu1 %v7933_v56, %s8879_s23  ;;  %s8914_s23 = smov 48  }
 0x3dc   : > { %v983_v57 = vpop.permute.xlu1 %982 }
 0x443   : > { %v985_v60 = vpop.permute.xlu1 %984 }
 0x447   : > { %v987_v61 = vpop.permute.xlu0 %986 }
 0x448   : > { %v994_v3 = vcombine.low %v983_v57, %v987_v61  ;;  %v995_v4 = vcombine.high %v983_v57, %v987_v61 }
 0x44a   : > { %v1002_v10 = vrot.slane %v994_v3, %v7938_v6  ;;  %v1009_v11 = vrot.slane %v995_v4, %v7938_v6 }
 0x44b   : > { %v989_v5 = vpop.permute.xlu1 %988 }
 0x44c   : > { %v1010_v8 = vcombine.low %v985_v60, %v989_v5  ;;  %v1011_v9 = vcombine.high %v985_v60, %v989_v5 }
 0x44e   : > { %v1018_v13 = vrot.slane %v1010_v8, %v7938_v6  ;;  %v1025_v14 = vrot.slane %v1011_v9, %v7938_v6 }
 0x450   : > { %v1042_v16 = vcombine.low %v1009_v11, %v1025_v14  ;;  %v1026_v18 = vcombine.low %v1002_v10, %v1018_v13  ;;  %v1027_v19 = vcombine.high %v1002_v10, %v1018_v13  ;;  %v1043_v20 = vcombine.high %v1009_v11, %v1025_v14 }
 0x452   : > { %v1034_v21 = vrot.slane %v1026_v18, %v7945_v15  ;;  %v1050_v22 = vrot.slane %v1042_v16, %v7945_v15  ;;  %v1041_v25 = vrot.slane %v1027_v19, %v7945_v15  ;;  %v1057_v28 = vrot.slane %v1043_v20, %v7945_v15 }
 0x454   : > { %v1148_v23 = vpack.c.bf16 %v1034_v21, %v1034_v21  ;;  %v1058_v24 = vcombine.high %v1034_v21, %v7640_v2  ;;  %v1060_v27 = vcombine.high %v1050_v22, %v7640_v2  ;;  %v1150_v29 = vpack.c.bf16 %v1041_v25, %v1041_v25 }
 0x455   : > { %v1061_v31 = vcombine.high %v1057_v28, %v7640_v2  ;;  %v1152_v32 = vpack.c.bf16 %v1050_v22, %v1050_v22  ;;  %v1059_v33 = vcombine.high %v1041_v25, %v7640_v2  ;;  %v1154_v36 = vpack.c.bf16 %v1057_v28, %v1057_v28 }
 0x456   : > { %1218 = vxpose.xlu1.c.b16.start.end [1/1] (short) (narrow) %v1148_v23, 16  ;;  %v1149_v26 = vpack.c.bf16 %v1058_v24, %v1058_v24  ;;  %v1153_v30 = vpack.c.bf16 %v1060_v27, %v1060_v27 }
 0x457   : > { %v1155_v34 = vpack.c.bf16 %v1061_v31, %v1061_v31  ;;  %v1151_v35 = vpack.c.bf16 %v1059_v33, %v1059_v33 }
 0x458   : > { %1234 = vxpose.xlu0.c.b16.start.end [1/1] (short) (narrow) %v1149_v26, 16 }
 0x45a   : > { %1250 = vxpose.xlu1.c.b16.start.end [1/1] (short) (narrow) %v1150_v29, 16 }
 0x45c   : > { %1298 = vxpose.xlu0.c.b16.start.end [1/1] (short) (narrow) %v1153_v30, 16 }
 0x45e   : > { %1282 = vxpose.xlu1.c.b16.start.end [1/1] (short) (narrow) %v1152_v32, 16 }
 0x460   : > { %1330 = vxpose.xlu0.c.b16.start.end [1/1] (short) (narrow) %v1155_v34, 16 }
 0x462   : > { %1266 = vxpose.xlu1.c.b16.start.end [1/1] (short) (narrow) %v1151_v35, 16 }
 0x466   : > { %1314 = vxpose.xlu1.c.b16.start.end [1/1] (short) (narrow) %v1154_v36, 16 }
 0x4b8   : > { %v1226_v37 = vpop.trf.xlu1 }
 0x4b9   : > { %v1350_v53 = vshrl.u32 %v1226_v37, 16 }
 0x4ba   : > { %v1242_v38 = vpop.trf.xlu0 }
 0x4bb   : > { %v1351_v44 = vshrl.u32 %v1242_v38, 16  ;;  %v1348_v57 = vpack.i.b16 %v1242_v38, %v1226_v37 }
 0x4bc   : > { %v1258_v39 = vpop.trf.xlu1 }
 0x4bd   : > { %v1352_v61 = vpack.i.b16 %v1351_v44, %v1350_v53  ;;  %v1358_v62 = vshrl.u32 %v1258_v39, 16 }
 0x4be   : > { %v1306_v41 = vpop.trf.xlu0 }
 0x4bf   : > { %v1367_v43 = vshrl.u32 %v1306_v41, 16 }
 0x4c0   : > { %v1290_v40 = vpop.trf.xlu1 }
 0x4c1   : > { %v1366_v42 = vshrl.u32 %v1290_v40, 16  ;;  %v1364_v52 = vpack.i.b16 %v1306_v41, %v1290_v40 }
 0x4c2   : > { %v1338_v49 = vpop.trf.xlu0 }
 0x4c3   : > { %v1368_v58 = vpack.i.b16 %v1367_v43, %v1366_v42  ;;  %v1375_v60 = vshrl.u32 %v1338_v49, 16  ;;  %v1378_v0 = vcombine.low %v1348_v57, %v1364_v52  ;;  %v1379_v18 = vcombine.high %v1348_v57, %v1364_v52 }
 0x4c4   : > { %v1274_v48 = vpop.trf.xlu1  ;;  %v7976_v52 = vsub.s32 1, %v7901_v45 }
 0x4c5   : > { %v1359_v59 = vshrl.u32 %v1274_v48, 16  ;;  %v1356_v3 = vpack.i.b16 %v1274_v48, %v1258_v39  ;;  %v1446_v7 = vcombine.low %v1352_v61, %v1368_v58  ;;  %v1386_v14 = vrot.slane %v1378_v0, %v7938_v6 }
 0x4c6   : > { %v1447_v23 = vcombine.high %v1352_v61, %v1368_v58  ;;  %v1393_v30 = vrot.slane %v1379_v18, %v7938_v6  ;;  %v817_v58 = vrot.slane %v7909_v47, %v7976_v52  ;;  %v931_v0 = vcombine.high %v7925_v54, %v7933_v56 }
 0x4c7   : > { %v1360_v8 = vpack.i.b16 %v1359_v59, %v1358_v62  ;;  %v1454_v21 = vrot.slane %v1446_v7, %v7938_v6 }
 0x4c8   : > { %v1322_v63 = vpop.trf.xlu1  ;;  %v1461_v34 = vrot.slane %v1447_v23, %v7938_v6  ;;  %v7985_v61 = vadd.f32 %v7915_v51, %v817_v58 }
 0x4c9   : > { %v1374_v4 = vshrl.u32 %v1322_v63, 16  ;;  %v1372_v5 = vpack.i.b16 %v1338_v49, %v1322_v63  ;;  %v930_v63 = vcombine.low %v7925_v54, %v7933_v56 }
 0x4cb   : > { %v1376_v9 = vpack.i.b16 %v1375_v60, %v1374_v4  ;;  %v1394_v10 = vcombine.low %v1356_v3, %v1372_v5  ;;  %v1395_v11 = vcombine.high %v1356_v3, %v1372_v5  ;;  %v914_v3 = vcombine.low %v7913_v50, %v7929_v55 }
 0x4cc   : > { %v915_v4 = vcombine.high %v7913_v50, %v7929_v55  ;;  %v938_v7 = vrot.slane %v930_v63, %v7938_v6 }
 0x4cd   : > { %v1462_v13 = vcombine.low %v1360_v8, %v1376_v9  ;;  %v1402_v16 = vrot.slane %v1394_v10, %v7938_v6  ;;  %v1463_v19 = vcombine.high %v1360_v8, %v1376_v9  ;;  %v1409_v27 = vrot.slane %v1395_v11, %v7938_v6 }
 0x4ce   : > { %v945_v8 = vrot.slane %v931_v0, %v7938_v6  ;;  %v922_v10 = vrot.slane %v914_v3, %v7938_v6  ;;  %v929_v11 = vrot.slane %v915_v4, %v7938_v6 }
 0x4cf   : > { %v1410_v20 = vcombine.low %v1386_v14, %v1402_v16  ;;  %v1470_v22 = vrot.slane %v1462_v13, %v7938_v6  ;;  %v1411_v26 = vcombine.high %v1386_v14, %v1402_v16  ;;  %v1477_v31 = vrot.slane %v1463_v19, %v7938_v6 }
 0x4d0   : > { %v1426_v33 = vcombine.low %v1393_v30, %v1409_v27  ;;  %v1427_v38 = vcombine.high %v1393_v30, %v1409_v27  ;;  %v946_v14 = vcombine.low %v922_v10, %v938_v7  ;;  %v947_v54 = vcombine.high %v922_v10, %v938_v7 }
 0x4d1   : > { %v1418_v24 = vrot.slane %v1410_v20, %v7945_v15  ;;  %v1478_v25 = vcombine.low %v1454_v21, %v1470_v22  ;;  %v1479_v29 = vcombine.high %v1454_v21, %v1470_v22  ;;  %v1425_v32 = vrot.slane %v1411_v26, %v7945_v15 }
 0x4d2   : > { %v1494_v36 = vcombine.low %v1461_v34, %v1477_v31  ;;  %v1434_v37 = vrot.slane %v1426_v33, %v7945_v15  ;;  %v1495_v40 = vcombine.high %v1461_v34, %v1477_v31  ;;  %v1441_v41 = vrot.slane %v1427_v38, %v7945_v15 }
 0x4d3   : > { %1514 = vxpose.xlu1.c.b16.start.end [1/1] (short) (narrow) %v1418_v24, 16  ;;  %v1486_v28 = vrot.slane %v1478_v25, %v7945_v15  ;;  %v1493_v35 = vrot.slane %v1479_v29, %v7945_v15  ;;  %v1442_v43 = vcombine.high %v1418_v24, %v7639_v1  ;;  %v1443_v48 = vcombine.high %v1425_v32, %v7639_v1 }
 0x4d4   : > { %v1502_v39 = vrot.slane %v1494_v36, %v7945_v15  ;;  %v1509_v42 = vrot.slane %v1495_v40, %v7945_v15  ;;  %v1444_v53 = vcombine.high %v1434_v37, %v7639_v1  ;;  %v1445_v59 = vcombine.high %v1441_v41, %v7639_v1 }
 0x4d5   : > { %1530 = vxpose.xlu0.c.b16.start.end [1/1] (short) (narrow) %v1486_v28, 16  ;;  %v1510_v44 = vcombine.high %v1486_v28, %v7639_v1  ;;  %v1511_v49 = vcombine.high %v1493_v35, %v7639_v1  ;;  %v962_v56 = vcombine.low %v929_v11, %v945_v8  ;;  %v963_v16 = vcombine.high %v929_v11, %v945_v8 }
 0x4d6   : > { %v1512_v57 = vcombine.high %v1502_v39, %v7639_v1  ;;  %v1513_v60 = vcombine.high %v1509_v42, %v7639_v1  ;;  %v954_v20 = vrot.slane %v946_v14, %v7945_v15  ;;  %v961_v50 = vrot.slane %v947_v54, %v7945_v15 }
 0x4d7   : > { %1578 = vxpose.xlu1.c.b16.start.end [1/1] (short) (narrow) %v1425_v32, 16  ;;  %v970_v55 = vrot.slane %v962_v56, %v7945_v15  ;;  %v977_v21 = vrot.slane %v963_v16, %v7945_v15 }
 0x4d8   : > { %v978_v24 = vcombine.high %v954_v20, %v7640_v2  ;;  %v979_v25 = vcombine.high %v961_v50, %v7640_v2 }
 0x4d9   : > { %1594 = vxpose.xlu0.c.b16.start.end [1/1] (short) (narrow) %v1493_v35, 16  ;;  %v980_v26 = vcombine.high %v970_v55, %v7640_v2  ;;  %v981_v27 = vcombine.high %v977_v21, %v7640_v2  ;;  %v6912_v35 = vpack.c.bf16 %v970_v55, %v954_v20  ;;  %v6913_v36 = vpack.c.bf16 %v977_v21, %v961_v50 }
 0x4db   : > { %1642 = vxpose.xlu1.c.b16.start.end [1/1] (short) (narrow) %v1434_v37, 16  ;;  %v6914_v30 = vpack.c.bf16 %v980_v26, %v978_v24  ;;  %v6915_v31 = vpack.c.bf16 %v981_v27, %v979_v25  ;;  %v1171_v58 = vrot.slane %v6913_v36, %v7938_v6 }
 0x4dd   : > { %1658 = vxpose.xlu0.c.b16.start.end [1/1] (short) (narrow) %v1502_v39, 16 }
 0x4df   : > { %1706 = vxpose.xlu1.c.b16.start.end [1/1] (short) (narrow) %v1441_v41, 16 }
 0x4e1   : > { %1722 = vxpose.xlu0.c.b16.start.end [1/1] (short) (narrow) %v1509_v42, 16 }
 0x4e3   : > { %1546 = vxpose.xlu1.c.b16.start.end [1/1] (short) (narrow) %v1442_v43, 16  ;;  %v1188_v43 = vrot.slane %v6914_v30, %v7938_v6 }
 0x4e5   : > { %1562 = vxpose.xlu0.c.b16.start.end [1/1] (short) (narrow) %v1510_v44, 16  ;;  %v1196_v44 = vrot.slane %v6915_v31, %v7938_v6 }
 0x4e7   : > { %1610 = vxpose.xlu1.c.b16.start.end [1/1] (short) (narrow) %v1443_v48, 16  ;;  %v1197_v3 = vcombine.low %v1188_v43, %v1196_v44 }
 0x4e9   : > { %1626 = vxpose.xlu0.c.b16.start.end [1/1] (short) (narrow) %v1511_v49, 16 }
 0x4eb   : > { %1674 = vxpose.xlu1.c.b16.start.end [1/1] (short) (narrow) %v1444_v53, 16 }
 0x4ed   : > { %1690 = vxpose.xlu0.c.b16.start.end [1/1] (short) (narrow) %v1512_v57, 16  ;;  %v1163_v57 = vrot.slane %v6912_v35, %v7938_v6 }
 0x4ef   : > { %1738 = vxpose.xlu1.c.b16.start.end [1/1] (short) (narrow) %v1445_v59, 16 }
 0x4f1   : > { %1754 = vxpose.xlu0.c.b16.start.end [1/1] (short) (narrow) %v1513_v60, 16 }
 0x4f3   : > { %1063 = vrot.lane.b32.xlu1 %v7985_v61, %s8883_s0 }
 0x4f7   : > { %1069 = vrot.lane.b32.xlu1 %v7985_v61, %s8881_s27  ;;  %s8909_s27 = smov 112  }
 0x4fa   : > { %1066 = vrot.lane.b32.xlu0 %v7985_v61, %s8885_s26  ;;  %s8908_s26 = smov 96  }
 0x535   : > { %v1522_v47 = vpop.trf.xlu1 }
 0x537   : > { %v1538_v62 = vpop.trf.xlu0 }
 0x539   : > { %v1586_v51 = vpop.trf.xlu1 }
 0x53a   : > { %v1770_v37 = vcombine.low %v1522_v47, %v1586_v51 }
 0x53b   : > { %v1602_v5 = vpop.trf.xlu0 }
 0x53c   : > { %v1820_v39 = vcombine.low %v1538_v62, %v1602_v5  ;;  %v1777_v59 = vrot.slane %v1770_v37, %v7938_v6 }
 0x53d   : > { %v1650_v9 = vpop.trf.xlu1 }
 0x53e   : > { %v1827_v47 = vrot.slane %v1820_v39, %v7938_v6 }
 0x53f   : > { %v1666_v13 = vpop.trf.xlu0 }
 0x541   : > { %v1714_v18 = vpop.trf.xlu1 }
 0x542   : > { %v1786_v40 = vcombine.low %v1650_v9, %v1714_v18  ;;  %v1172_v9 = vcombine.low %v1163_v57, %v1171_v58 }
 0x543   : > { %v1730_v19 = vpop.trf.xlu0 }
 0x544   : > { %v1836_v41 = vcombine.low %v1666_v13, %v1730_v19  ;;  %v1793_v62 = vrot.slane %v1786_v40, %v7938_v6  ;;  %v1204_v13 = vrot.slane %v1197_v3, %v7945_v15  ;;  %v1179_v16 = vrot.slane %v1172_v9, %v7945_v15 }
 0x545   : > { %v1554_v22 = vpop.trf.xlu1 }
 0x546   : > { %v1843_v51 = vrot.slane %v1836_v41, %v7938_v6  ;;  %v1205_v55 = vcombine.high %v1204_v13, %v7639_v1  ;;  %v1180_v24 = vcombine.high %v1179_v16, %v7639_v1  ;;  %v1208_v26 = vpack.i.b16 %v1204_v13, %v1179_v16 }
 0x547   : > { %v1570_v23 = vpop.trf.xlu0  ;;  %v1210_v30 = vshrl.u32 %v1204_v13, 16 }
 0x548   : > { %v1214_v27 = vpack.i.b16 %v1205_v55, %v1180_v24  ;;  %v1215_v43 = vshrl.u32 %v1180_v24, 16 }
 0x549   : > { %v1618_v28 = vpop.trf.xlu1 }
 0x54a   : > { %v1778_v33 = vcombine.low %v1554_v22, %v1618_v28 }
 0x54b   : > { %v1634_v29 = vpop.trf.xlu0 }
 0x54c   : > { %v1828_v34 = vcombine.low %v1570_v23, %v1634_v29  ;;  %v1785_v48 = vrot.slane %v1778_v33, %v7938_v6 }
 0x54d   : > { %v1682_v32 = vpop.trf.xlu1 }
 0x54e   : > { %v1835_v49 = vrot.slane %v1828_v34, %v7938_v6  ;;  %v1802_v4 = vcombine.low %v1777_v59, %v1785_v48 }
 0x54f   : > { %v1698_v38 = vpop.trf.xlu0 }
 0x550   : > { %v1852_v5 = vcombine.low %v1827_v47, %v1835_v49  ;;  %v1809_v14 = vrot.slane %v1802_v4, %v7945_v15 }
 0x551   : > { %v1746_v42 = vpop.trf.xlu1 }
 0x552   : > { %v1794_v53 = vcombine.low %v1682_v32, %v1746_v42  ;;  %v1859_v54 = vrot.slane %v1852_v5, %v7945_v15  ;;  %v1209_v32 = vshrl.u32 %v1179_v16, 16  ;;  %v1216_v42 = vshrl.u32 %v1205_v55, 16 }
 0x553   : > { %v1762_v60 = vpop.trf.xlu0 }
 0x554   : > { %v1801_v63 = vrot.slane %v1794_v53, %v7938_v6  ;;  %v1844_v0 = vcombine.low %v1698_v38, %v1762_v60  ;;  %v1211_v35 = vpack.i.b16 %v1210_v30, %v1209_v32  ;;  %v1217_v58 = vpack.i.b16 %v1216_v42, %v1215_v43 }
 0x556   : > { %v1810_v7 = vcombine.low %v1793_v62, %v1801_v63  ;;  %v1851_v8 = vrot.slane %v1844_v0, %v7938_v6 }
 0x558   : > { %v1860_v10 = vcombine.low %v1843_v51, %v1851_v8  ;;  %v1817_v11 = vrot.slane %v1810_v7, %v7945_v15 }
 0x55a   : > { %v1867_v56 = vrot.slane %v1860_v10, %v7945_v15  ;;  %v1818_v18 = vcombine.low %v1809_v14, %v1817_v11  ;;  %v1819_v19 = vcombine.high %v1809_v14, %v1817_v11 }
 0x55c   : > { %v1868_v20 = vcombine.low %v1859_v54, %v1867_v56  ;;  %v1869_v50 = vcombine.high %v1859_v54, %v1867_v56  ;;  %v1874_v25 = vshrl.u32 %v1818_v18, 16  ;;  %v1882_v33 = vshrl.u32 %v1819_v19, 16 }
 0x55e   : > { %v1872_v21 = vpack.i.b16 %v1868_v20, %v1818_v18  ;;  %v1875_v22 = vshrl.u32 %v1868_v20, 16  ;;  %v1880_v23 = vpack.i.b16 %v1869_v50, %v1819_v19  ;;  %v1883_v31 = vshrl.u32 %v1869_v50, 16 }
 0x560   : > { %7225 = vmatpush3.bf16.msra.mxu1 %v1872_v21  ;;  %7237 = vmatpush3.bf16.msra.mxu0 %v1880_v23  ;;  %v1876_v28 = vpack.i.b16 %v1875_v22, %v1874_v25  ;;  %v1884_v36 = vpack.i.b16 %v1883_v31, %v1882_v33 }
 0x561   : > { %7230 = vmatprep.subr.bf16.mxu1 %v7640_v2  ;;  %7248 = vmatprep.subr.bf16.mxu0 %v7640_v2 }
 0x563   : > { %7227 = vmatmul.mubr.msk.bf16.vlgmr.msra.gmra.mxu1 %vm1886_vm4, %v1208_v26  ;;  %7239 = vmatmul.mubr.msk.bf16.vlgmr.msra.gmra.mxu0 %vm1886_vm4, %v1214_v27 }
 0x564   : > { %7231 = vmatpush3.bf16.msra.mxu1 %v1876_v28  ;;  %7232 = vmatprep.mubr.msk.bf16.mxu1 %vm7641_vm0, %v7640_v2 }
 0x565   : > { %v1064_v29 = vpop.permute.xlu1 %1063  ;;  %7242 = vmatprep.subr.bf16.mxu1 %v7640_v2  ;;  %7250 = vmatprep.mubr.msk.bf16.mxu0 %vm7641_vm0, %v7640_v2 }
 0x569   : > { %v1070_v34 = vpop.permute.xlu1 %1069 }
 0x56a   : > { %v1088_v37 = vcombine.low %v1064_v29, %v1070_v34  ;;  %v1089_v38 = vcombine.high %v1064_v29, %v1070_v34  ;;  %v8076_v34 = vld [vmem:[%s8906_s1] sm:$0xff]  ;;  %s8877_s1 = smov 16  }
 0x56b   : > { %7233 = vmatmul.mubr.msk.bf16.vlgmr.msra.gmra.mxu1 %vm1886_vm4, %v1211_v35 }
 0x56c   : > { %7243 = vmatpush3.bf16.msra.mxu1 %v1884_v36  ;;  %v1067_v39 = vpop.permute.xlu0 %1066  ;;  %7244 = vmatprep.mubr.msk.bf16.mxu1 %vm7641_vm0, %v7640_v2  ;;  %v1096_v44 = vrot.slane %v1088_v37, %v7938_v6  ;;  %v1103_v48 = vrot.slane %v1089_v38, %v7938_v6 }
 0x56d   : > { %v1072_v40 = vcombine.low %v7985_v61, %v1067_v39  ;;  %v1073_v41 = vcombine.high %v7985_v61, %v1067_v39  ;;  %7254 = vmatprep.subr.bf16.mxu1 %v7640_v2 }
 0x56f   : > { %v1080_v49 = vrot.slane %v1072_v40, %v7938_v6  ;;  %v1087_v53 = vrot.slane %v1073_v41, %v7938_v6 }
 0x571   : > { %v1104_v57 = vcombine.low %v1080_v49, %v1096_v44  ;;  %v1105_v59 = vcombine.high %v1080_v49, %v1096_v44  ;;  %v1120_v60 = vcombine.low %v1087_v53, %v1103_v48  ;;  %v1121_v62 = vcombine.high %v1087_v53, %v1103_v48 }
 0x573   : > { %7245 = vmatmul.mubr.msk.bf16.vlgmr.msra.gmra.mxu1 %vm1886_vm4, %v1217_v58  ;;  %v1112_v61 = vrot.slane %v1104_v57, %v7945_v15  ;;  %v1119_v47 = vrot.slane %v1105_v59, %v7945_v15  ;;  %v1128_v3 = vrot.slane %v1120_v60, %v7945_v15  ;;  %v1135_v8 = vrot.slane %v1121_v62, %v7945_v15 }
 0x574   : > { %7256 = vmatprep.mubr.msk.bf16.mxu1 %vm7641_vm0, %v7640_v2 }
 0x575   : > { %v2116_v63 = vpack.c.bf16 %v1112_v61, %v1112_v61  ;;  %v1136_v0 = vcombine.high %v1112_v61, %v7640_v2  ;;  %v1137_v51 = vcombine.high %v1119_v47, %v7640_v2  ;;  %v1138_v7 = vcombine.high %v1128_v3, %v7640_v2 }
 0x576   : > { %v2118_v9 = vpack.c.bf16 %v1119_v47, %v1119_v47  ;;  %v1139_v11 = vcombine.high %v1135_v8, %v7640_v2  ;;  %v2120_v13 = vpack.c.bf16 %v1128_v3, %v1128_v3  ;;  %v2122_v54 = vpack.c.bf16 %v1135_v8, %v1135_v8 }
 0x577   : > { %2124 = vxpose.xlu1.c.b16.start.end [1/1] (short) (narrow) %v2116_v63, 16  ;;  %v2117_v4 = vpack.c.bf16 %v1136_v0, %v1136_v0  ;;  %v2119_v5 = vpack.c.bf16 %v1137_v51, %v1137_v51  ;;  %v2121_v10 = vpack.c.bf16 %v1138_v7, %v1138_v7 }
 0x578   : > { %v2123_v14 = vpack.c.bf16 %v1139_v11, %v1139_v11 }
 0x579   : > { %2140 = vxpose.xlu0.c.b16.start.end [1/1] (short) (narrow) %v2117_v4, 16 }
 0x57b   : > { %2172 = vxpose.xlu1.c.b16.start.end [1/1] (short) (narrow) %v2119_v5, 16 }
 0x57d   : > { %2156 = vxpose.xlu0.c.b16.start.end [1/1] (short) (narrow) %v2118_v9, 16 }
 0x57f   : > { %2204 = vxpose.xlu1.c.b16.start.end [1/1] (short) (narrow) %v2121_v10, 16 }
 0x581   : > { %2188 = vxpose.xlu0.c.b16.start.end [1/1] (short) (narrow) %v2120_v13, 16 }
 0x583   : > { %2236 = vxpose.xlu1.c.b16.start.end [1/1] (short) (narrow) %v2123_v14, 16 }
 0x585   : > { %2220 = vxpose.xlu0.c.b16.start.end [1/1] (short) (narrow) %v2122_v54, 16 }
 0x5d9   : > { %v2132_v56 = vpop.trf.xlu1 }
 0x5da   : > { %v2256_v3 = vshrl.u32 %v2132_v56, 16 }
 0x5db   : > { %v2148_v16 = vpop.trf.xlu0 }
 0x5dc   : > { %v2254_v50 = vpack.i.b16 %v2148_v16, %v2132_v56  ;;  %v2257_v4 = vshrl.u32 %v2148_v16, 16 }
 0x5dd   : > { %v2180_v18 = vpop.trf.xlu1 }
 0x5de   : > { %v2265_v5 = vshrl.u32 %v2180_v18, 16  ;;  %v2258_v13 = vpack.i.b16 %v2257_v4, %v2256_v3 }
 0x5df   : > { %v2164_v19 = vpop.trf.xlu0 }
 0x5e0   : > { %v2262_v23 = vpack.i.b16 %v2180_v18, %v2164_v19  ;;  %v2264_v7 = vshrl.u32 %v2164_v19, 16 }
 0x5e1   : > { %v2212_v20 = vpop.trf.xlu1 }
 0x5e2   : > { %v2273_v8 = vshrl.u32 %v2212_v20, 16  ;;  %v2266_v14 = vpack.i.b16 %v2265_v5, %v2264_v7 }
 0x5e3   : > { %v2196_v55 = vpop.trf.xlu0 }
 0x5e4   : > { %v2270_v21 = vpack.i.b16 %v2212_v20, %v2196_v55  ;;  %v2272_v9 = vshrl.u32 %v2196_v55, 16 }
 0x5e5   : > { %v2244_v22 = vpop.trf.xlu1 }
 0x5e6   : > { %v2285_v24 = vcombine.high %v2254_v50, %v2270_v21  ;;  %v2281_v10 = vshrl.u32 %v2244_v22, 16  ;;  %v2274_v54 = vpack.i.b16 %v2273_v8, %v2272_v9 }
 0x5e7   : > { %v2228_v25 = vpop.trf.xlu0 }
 0x5e8   : > { %v2278_v26 = vpack.i.b16 %v2244_v22, %v2228_v25  ;;  %v8064_v27 = vrot.slane %v2285_v24, %v7938_v6  ;;  %v2280_v11 = vshrl.u32 %v2228_v25, 16  ;;  %v2353_v55 = vcombine.high %v2258_v13, %v2274_v54 }
 0x5ea   : > { %v2301_v28 = vcombine.high %v2262_v23, %v2278_v26  ;;  %v2282_v24 = vpack.i.b16 %v2281_v10, %v2280_v11 }
 0x5ec   : > { %v8067_v29 = vrot.slane %v2301_v28, %v7938_v6  ;;  %v2352_v28 = vcombine.low %v2258_v13, %v2274_v54 }
 0x5ee   : > { %v2332_v30 = vcombine.low %v8064_v27, %v8067_v29  ;;  %v2333_v31 = vcombine.high %v8064_v27, %v8067_v29 }
 0x623   : > { %v1924_v32 = vpop.f32.mrf.mxu1  ;;  %v2010_v33 = vpop.f32.mrf.mxu0 }
 0x624   : > { %v2059_v35 = vmul.f32 0.25, %v1924_v32  ;;  %v2061_v36 = vmul.f32 0.25, %v2010_v33  ;;  %v2368_v32 = vcombine.low %v2266_v14, %v2282_v24  ;;  %v2284_v33 = vcombine.low %v2254_v50, %v2270_v21 }
 0x625   : > { %v7228_v37 = vpop.f32.mrf.mxu1  ;;  %v7240_v38 = vpop.f32.mrf.mxu0  ;;  %v2369_v21 = vcombine.high %v2266_v14, %v2282_v24 }
 0x626   : > { %v8079_v39 = vadd.f32 %v2059_v35, %v8076_v34  ;;  %v8084_v43 = vadd.f32 %v2061_v36, %v8076_v34  ;;  %v2300_v35 = vcombine.low %v2262_v23, %v2278_v26  ;;  %v2360_v36 = vrot.slane %v2352_v28, %v7938_v6 }
 0x627   : > { %v1927_v40 = vpop.f32.mrf.mxu1  ;;  %v2013_v41 = vpop.f32.mrf.mxu0  ;;  %v2376_v37 = vrot.slane %v2368_v32, %v7938_v6  ;;  %v2292_v56 = vrot.slane %v2284_v33, %v7938_v6  ;;  %v2367_v26 = vrot.slane %v2353_v55, %v7938_v6  ;;  %v2383_v38 = vrot.slane %v2369_v21, %v7938_v6 }
 0x628   : > { %v2068_v42 = vsel %vm2067_vm5, %v8079_v39, -inf  ;;  %v2074_v57 = vsel %vm2067_vm5, %v8084_v43, -inf  ;;  %v2308_v16 = vrot.slane %v2300_v35, %v7938_v6 }
 0x629   : > { %v7229_v44 = vpop.f32.mrf.mxu1  ;;  %v7241_v48 = vpop.f32.mrf.mxu0  ;;  %2069 = vmax.xlane.f32.xlu1 %v2068_v42  ;;  %v2384_v18 = vcombine.low %v2360_v36, %v2376_v37  ;;  %v2385_v50 = vcombine.high %v2360_v36, %v2376_v37  ;;  %v2400_v42 = vcombine.low %v2367_v26, %v2383_v38 }
 0x62a   : > { %v2316_v20 = vcombine.low %v2292_v56, %v2308_v16 }
 0x62b   : > { %v1967_v49 = vpop.f32.mrf.mxu1  ;;  %v2392_v19 = vrot.slane %v2384_v18, %v7945_v15  ;;  %v2399_v23 = vrot.slane %v2385_v50, %v7945_v15  ;;  %v2408_v48 = vrot.slane %v2400_v42, %v7945_v15 }
 0x62c   : > { %v2060_v53 = vmul.f32 0.25, %v1967_v49  ;;  %v2324_v25 = vrot.slane %v2316_v20, %v7945_v15 }
 0x62d   : > { %v7234_v58 = vpop.f32.mrf.mxu1  ;;  %2075 = vmax.xlane.f32.xlu1 %v2074_v57  ;;  %v2416_v22 = vcombine.high %v2392_v19, %v7639_v1  ;;  %v2417_v41 = vcombine.high %v2399_v23, %v7639_v1  ;;  %v2401_v57 = vcombine.high %v2367_v26, %v2383_v38 }
 0x62e   : > { %v8089_v59 = vadd.f32 %v2060_v53, %v8076_v34  ;;  %v2418_v53 = vcombine.high %v2408_v48, %v7639_v1 }
 0x62f   : > { %v1970_v60 = vpop.f32.mrf.mxu1  ;;  %v2415_v58 = vrot.slane %v2401_v57, %v7945_v15 }
 0x630   : > { %v2071_v61 = vsel %vm2067_vm5, %v8089_v59, -inf  ;;  %v2348_v60 = vcombine.high %v2324_v25, %v7639_v1 }
 0x631   : > { %v7235_v47 = vpop.f32.mrf.mxu1  ;;  %2072 = vmax.xlane.f32.xlu0 %v2071_v61  ;;  %v2317_v61 = vcombine.high %v2292_v56, %v2308_v16  ;;  %v2419_v36 = vcombine.high %v2415_v58, %v7639_v1 }
 0x633   : > { %v2053_v62 = vpop.f32.mrf.mxu1  ;;  %v2331_v47 = vrot.slane %v2317_v61, %v7945_v15 }
 0x634   : > { %v2062_v40 = vmul.f32 0.25, %v2053_v62  ;;  %v2340_v62 = vrot.slane %v2332_v30, %v7945_v15 }
 0x635   : > { %v7246_v63 = vpop.f32.mrf.mxu1 }
 0x636   : > { %v2066_v44 = vadd.f32 %v2062_v40, %v8076_v34  ;;  %v2349_v34 = vcombine.high %v2331_v47, %v7639_v1  ;;  %v2350_v63 = vcombine.high %v2340_v62, %v7639_v1 }
 0x637   : > { %v2056_v0 = vpop.f32.mrf.mxu1 }
 0x638   : > { %v2077_v49 = vsel %vm2067_vm5, %v2066_v44, -inf  ;;  %v2347_v0 = vrot.slane %v2333_v31, %v7945_v15 }
 0x639   : > { %v7247_v51 = vpop.f32.mrf.mxu1 }
 0x65a   : > { %2436 = vxpose.xlu1.c.b16.start.end [1/1] (short) (narrow) %v2392_v19, 16 }
 0x65e   : > { %2468 = vxpose.xlu1.c.b16.start.end [1/1] (short) (narrow) %v2416_v22, 16  ;;  %2420 = vxpose.xlu0.c.b16.start.end [1/1] (short) (narrow) %v2324_v25, 16 }
 0x662   : > { %2500 = vxpose.xlu1.c.b16.start.end [1/1] (short) (narrow) %v2399_v23, 16 }
 0x666   : > { %2532 = vxpose.xlu1.c.b16.start.end [1/1] (short) (narrow) %v2417_v41, 16 }
 0x66a   : > { %2564 = vxpose.xlu1.c.b16.start.end [1/1] (short) (narrow) %v2408_v48, 16 }
 0x66b   : > { %2078 = vmax.xlane.f32.xlu0 %v2077_v49 }
 0x66e   : > { %2596 = vxpose.xlu1.c.b16.start.end [1/1] (short) (narrow) %v2418_v53, 16 }
 0x672   : > { %2628 = vxpose.xlu1.c.b16.start.end [1/1] (short) (narrow) %v2415_v58, 16 }
 0x698   : > { %2452 = vxpose.xlu0.c.b16.start.end [1/1] (short) (narrow) %v2348_v60, 16 }
 0x69c   : > { %2484 = vxpose.xlu0.c.b16.start.end [1/1] (short) (narrow) %v2331_v47, 16 }
 0x6a0   : > { %2516 = vxpose.xlu0.c.b16.start.end [1/1] (short) (narrow) %v2349_v34, 16 }
 0x6a4   : > { %2548 = vxpose.xlu0.c.b16.start.end [1/1] (short) (narrow) %v2340_v62, 16 }
 0x6a8   : > { %2580 = vxpose.xlu0.c.b16.start.end [1/1] (short) (narrow) %v2350_v63, 16 }
 0x6ac   : > { %2612 = vxpose.xlu0.c.b16.start.end [1/1] (short) (narrow) %v2347_v0, 16 }
 0x6b2   : > { %v2070_v51 = vpop.xlane.xlu1 %2069 }
 0x6b3   : > { %v2080_v3 = vsub.f32 %v8079_v39, %v2070_v51 }
 0x6b5   : > { %v2084_v4 = vmul.f32 1.442695, %v2080_v3 }
 0x6b6   : > { %v2076_v5 = vpop.xlane.xlu1 %2075 }
 0x6b7   : > { %7524 = vpow2.f32 %v2084_v4  ;;  %v2082_v7 = vsub.f32 %v8084_v43, %v2076_v5 }
 0x6b9   : > { %v2088_v8 = vmul.f32 1.442695, %v2082_v7 }
 0x6ba   : > { %v2073_v30 = vpop.xlane.xlu0 %2072 }
 0x6bb   : > { %7526 = vpow2.f32 %v2088_v8  ;;  %v2081_v9 = vsub.f32 %v8089_v59, %v2073_v30  ;;  %v2351_v59 = vcombine.high %v2347_v0, %v7639_v1 }
 0x6bc   : > { %v2444_v35 = vpop.trf.xlu1 }
 0x6bd   : > { %v2086_v10 = vmul.f32 1.442695, %v2081_v9 }
 0x6bf   : > { %7528 = vpow2.f32 %v2086_v10 }
 0x6c0   : > { %v2428_v13 = vpop.trf.xlu0  ;;  %v2476_v56 = vpop.trf.xlu1 }
 0x6c4   : > { %v7525_v11 = vpop.eup %7524  ;;  %v2508_v18 = vpop.trf.xlu1 }
 0x6c5   : > { %v2092_v27 = vsel %vm2067_vm5, %v7525_v11, 0.0  ;;  %v2726_v34 = vcombine.low %v2444_v35, %v2508_v18 }
 0x6c6   : > { %2093 = vadd.xlane.f32.xlu0 %v2092_v27 }
 0x6c7   : > { %v2733_v5 = vrot.slane %v2726_v34, %v7938_v6 }
 0x6c8   : > { %v8125_v29 = vpop.eup %7526  ;;  %v2540_v20 = vpop.trf.xlu1 }
 0x6c9   : > { %v2098_v31 = vsel %vm2067_vm5, %v8125_v29, 0.0  ;;  %v2734_v62 = vcombine.low %v2476_v56, %v2540_v20 }
 0x6ca   : > { %2099 = vadd.xlane.f32.xlu0 %v2098_v31 }
 0x6cb   : > { %v2741_v8 = vrot.slane %v2734_v62, %v7938_v6 }
 0x6cc   : > { %v7529_v39 = vpop.eup %7528  ;;  %v2572_v22 = vpop.trf.xlu1 }
 0x6cd   : > { %v2095_v43 = vsel %vm2067_vm5, %v7529_v39, 0.0 }
 0x6ce   : > { %2096 = vadd.xlane.f32.xlu1 %v2095_v43 }
 0x6d0   : > { %v2604_v50 = vpop.trf.xlu1 }
 0x6d4   : > { %v2636_v23 = vpop.trf.xlu1 }
 0x6d5   : > { %v2742_v30 = vcombine.low %v2572_v22, %v2636_v23 }
 0x6d7   : > { %v2749_v43 = vrot.slane %v2742_v30, %v7938_v6 }
 0x6f4   : > { %v2079_v14 = vpop.xlane.xlu0 %2078 }
 0x6f5   : > { %v2083_v54 = vsub.f32 %v2066_v44, %v2079_v14 }
 0x6f7   : > { %v2090_v24 = vmul.f32 1.442695, %v2083_v54  ;;  %2644 = vxpose.xlu0.c.b16.start.end [1/1] (short) (narrow) %v2351_v59, 16 }
 0x6f9   : > { %7530 = vpow2.f32 %v2090_v24 }
 0x6fa   : > { %v2460_v33 = vpop.trf.xlu0 }
 0x6fe   : > { %v2492_v37 = vpop.trf.xlu0 }
 0x6ff   : > { %v2676_v0 = vcombine.low %v2428_v13, %v2492_v37 }
 0x701   : > { %v2683_v7 = vrot.slane %v2676_v0, %v7938_v6 }
 0x702   : > { %v2524_v16 = vpop.trf.xlu0 }
 0x703   : > { %v2684_v47 = vcombine.low %v2460_v33, %v2524_v16 }
 0x705   : > { %v2691_v4 = vrot.slane %v2684_v47, %v7938_v6 }
 0x706   : > { %v8131_v28 = vpop.eup %7530  ;;  %v2556_v19 = vpop.trf.xlu0 }
 0x707   : > { %v2101_v32 = vsel %vm2067_vm5, %v8131_v28, 0.0 }
 0x708   : > { %2102 = vadd.xlane.f32.xlu1 %v2101_v32 }
 0x70a   : > { %v2588_v55 = vpop.trf.xlu0 }
 0x70e   : > { %v2620_v25 = vpop.trf.xlu0 }
 0x70f   : > { %v2692_v60 = vcombine.low %v2556_v19, %v2620_v25 }
 0x711   : > { %v2699_v51 = vrot.slane %v2692_v60, %v7938_v6 }
 0x735   : > { %2660 = vxpose.xlu1.c.b16.start.end [1/1] (short) (narrow) %v2419_v36, 16 }
 0x74f   : > { %v2094_v21 = vpop.xlane.xlu0 %2093 }
 0x750   : > { %7532 = vrcp.f32 %v2094_v21 }
 0x753   : > { %v2100_v57 = vpop.xlane.xlu0 %2099 }
 0x757   : > { %v2097_v26 = vpop.xlane.xlu1 %2096 }
 0x758   : > { %7534 = vrcp.f32 %v2097_v26 }
 0x759   : > { %v2652_v58 = vpop.trf.xlu0  ;;  %7536 = vrcp.f32 %v2100_v57 }
 0x75a   : > { %v2700_v61 = vcombine.low %v2588_v55, %v2652_v58 }
 0x75c   : > { %v2707_v3 = vrot.slane %v2700_v61, %v7938_v6 }
 0x75d   : > { %v7533_v38 = vpop.eup %7532 }
 0x75e   : > { %v2105_v40 = vmul.f32 %v7533_v38, %v7525_v11  ;;  %v2716_v9 = vcombine.low %v2699_v51, %v2707_v3  ;;  %v2708_v11 = vcombine.low %v2683_v7, %v2691_v4  ;;  %v7438_v51 = vld [vmem:[%s8857_s11 + $0x18] sm:$0xff]   ;;  %v7439_v3 = vld [vmem:[%s8857_s11 + $0x10] sm:$0xff]  }
 0x760   : > { %v2112_v41 = vpack.c.bf16 %v2105_v40, %v2105_v40  ;;  %v2723_v13 = vrot.slane %v2716_v9, %v7945_v15  ;;  %v2715_v59 = vrot.slane %v2708_v11, %v7945_v15 }
 0x762   : > { %v2792_v42 = vsel %vm2067_vm5, %v2112_v41, 0  ;;  %v2724_v33 = vcombine.low %v2715_v59, %v2723_v13  ;;  %v2725_v21 = vcombine.high %v2715_v59, %v2723_v13 }
 0x763   : > { %7249 = vmatpush3.bf16.xpose.msra.mxu0 %v2792_v42 }
 0x764   : > { %7260 = vmatprep.subr.bf16.mxu0 %v7640_v2  ;;  %v2779_v18 = vshrl.u32 %v2724_v33, 16  ;;  %v2785_v23 = vshrl.u32 %v2725_v21, 16 }
 0x765   : > { %v7535_v44 = vpop.eup %7534 }
 0x766   : > { %v2107_v48 = vmul.f32 %v7535_v44, %v7529_v39  ;;  %v7537_v31 = vpop.eup %7536  ;;  %v2758_v39 = vcombine.low %v2733_v5, %v2741_v8 }
 0x767   : > { %v2109_v24 = vmul.f32 %v7537_v31, %v8125_v29 }
 0x768   : > { %v2113_v49 = vpack.c.bf16 %v2107_v48, %v2107_v48  ;;  %v2765_v32 = vrot.slane %v2758_v39, %v7945_v15 }
 0x769   : > { %v2114_v56 = vpack.c.bf16 %v2109_v24, %v2109_v24  ;;  %v7440_v24 = vld [vmem:[%s8857_s11 + $0x8] sm:$0xff]  }
 0x76a   : > { %v2839_v53 = vsel %vm2067_vm5, %v2113_v49, 0 }
 0x76b   : > { %7255 = vmatpush3.bf16.xpose.msra.mxu1 %v2839_v53  ;;  %v2886_v25 = vsel %vm2067_vm5, %v2114_v56, 0 }
 0x76c   : > { %7266 = vmatprep.subr.bf16.mxu1 %v7640_v2 }
 0x791   : > { %v2103_v63 = vpop.xlane.xlu1 %2102 }
 0x792   : > { %7538 = vrcp.f32 %v2103_v63 }
 0x797   : > { %v2668_v10 = vpop.trf.xlu1 }
 0x798   : > { %v2750_v27 = vcombine.low %v2604_v50, %v2668_v10 }
 0x79a   : > { %v2757_v14 = vrot.slane %v2750_v27, %v7938_v6 }
 0x79c   : > { %v2766_v54 = vcombine.low %v2749_v43, %v2757_v14 }
 0x79e   : > { %v2773_v35 = vrot.slane %v2766_v54, %v7945_v15 }
 0x79f   : > { %v7539_v36 = vpop.eup %7538 }
 0x7a0   : > { %v2774_v37 = vcombine.low %v2765_v32, %v2773_v35  ;;  %v2111_v16 = vmul.f32 %v7539_v36, %v8131_v28  ;;  %v2775_v22 = vcombine.high %v2765_v32, %v2773_v35 }
 0x7a2   : > { %v2778_v19 = vpack.i.b16 %v2774_v37, %v2724_v33  ;;  %v2780_v20 = vshrl.u32 %v2774_v37, 16  ;;  %v2115_v55 = vpack.c.bf16 %v2111_v16, %v2111_v16  ;;  %v2786_v28 = vshrl.u32 %v2775_v22, 16 }
 0x7a3   : > { %v2784_v26 = vpack.i.b16 %v2775_v22, %v2725_v21 }
 0x7a4   : > { %7251 = vmatmul.mubr.msk.bf16.vlgmr.msra.gmra.mxu0 %vm2067_vm5, %v2778_v19  ;;  %v2781_v29 = vpack.i.b16 %v2780_v20, %v2779_v18  ;;  %v2933_v50 = vsel %vm2067_vm5, %v2115_v55, 0  ;;  %v2787_v38 = vpack.i.b16 %v2786_v28, %v2785_v23  ;;  %v7441_v19 = vld [vmem:[%s8857_s11] sm:$0xff]  }
 0x7a5   : > { %7261 = vmatpush3.bf16.xpose.msra.mxu0 %v2886_v25  ;;  %7262 = vmatprep.mubr.msk.bf16.mxu0 %vm7641_vm0, %v7640_v2 }
 0x7a6   : > { %7257 = vmatmul.mubr.msk.bf16.vlgmr.msra.gmra.mxu1 %vm2067_vm5, %v2781_v29  ;;  %7272 = vmatprep.subr.bf16.mxu0 %v7640_v2 }
 0x7a7   : > { %7267 = vmatpush3.bf16.xpose.msra.mxu1 %v2933_v50  ;;  %7268 = vmatprep.mubr.msk.bf16.mxu1 %vm7641_vm0, %v7640_v2 }
 0x7ac   : > { %7263 = vmatmul.mubr.msk.bf16.vlgmr.msra.gmra.mxu0 %vm2067_vm5, %v2784_v26 }
 0x7ad   : > { %7280 = vmatprep.mubr.msk.bf16.mxu0 %vm7641_vm0, %v7640_v2  ;;  %7273 = vmatpush3.bf16.msra.mxu0 %v7438_v51 }
 0x7ae   : > { %7269 = vmatmul.mubr.msk.bf16.vlgmr.msra.gmra.mxu1 %vm2067_vm5, %v2787_v38  ;;  %7274 = vmatprep.subr.bf16.mxu0 %v7640_v2 }
 0x7af   : > { %3467 = vmatprep.mubr.bf16.mxu1 %v7639_v1 }
 0x7b1   : > { %7275 = vmatpush3.bf16.msra.mxu0 %v7439_v3 }
 0x7b2   : > { %7276 = vmatprep.subr.bf16.mxu0 %v7640_v2 }
 0x7b5   : > { %7277 = vmatpush3.bf16.msra.mxu0 %v7440_v24 }
 0x7b6   : > { %7278 = vmatprep.subr.bf16.mxu0 %v7640_v2 }
 0x7b9   : > { %7279 = vmatpush3.bf16.msra.mxu0 %v7441_v19  ;;  %v7455_v19 = vld [vmem:[%s8863_s17 + $0x38] sm:$0xff]  }
 0x864   : > { %v2828_v40 = vpop.f32.mrf.mxu0 }
 0x865   : > { %2976 = vxpose.xlu0.b32.start [1/2] (short) (narrow) %v2828_v40, 8 }
 0x866   : > { %v7252_v41 = vpop.f32.mrf.mxu0  ;;  %v2875_v42 = vpop.f32.mrf.mxu1 }
 0x867   : > { %3008 = vxpose.xlu1.b32.start [1/2] (short) (narrow) %v2875_v42, 8 }
 0x868   : > { %v2831_v44 = vpop.f32.mrf.mxu0  ;;  %v7258_v48 = vpop.f32.mrf.mxu1 }
 0x869   : > { %2977 = vxpose.xlu0.b32.end [2/2] (short) (narrow) %v2831_v44, 8 }
 0x86a   : > { %v7253_v49 = vpop.f32.mrf.mxu0  ;;  %v2878_v53 = vpop.f32.mrf.mxu1 }
 0x86b   : > { %3009 = vxpose.xlu1.b32.end [2/2] (short) (narrow) %v2878_v53, 8 }
 0x86c   : > { %v7259_v57 = vpop.f32.mrf.mxu1  ;;  %v2922_v58 = vpop.f32.mrf.mxu0 }
 0x86d   : > { %3040 = vxpose.xlu0.b32.start [1/2] (short) (narrow) %v2922_v58, 8 }
 0x86e   : > { %v7264_v60 = vpop.f32.mrf.mxu0  ;;  %v2969_v61 = vpop.f32.mrf.mxu1 }
 0x86f   : > { %3072 = vxpose.xlu1.b32.start [1/2] (short) (narrow) %v2969_v61, 8 }
 0x870   : > { %v2925_v47 = vpop.f32.mrf.mxu0  ;;  %v7270_v34 = vpop.f32.mrf.mxu1 }
 0x871   : > { %3041 = vxpose.xlu0.b32.end [2/2] (short) (narrow) %v2925_v47, 8 }
 0x872   : > { %v7265_v62 = vpop.f32.mrf.mxu0  ;;  %v2972_v63 = vpop.f32.mrf.mxu1 }
 0x873   : > { %3073 = vxpose.xlu1.b32.end [2/2] (short) (narrow) %v2972_v63, 8  ;;  %v6931_v62 = vld [vmem:[%s8858_s12] ss:$0 sm:$0xff] }
 0x874   : > { %v7271_v0 = vpop.f32.mrf.mxu1 }
 0x8e1   : > { %v2992_v4 = vpop.trf.xlu0 }
 0x8e3   : > { %v3024_v5 = vpop.trf.xlu1 }
 0x8e9   : > { %v3056_v7 = vpop.trf.xlu0 }
 0x8ea   : > { %v3104_v8 = vcombine.low %v2992_v4, %v3056_v7  ;;  %v3105_v30 = vcombine.high %v2992_v4, %v3056_v7 }
 0x8eb   : > { %v3088_v9 = vpop.trf.xlu1 }
 0x8ec   : > { %v3120_v10 = vcombine.low %v3024_v5, %v3088_v9  ;;  %v3121_v11 = vcombine.high %v3024_v5, %v3088_v9  ;;  %v3112_v27 = vrot.slane %v3104_v8, %v7938_v6  ;;  %v3119_v31 = vrot.slane %v3105_v30, %v7938_v6 }
 0x8ee   : > { %v3128_v39 = vrot.slane %v3120_v10, %v7938_v6  ;;  %v3135_v43 = vrot.slane %v3121_v11, %v7938_v6  ;;  %v7442_v11 = vld [vmem:[%s8861_s15 + $0x30] ss:$8 sps:$4 sm:$0xff]  }
 0x8f0   : > { %v3136_v13 = vcombine.low %v3112_v27, %v3128_v39  ;;  %v3137_v14 = vcombine.high %v3112_v27, %v3128_v39  ;;  %v3152_v59 = vcombine.low %v3119_v31, %v3135_v43  ;;  %v3153_v54 = vcombine.high %v3119_v31, %v3135_v43  ;;  %v7447_v27 = vld [vmem:[%s8861_s15 + $0x24] ss:$8 sps:$4 sm:$0xff]   ;;  %v7445_v31 = vld [vmem:[%s8861_s15 + $0x20] ss:$8 sps:$4 sm:$0xff]   ;;  %v7450_v39 = vld [vmem:[%s8861_s15 + $0x14] ss:$8 sps:$4 sm:$0xff]  }
 0x8f1   : > { %v7448_v43 = vld [vmem:[%s8861_s15 + $0x10] ss:$8 sps:$4 sm:$0xff]  }
 0x8f2   : > { %v3144_v32 = vrot.slane %v3136_v13, %v7945_v15  ;;  %v3151_v33 = vrot.slane %v3137_v14, %v7945_v15  ;;  %v3160_v35 = vrot.slane %v3152_v59, %v7945_v15  ;;  %v3167_v36 = vrot.slane %v3153_v54, %v7945_v15  ;;  %v7453_v13 = vld [vmem:[%s8861_s15 + $0x4] ss:$8 sps:$4 sm:$0xff]   ;;  %v7451_v14 = vld [vmem:[%s8861_s15] ss:$8 sps:$4 sm:$0xff]  }
 0x8f4   : > { %v3172_v37 = vcombine.low %v3144_v32, %v3151_v33  ;;  %v6924_v56 = vcombine.high %v3144_v32, %v3151_v33  ;;  %v3188_v16 = vcombine.low %v3160_v35, %v3167_v36  ;;  %v6925_v18 = vcombine.high %v3160_v35, %v3167_v36  ;;  %v6932_v33 = vld [vmem:[%s8859_s13] ss:$0 sm:$0xff] }
 0x8f5   : > { %v6933_v36 = vld [vmem:[%s8860_s14] ss:$0 sm:$0xff] }
 0x8f6   : > { %v3179_v20 = vrot.slane %v3172_v37, %v7938_v6  ;;  %v3187_v55 = vrot.slane %v6924_v56, %v7938_v6  ;;  %v3195_v22 = vrot.slane %v3188_v16, %v7938_v6  ;;  %v3203_v25 = vrot.slane %v6925_v18, %v7938_v6  ;;  %v7454_v18 = vld [vmem:[%s8863_s17 + $0x78] sm:$0xff]  }
 0x8f7   : > { %7130 = vmatprep.subr.bf16.mxu0 %v7454_v18 }
 0x8f8   : > { %v3205_v29 = vcombine.high %v3179_v20, %v3187_v55  ;;  %v3221_v50 = vcombine.high %v3195_v22, %v3203_v25  ;;  %v3204_v21 = vcombine.low %v3179_v20, %v3187_v55  ;;  %v3220_v28 = vcombine.low %v3195_v22, %v3203_v25  ;;  %v7456_v20 = vld [vmem:[%s8863_s17 + $0x70] sm:$0xff]   ;;  %v7458_v22 = vld [vmem:[%s8863_s17 + $0x68] sm:$0xff]  }
 0x8f9   : > { %v7457_v55 = vld [vmem:[%s8863_s17 + $0x30] sm:$0xff]   ;;  %v7459_v25 = vld [vmem:[%s8863_s17 + $0x28] sm:$0xff]  }
 0x8fa   : > { %v3219_v23 = vrot.slane %v3205_v29, %v7945_v15  ;;  %v3235_v26 = vrot.slane %v3221_v50, %v7945_v15  ;;  %v3212_v38 = vrot.slane %v3204_v21, %v7945_v15  ;;  %v3228_v40 = vrot.slane %v3220_v28, %v7945_v15  ;;  %v7460_v29 = vld [vmem:[%s8863_s17 + $0x60] sm:$0xff]   ;;  %v7462_v21 = vld [vmem:[%s8863_s17 + $0x58] sm:$0xff]  }
 0x8fb   : > { %v7461_v50 = vld [vmem:[%s8863_s17 + $0x20] sm:$0xff]   ;;  %v7463_v28 = vld [vmem:[%s8863_s17 + $0x18] sm:$0xff]  }
 0x8fc   : > { %v3238_v41 = vcombine.low %v3219_v23, %v3235_v26  ;;  %v3237_v42 = vcombine.high %v3212_v38, %v3228_v40  ;;  %v3236_v44 = vcombine.low %v3212_v38, %v3228_v40  ;;  %v3239_v48 = vcombine.high %v3219_v23, %v3235_v26  ;;  %v7464_v23 = vld [vmem:[%s8863_s17 + $0x50] sm:$0xff]   ;;  %v7466_v38 = vld [vmem:[%s8863_s17 + $0x48] sm:$0xff]  }
 0x8fd   : > { %v7465_v26 = vld [vmem:[%s8863_s17 + $0x10] sm:$0xff]   ;;  %v7467_v40 = vld [vmem:[%s8863_s17 + $0x8] sm:$0xff]  }
 0x8fe   : > { %3245 = vrot.lane.b32.xlu1 %v3238_v41, %s8878_s30  ;;  %3241 = vrot.lane.b32.xlu0 %v3237_v42, %s8877_s1  ;;  %v7468_v41 = vld [vmem:[%s8863_s17 + $0x40] sm:$0xff]   ;;  %s8912_s1 = smov 32  }
 0x8ff   : > { %v7469_v42 = vld [vmem:[%s8863_s17] sm:$0xff]  }
 0x902   : > { %3249 = vrot.lane.b32.xlu1 %v3239_v48, %s8876_s28  ;;  %s8913_s28 = smov 16  }
 0x970   : > { %v3246_v49 = vpop.permute.xlu1 %3245  ;;  %v3242_v53 = vpop.permute.xlu0 %3241 }
 0x971   : > { %v3252_v57 = vsel %vm1886_vm4, %v3236_v44, %v3242_v53  ;;  %v3380_v44 = vld [vmem:[%s8862_s16] sm:$0x3] }
 0x972   : > { %v3254_v60 = vsel %vm3253_vm6, %v3252_v57, %v3246_v49  ;;  %v3385_v48 = vrot.slane %v3380_v44, %v7904_v46  ;;  %v3389_v49 = vrot.slane %v3380_v44, %v7976_v52 }
 0x974   : > { %v3250_v58 = vpop.permute.xlu1 %3249 }
 0x975   : > { %v3256_v61 = vsel %vm3255_vm7, %v3254_v60, %v3250_v58 }
 0x976   : > { %v3257_v47 = vpack.c.bf16 %v3256_v61, %v3256_v61 }
 0x978   : > { %7281 = vmatmul.mubr.msk.bf16.vlgmr.msra.gmra.mxu0 %vm770_vm3, %v3257_v47 }
 0x979   : > { %7131 = vmatpush3.bf16.msra.mxu0 %v7455_v19 }
 0x97a   : > { %7132 = vmatprep.subr.bf16.mxu0 %v7456_v20 }
 0x97d   : > { %7133 = vmatpush3.bf16.msra.mxu0 %v7457_v55 }
 0x97e   : > { %7134 = vmatprep.subr.bf16.mxu0 %v7458_v22  ;;  %v7472_v22 = vld [vmem:[%s8855_s9 + $0x74] ss:$8 sps:$4 sm:$0xff]  }
 0x981   : > { %7135 = vmatpush3.bf16.msra.mxu0 %v7459_v25  ;;  %v7475_v25 = vld [vmem:[%s8855_s9 + $0x64] ss:$8 sps:$4 sm:$0xff]  }
 0x982   : > { %7136 = vmatprep.subr.bf16.mxu0 %v7460_v29  ;;  %v7473_v29 = vld [vmem:[%s8855_s9 + $0x60] ss:$8 sps:$4 sm:$0xff]  }
 0x985   : > { %7137 = vmatpush3.bf16.msra.mxu0 %v7461_v50  ;;  %v7478_v50 = vld [vmem:[%s8855_s9 + $0x54] ss:$8 sps:$4 sm:$0xff]  }
 0x986   : > { %7138 = vmatprep.subr.bf16.mxu0 %v7462_v21  ;;  %v7476_v21 = vld [vmem:[%s8855_s9 + $0x50] ss:$8 sps:$4 sm:$0xff]  }
 0x989   : > { %7139 = vmatpush3.bf16.msra.mxu0 %v7463_v28  ;;  %v7481_v28 = vld [vmem:[%s8855_s9 + $0x44] ss:$8 sps:$4 sm:$0xff]  }
 0x98a   : > { %7140 = vmatprep.subr.bf16.mxu0 %v7464_v23  ;;  %v7479_v23 = vld [vmem:[%s8855_s9 + $0x40] ss:$8 sps:$4 sm:$0xff]  }
 0x98d   : > { %7141 = vmatpush3.bf16.msra.mxu0 %v7465_v26 }
 0x98e   : > { %7142 = vmatprep.subr.bf16.mxu0 %v7466_v38 }
 0x991   : > { %7143 = vmatpush3.bf16.msra.mxu0 %v7467_v40 }
 0x992   : > { %7144 = vmatprep.subr.bf16.mxu0 %v7468_v41 }
 0x995   : > { %7145 = vmatpush3.bf16.msra.mxu0 %v7469_v42  ;;  %v6962_v42 = vld [vmem:[%s8853_s7 + $0x1] ss:$0 sm:$0xff] }
 0x996   : > { %7296 = vmatprep.subr.bf16.mxu0 %v7640_v2 }
 0xa38   : > { %v3327_v34 = vpop.f32.mrf.mxu0 }
 0xa39   : > { %v3333_v63 = vadd.f32 %v3327_v34, %v7861_v17  ;;  %v7444_v17 = vld [vmem:[%s8861_s15 + $0x34] ss:$8 sps:$4 sm:$0xff]  }
 0xa3a   : > { %v7282_v0 = vpop.f32.mrf.mxu0  ;;  %3443 = vmatprep.subr.bf16.mxu1 %v7444_v17 }
 0xa3b   : > { %v8210_v51 = vadd.f32 %v6931_v62, %v3333_v63  ;;  %3444 = vmatpush1.bf16.msra.mxu1 %v7442_v11 }
 0xa3c   : > { %v3330_v3 = vpop.f32.mrf.mxu0  ;;  %3445 = vmatprep.subr.bf16.mxu1 %v7447_v27 }
 0xa3d   : > { %v3344_v4 = vsel %vm770_vm3, %v8210_v51, 0.0 }
 0xa3e   : > { %3345 = vadd.xlane.f32.xlu0 %v3344_v4  ;;  %v7283_v5 = vpop.f32.mrf.mxu0 }
 0xa3f   : > { %3446 = vmatpush1.bf16.msra.mxu1 %v7445_v31 }
 0xa40   : > { %3447 = vmatprep.subr.bf16.mxu1 %v7450_v39 }
 0xa43   : > { %3448 = vmatpush1.bf16.msra.mxu1 %v7448_v43 }
 0xa44   : > { %3449 = vmatprep.subr.bf16.mxu1 %v7453_v13 }
 0xa47   : > { %3450 = vmatpush1.bf16.msra.mxu1 %v7451_v14 }
 0xa48   : > { %3778 = vmatprep.subr.bf16.mxu1 %v7472_v22 }
 0xac7   : > { %v3346_v7 = vpop.xlane.xlu0 %3345 }
 0xac8   : > { %v3347_v8 = vmul.f32 0.015625, %v3346_v7 }
 0xaca   : > { %v3348_v30 = vsub.f32 %v8210_v51, %v3347_v8 }
 0xacc   : > { %v3349_v9 = vmul.f32 %v3348_v30, %v3348_v30 }
 0xace   : > { %v3350_v10 = vsel %vm770_vm3, %v3349_v9, 0.0 }
 0xacf   : > { %3351 = vadd.xlane.f32.xlu1 %v3350_v10 }
 0xb58   : > { %v3352_v59 = vpop.xlane.xlu1 %3351 }
 0xb59   : > { %v3353_v54 = vmul.f32 0.015625, %v3352_v59 }
 0xb5b   : > { %v3354_v24 = vadd.f32 1e-05, %v3353_v54 }
 0xb5d   : > { %7540 = vrsqrt.f32 %v3354_v24 }
 0xb6a   : > { %v7541_v32 = vpop.eup %7540 }
 0xb6b   : > { %v3356_v35 = vmul.f32 %v7541_v32, %v3348_v30  ;;  %v6959_v32 = vld [vmem:[%s8864_s18] ss:$0 sm:$0xff] }
 0xb6d   : > { %v3363_v37 = vmul.f32 %v6932_v33, %v3356_v35 }
 0xb6f   : > { %v3370_v56 = vadd.f32 %v6933_v36, %v3363_v37 }
 0xb71   : > { %v3371_v16 = vpack.c.bf16 %v3370_v56, %v3370_v56 }
 0xb73   : > { %6942 = vmatmul.mubr.msk.bf16.vlgmr.msra.gmra.mxu1 %vm770_vm3, %v3371_v16 }
 0xb74   : > { %3802 = vmatprep.mubr.bf16.mxu1 %v7639_v1 }
 0xc33   : > { %v3469_v53 = vpop.f32.mrf.mxu1 }
 0xc34   : > { %v3470_v57 = vadd.f32 %v3469_v53, %v3385_v48  ;;  %v6963_v48 = vld [vmem:[%s8854_s8 + $0x1] ss:$0 sm:$0xff] }
 0xc35   : > { %v3471_v58 = vpop.f32.mrf.mxu1 }
 0xc36   : > { %v3478_v60 = vmul.f32 0.044715, %v3470_v57  ;;  %v3472_v61 = vadd.f32 %v3471_v58, %v3389_v49  ;;  %v3476_v11 = vmul.f32 0.5, %v3470_v57  ;;  %v8351_v58 = vld [vmem:[%s8856_s10 + $0x2] sm:$0x3] }
 0xc37   : > { %v3473_v47 = vpop.f32.mrf.mxu1 }
 0xc38   : > { %v3480_v34 = vmul.f32 %v3478_v60, %v3470_v57  ;;  %v3479_v62 = vmul.f32 0.044715, %v3472_v61  ;;  %v3477_v27 = vmul.f32 0.5, %v3472_v61  ;;  %v3720_v60 = vrot.slane %v8351_v58, %v7904_v46 }
 0xc39   : > { %v3474_v63 = vpop.f32.mrf.mxu1 }
 0xc3a   : > { %v3482_v0 = vmul.f32 %v3480_v34, %v3470_v57  ;;  %v3481_v3 = vmul.f32 %v3479_v62, %v3472_v61 }
 0xc3c   : > { %v3484_v4 = vadd.f32 %v3482_v0, %v3470_v57  ;;  %v3483_v5 = vmul.f32 %v3481_v3, %v3472_v61 }
 0xc3e   : > { %v3486_v7 = vmul.f32 0.7978846, %v3484_v4  ;;  %v3485_v8 = vadd.f32 %v3483_v5, %v3472_v61 }
 0xc40   : > { %v3487_v30 = vmul.f32 0.7978846, %v3485_v8  ;;  %7542 = vtanh.f32 %v3486_v7 }
 0xc42   : > { %7544 = vtanh.f32 %v3487_v30 }
 0xc4d   : > { %v7543_v9 = vpop.eup %7542 }
 0xc4e   : > { %v3490_v10 = vadd.f32 1.0, %v7543_v9 }
 0xc4f   : > { %v7545_v17 = vpop.eup %7544 }
 0xc50   : > { %v3491_v31 = vadd.f32 1.0, %v7545_v17  ;;  %v3492_v39 = vmul.f32 %v3490_v10, %v3476_v11 }
 0xc52   : > { %v3493_v43 = vmul.f32 %v3491_v31, %v3477_v27  ;;  %v3494_v14 = vpack.c.bf16 %v3492_v39, %v3492_v39 }
 0xc54   : > { %v3495_v13 = vpack.c.bf16 %v3493_v43, %v3493_v43 }
 0xc56   : > { %3656 = vmatprep.mubr.bf16.mxu0 %v3495_v13 }
 0xc57   : > { %3657 = vmatmul.mubr.bf16.vlgmr.msra.gmra.mxu0 %v3494_v14 }
 0xc58   : > { %7298 = vmatprep.mubr.msk.bf16.mxu0 %vm7641_vm0, %v7640_v2 }
 0xd17   : > { %v7146_v59 = vpop.f32.mrf.mxu0 }
 0xd19   : > { %v7147_v54 = vpop.f32.mrf.mxu0 }
 0xd1a   : > { %v7148_v24 = vadd.f32 %v7147_v54, %v7146_v59 }
 0xd1b   : > { %v7149_v33 = vpop.f32.mrf.mxu0 }
 0xd1c   : > { %v3664_v35 = vadd.f32 %v7148_v24, %v8210_v51  ;;  %v7470_v51 = vld [vmem:[%s8855_s9 + $0x70] ss:$8 sps:$4 sm:$0xff]  }
 0xd1d   : > { %v7150_v36 = vpop.f32.mrf.mxu0  ;;  %3779 = vmatpush1.bf16.msra.mxu1 %v7470_v51 }
 0xd1e   : > { %v8308_v37 = vadd.f32 %v6959_v32, %v3664_v35  ;;  %3780 = vmatprep.subr.bf16.mxu1 %v7475_v25 }
 0xd20   : > { %v3677_v56 = vsel %vm770_vm3, %v8308_v37, 0.0 }
 0xd21   : > { %3678 = vadd.xlane.f32.xlu0 %v3677_v56  ;;  %3781 = vmatpush1.bf16.msra.mxu1 %v7473_v29 }
 0xd22   : > { %3782 = vmatprep.subr.bf16.mxu1 %v7478_v50 }
 0xd25   : > { %3783 = vmatpush1.bf16.msra.mxu1 %v7476_v21 }
 0xd26   : > { %3784 = vmatprep.subr.bf16.mxu1 %v7481_v28 }
 0xd29   : > { %3785 = vmatpush1.bf16.msra.mxu1 %v7479_v23 }
 0xd2a   : > { %7284 = vmatprep.subr.bf16.mxu1 %v7640_v2 }
 0xdaa   : > { %v3679_v16 = vpop.xlane.xlu0 %3678 }
 0xdab   : > { %v3680_v18 = vmul.f32 0.015625, %v3679_v16 }
 0xdad   : > { %v3681_v19 = vsub.f32 %v8308_v37, %v3680_v18 }
 0xdaf   : > { %v3682_v20 = vmul.f32 %v3681_v19, %v3681_v19 }
 0xdb1   : > { %v3683_v55 = vsel %vm770_vm3, %v3682_v20, 0.0 }
 0xdb2   : > { %3684 = vadd.xlane.f32.xlu0 %v3683_v55 }
 0xe3b   : > { %v3685_v26 = vpop.xlane.xlu0 %3684 }
 0xe3c   : > { %v3686_v38 = vmul.f32 0.015625, %v3685_v26 }
 0xe3e   : > { %v3687_v40 = vadd.f32 1e-05, %v3686_v38 }
 0xe40   : > { %7546 = vrsqrt.f32 %v3687_v40 }
 0xe4d   : > { %v7547_v41 = vpop.eup %7546 }
 0xe4e   : > { %v3689_v44 = vmul.f32 %v7547_v41, %v3681_v19 }
 0xe50   : > { %v3696_v49 = vmul.f32 %v6962_v42, %v3689_v44 }
 0xe52   : > { %v3703_v53 = vadd.f32 %v6963_v48, %v3696_v49 }
 0xe54   : > { %v3704_v57 = vpack.c.bf16 %v3703_v53, %v3703_v53 }
 0xe56   : > { %6981 = vmatmul.mubr.msk.bf16.vlgmr.msra.gmra.mxu1 %vm770_vm3, %v3704_v57 }
 0xe57   : > { %7286 = vmatprep.mubr.msk.bf16.mxu1 %vm7641_vm0, %v7640_v2 }
 0xf16   : > { %v3804_v61 = vpop.f32.mrf.mxu1 }
 0xf17   : > { %v3805_v47 = vadd.f32 %v3804_v61, %v3720_v60 }
 0xf18   : > { %v8355_v34 = vpop.f32.mrf.mxu1 }
 0xf19   : > { %3815 = vrot.lane.b32.xlu0 %v3805_v47, %s8908_s26  ;;  %3812 = vrot.lane.b32.xlu1 %v3805_v47, %s8909_s27 }
 0xf1a   : > { %v3808_v62 = vpop.f32.mrf.mxu1 }
 0xf1c   : > { %v3809_v63 = vpop.f32.mrf.mxu1 }
 0xf1d   : > { %3818 = vrot.lane.b32.xlu1 %v3805_v47, %s8910_s29 }
 0xf21   : > { %3889 = vrot.lane.b32.xlu1 %v3805_v47, %s8911_s24 }
 0xf8b   : > { %v3816_v0 = vpop.permute.xlu0 %3815  ;;  %v3813_v3 = vpop.permute.xlu1 %3812 }
 0xf8c   : > { %3893 = vrot.lane.b32.xlu1 %v3816_v0, %s8911_s24  ;;  %3891 = vrot.lane.b32.xlu0 %v3813_v3, %s8911_s24  ;;  %v3821_v4 = vcombine.low %v3805_v47, %v3816_v0  ;;  %v3822_v5 = vcombine.high %v3805_v47, %v3816_v0 }
 0xf8e   : > { %v3829_v9 = vrot.slane %v3821_v4, %v7938_v6  ;;  %v3836_v10 = vrot.slane %v3822_v5, %v7938_v6 }
 0xf8f   : > { %v3819_v7 = vpop.permute.xlu1 %3818 }
 0xf90   : > { %v3837_v8 = vcombine.low %v3813_v3, %v3819_v7  ;;  %v3838_v30 = vcombine.high %v3813_v3, %v3819_v7  ;;  %3895 = vrot.lane.b32.xlu0 %v3819_v7, %s8911_s24  ;;  %s7097_s24 = sshll.u32 %s7779_s2, 7 }
 0xf91   : > { %s6788_s30 = scalar_lea.hbm %s8865_s19, %s7097_s24 }
 0xf92   : > { %v3845_v17 = vrot.slane %v3837_v8, %v7938_v6  ;;  %v3852_v11 = vrot.slane %v3838_v30, %v7938_v6 }
 0xf93   : > { %v3890_v49 = vpop.permute.xlu1 %3889 }
 0xf94   : > { %v3853_v27 = vcombine.low %v3829_v9, %v3845_v17  ;;  %v3854_v31 = vcombine.high %v3829_v9, %v3845_v17  ;;  %v3869_v39 = vcombine.low %v3836_v10, %v3852_v11  ;;  %v3870_v43 = vcombine.high %v3836_v10, %v3852_v11 }
 0xf96   : > { %v3861_v13 = vrot.slane %v3853_v27, %v7945_v15  ;;  %v3868_v14 = vrot.slane %v3854_v31, %v7945_v15  ;;  %v3877_v59 = vrot.slane %v3869_v39, %v7945_v15  ;;  %v3884_v54 = vrot.slane %v3870_v43, %v7945_v15 }
 0xf98   : > { %v3885_v24 = vcombine.high %v3861_v13, %v7640_v2  ;;  %v3886_v32 = vcombine.high %v3868_v14, %v7640_v2  ;;  %v3887_v33 = vcombine.high %v3877_v59, %v7640_v2  ;;  %v3888_v35 = vcombine.high %v3884_v54, %v7640_v2 }
 0xf99   : > { %v6982_v36 = vpack.c.bf16 %v3877_v59, %v3861_v13  ;;  %v6983_v56 = vpack.c.bf16 %v3884_v54, %v3868_v14 }
 0xf9a   : > { %v6984_v16 = vpack.c.bf16 %v3887_v33, %v3885_v24  ;;  %v6985_v18 = vpack.c.bf16 %v3888_v35, %v3886_v32 }
 0xf9b   : > { %v4070_v19 = vrot.slane %v6982_v36, %v7938_v6  ;;  %v4078_v20 = vrot.slane %v6983_v56, %v7938_v6 }
 0xf9c   : > { %v4095_v55 = vrot.slane %v6984_v16, %v7938_v6  ;;  %v4103_v22 = vrot.slane %v6985_v18, %v7938_v6 }
 0xf9d   : > { %v4079_v51 = vcombine.low %v4070_v19, %v4078_v20 }
 0xf9e   : > { %v4104_v25 = vcombine.low %v4095_v55, %v4103_v22 }
 0xf9f   : > { %v8381_v29 = vrot.slane %v4079_v51, %v7945_v15 }
 0xfa0   : > { %v8384_v50 = vrot.slane %v4104_v25, %v7945_v15 }
 0xfa1   : > { %v8388_v21 = vcombine.high %v8381_v29, %v7639_v1  ;;  %v4116_v26 = vshrl.u32 %v8381_v29, 16 }
 0xfa2   : > { %v4115_v28 = vpack.i.b16 %v8384_v50, %v8381_v29  ;;  %v8394_v23 = vcombine.high %v8384_v50, %v7639_v1  ;;  %v4117_v38 = vshrl.u32 %v8384_v50, 16 }
 0xfa3   : > { %v4122_v42 = vshrl.u32 %v8388_v21, 16 }
 0xfa4   : > { %v4121_v40 = vpack.i.b16 %v8394_v23, %v8388_v21  ;;  %v8400_v41 = vpack.i.b16 %v4117_v38, %v4116_v26  ;;  %v4123_v44 = vshrl.u32 %v8394_v23, 16 }
 0xfa6   : > { %v8404_v48 = vpack.i.b16 %v4123_v44, %v4122_v42 }
 0xffe   : > { %v3892_v53 = vpop.permute.xlu0 %3891  ;;  %v3894_v57 = vpop.permute.xlu1 %3893 }
 0xfff   : > { %v3901_v60 = vcombine.low %v3890_v49, %v3894_v57  ;;  %v3902_v61 = vcombine.high %v3890_v49, %v3894_v57 }
0x1001   : > { %v3909_v0 = vrot.slane %v3901_v60, %v7938_v6  ;;  %v3916_v3 = vrot.slane %v3902_v61, %v7938_v6 }
0x1002   : > { %v3896_v47 = vpop.permute.xlu0 %3895 }
0x1003   : > { %v3917_v62 = vcombine.low %v3892_v53, %v3896_v47  ;;  %v3918_v63 = vcombine.high %v3892_v53, %v3896_v47 }
0x1005   : > { %v3925_v4 = vrot.slane %v3917_v62, %v7938_v6  ;;  %v3932_v5 = vrot.slane %v3918_v63, %v7938_v6 }
0x1007   : > { %v3933_v7 = vcombine.low %v3909_v0, %v3925_v4  ;;  %v3934_v8 = vcombine.high %v3909_v0, %v3925_v4  ;;  %v3949_v30 = vcombine.low %v3916_v3, %v3932_v5  ;;  %v3950_v17 = vcombine.high %v3916_v3, %v3932_v5 }
0x1009   : > { %v3948_v9 = vrot.slane %v3934_v8, %v7945_v15  ;;  %v3941_v10 = vrot.slane %v3933_v7, %v7945_v15  ;;  %v3957_v31 = vrot.slane %v3949_v30, %v7945_v15  ;;  %v3964_v43 = vrot.slane %v3950_v17, %v7945_v15 }
0x100b   : > { %v4057_v11 = vpack.c.bf16 %v3948_v9, %v3948_v9  ;;  %v4055_v27 = vpack.c.bf16 %v3941_v10, %v3941_v10  ;;  %v3966_v39 = vcombine.high %v3948_v9, %v7640_v2  ;;  %v4059_v13 = vpack.c.bf16 %v3957_v31, %v3957_v31 }
0x100c   : > { %v3967_v59 = vcombine.high %v3957_v31, %v7640_v2  ;;  %v3965_v54 = vcombine.high %v3941_v10, %v7640_v2  ;;  %v3968_v33 = vcombine.high %v3964_v43, %v7640_v2  ;;  %v4061_v36 = vpack.c.bf16 %v3964_v43, %v3964_v43 }
0x100d   : > { %4157 = vxpose.xlu0.c.b16.start.end [1/1] (short) (narrow) %v4057_v11, 16  ;;  %4125 = vxpose.xlu1.c.b16.start.end [1/1] (short) (narrow) %v4055_v27, 16  ;;  %v4058_v14 = vpack.c.bf16 %v3966_v39, %v3966_v39 }
0x100e   : > { %v4060_v24 = vpack.c.bf16 %v3967_v59, %v3967_v59  ;;  %v4056_v32 = vpack.c.bf16 %v3965_v54, %v3965_v54  ;;  %v4062_v35 = vpack.c.bf16 %v3968_v33, %v3968_v33 }
0x1011   : > { %4189 = vxpose.xlu0.c.b16.start.end [1/1] (short) (narrow) %v4059_v13, 16  ;;  %4173 = vxpose.xlu1.c.b16.start.end [1/1] (short) (narrow) %v4058_v14, 16 }
0x1015   : > { %4205 = vxpose.xlu1.c.b16.start.end [1/1] (short) (narrow) %v4060_v24, 16  ;;  %4141 = vxpose.xlu0.c.b16.start.end [1/1] (short) (narrow) %v4056_v32, 16 }
0x1019   : > { %4237 = vxpose.xlu1.c.b16.start.end [1/1] (short) (narrow) %v4062_v35, 16  ;;  %4221 = vxpose.xlu0.c.b16.start.end [1/1] (short) (narrow) %v4061_v36, 16 }
0x106f   : > { %v4165_v56 = vpop.trf.xlu0  ;;  %v4133_v16 = vpop.trf.xlu1 }
0x1070   : > { %v4257_v25 = vshrl.u32 %v4133_v16, 16  ;;  %v4265_v61 = vshrl.u32 %v4165_v56, 16 }
0x1073   : > { %v4197_v18 = vpop.trf.xlu0  ;;  %v4181_v19 = vpop.trf.xlu1 }
0x1074   : > { %v4273_v26 = vshrl.u32 %v4197_v18, 16  ;;  %v4266_v44 = vshrl.u32 %v4181_v19, 16  ;;  %v4263_v47 = vpack.i.b16 %v4181_v19, %v4165_v56 }
0x1076   : > { %v4267_v4 = vpack.i.b16 %v4266_v44, %v4265_v61 }
0x1077   : > { %v4213_v20 = vpop.trf.xlu1  ;;  %v4149_v55 = vpop.trf.xlu0 }
0x1078   : > { %v4274_v22 = vshrl.u32 %v4213_v20, 16  ;;  %v4258_v51 = vshrl.u32 %v4149_v55, 16  ;;  %v4271_v38 = vpack.i.b16 %v4213_v20, %v4197_v18  ;;  %v4255_v42 = vpack.i.b16 %v4149_v55, %v4133_v16 }
0x107a   : > { %v4275_v49 = vpack.i.b16 %v4274_v22, %v4273_v26  ;;  %v4259_v53 = vpack.i.b16 %v4258_v51, %v4257_v25  ;;  %v4285_v62 = vcombine.low %v4255_v42, %v4271_v38  ;;  %v4286_v11 = vcombine.high %v4255_v42, %v4271_v38 }
0x107b   : > { %v4245_v57 = vpop.trf.xlu1  ;;  %v4229_v60 = vpop.trf.xlu0 }
0x107c   : > { %v4282_v63 = vshrl.u32 %v4245_v57, 16  ;;  %v4279_v0 = vpack.i.b16 %v4245_v57, %v4229_v60  ;;  %v4281_v3 = vshrl.u32 %v4229_v60, 16  ;;  %v4353_v5 = vcombine.low %v4259_v53, %v4275_v49 }
0x107d   : > { %v4293_v30 = vrot.slane %v4285_v62, %v7938_v6  ;;  %v4354_v13 = vcombine.high %v4259_v53, %v4275_v49  ;;  %v4300_v32 = vrot.slane %v4286_v11, %v7938_v6 }
0x107e   : > { %v4283_v7 = vpack.i.b16 %v4282_v63, %v4281_v3  ;;  %v4301_v8 = vcombine.low %v4263_v47, %v4279_v0  ;;  %v4302_v9 = vcombine.high %v4263_v47, %v4279_v0  ;;  %v4361_v27 = vrot.slane %v4353_v5, %v7938_v6 }
0x107f   : > { %v4368_v56 = vrot.slane %v4354_v13, %v7938_v6  ;;  %v3724_v47 = vrot.slane %v8351_v58, %v7976_v52 }
0x1080   : > { %v4309_v10 = vrot.slane %v4301_v8, %v7938_v6  ;;  %v4369_v17 = vcombine.low %v4267_v4, %v4283_v7  ;;  %v4370_v31 = vcombine.high %v4267_v4, %v4283_v7  ;;  %v4316_v14 = vrot.slane %v4302_v9, %v7938_v6 }
0x1081   : > { %v8445_v63 = vadd.f32 %v8355_v34, %v3724_v47 }
0x1082   : > { %v4377_v39 = vrot.slane %v4369_v17, %v7938_v6  ;;  %v4317_v43 = vcombine.low %v4293_v30, %v4309_v10  ;;  %v4318_v24 = vcombine.high %v4293_v30, %v4309_v10  ;;  %v4384_v33 = vrot.slane %v4370_v31, %v7938_v6 }
0x1083   : > { %v4333_v18 = vcombine.low %v4300_v32, %v4316_v14  ;;  %v4334_v22 = vcombine.high %v4300_v32, %v4316_v14 }
0x1084   : > { %v4325_v59 = vrot.slane %v4317_v43, %v7945_v15  ;;  %v4385_v54 = vcombine.low %v4361_v27, %v4377_v39  ;;  %v4386_v36 = vcombine.high %v4361_v27, %v4377_v39  ;;  %v4332_v16 = vrot.slane %v4318_v24, %v7945_v15 }
0x1085   : > { %v4401_v20 = vcombine.low %v4368_v56, %v4384_v33  ;;  %v4341_v55 = vrot.slane %v4333_v18, %v7945_v15  ;;  %v4402_v25 = vcombine.high %v4368_v56, %v4384_v33  ;;  %v4348_v26 = vrot.slane %v4334_v22, %v7945_v15 }
0x1086   : > { %4421 = vxpose.xlu0.c.b16.start.end [1/1] (short) (narrow) %v4325_v59, 16  ;;  %v4393_v35 = vrot.slane %v4385_v54, %v7945_v15  ;;  %v4400_v19 = vrot.slane %v4386_v36, %v7945_v15  ;;  %v4349_v42 = vcombine.high %v4325_v59, %v7639_v1  ;;  %v4350_v49 = vcombine.high %v4332_v16, %v7639_v1 }
0x1087   : > { %v4409_v51 = vrot.slane %v4401_v20, %v7945_v15  ;;  %v4416_v38 = vrot.slane %v4402_v25, %v7945_v15  ;;  %v4351_v57 = vcombine.high %v4341_v55, %v7639_v1  ;;  %v4352_v61 = vcombine.high %v4348_v26, %v7639_v1 }
0x1088   : > { %4437 = vxpose.xlu1.c.b16.start.end [1/1] (short) (narrow) %v4393_v35, 16  ;;  %v4417_v44 = vcombine.high %v4393_v35, %v7639_v1  ;;  %v4418_v53 = vcombine.high %v4400_v19, %v7639_v1 }
0x1089   : > { %v4419_v60 = vcombine.high %v4409_v51, %v7639_v1  ;;  %v4420_v62 = vcombine.high %v4416_v38, %v7639_v1 }
0x108a   : > { %4485 = vxpose.xlu0.c.b16.start.end [1/1] (short) (narrow) %v4332_v16, 16 }
0x108c   : > { %4501 = vxpose.xlu1.c.b16.start.end [1/1] (short) (narrow) %v4400_v19, 16 }
0x108e   : > { %4549 = vxpose.xlu0.c.b16.start.end [1/1] (short) (narrow) %v4341_v55, 16 }
0x1090   : > { %4565 = vxpose.xlu1.c.b16.start.end [1/1] (short) (narrow) %v4409_v51, 16 }
0x1092   : > { %4613 = vxpose.xlu0.c.b16.start.end [1/1] (short) (narrow) %v4348_v26, 16 }
0x1094   : > { %4629 = vxpose.xlu1.c.b16.start.end [1/1] (short) (narrow) %v4416_v38, 16 }
0x1096   : > { %4453 = vxpose.xlu0.c.b16.start.end [1/1] (short) (narrow) %v4349_v42, 16 }
0x1098   : > { %4469 = vxpose.xlu1.c.b16.start.end [1/1] (short) (narrow) %v4417_v44, 16 }
0x109a   : > { %4517 = vxpose.xlu0.c.b16.start.end [1/1] (short) (narrow) %v4350_v49, 16 }
0x109c   : > { %4533 = vxpose.xlu1.c.b16.start.end [1/1] (short) (narrow) %v4418_v53, 16 }
0x109e   : > { %4581 = vxpose.xlu0.c.b16.start.end [1/1] (short) (narrow) %v4351_v57, 16 }
0x10a0   : > { %4597 = vxpose.xlu1.c.b16.start.end [1/1] (short) (narrow) %v4419_v60, 16 }
0x10a2   : > { %4645 = vxpose.xlu0.c.b16.start.end [1/1] (short) (narrow) %v4352_v61, 16 }
0x10a4   : > { %4661 = vxpose.xlu1.c.b16.start.end [1/1] (short) (narrow) %v4420_v62, 16 }
0x10a8   : > { %3973 = vrot.lane.b32.xlu1 %v8445_v63, %s8908_s26  ;;  %s632_s26 = sand.u32 1, %s7629_s22  }
0x10ab   : > { %3970 = vrot.lane.b32.xlu0 %v8445_v63, %s8909_s27  ;;  %s6887_s27 = sshll.u32 %s632_s26, 3 }
0x10ac   : > { %3976 = vrot.lane.b32.xlu1 %v8445_v63, %s8910_s29  ;;  %s634_s29 = scalar_lea.vmem [#allocation2], %s6887_s27  ;;  %s7652_s27 = smov [#allocation2]  }
0x10e8   : > { %v4429_v0 = vpop.trf.xlu0 }
0x10ea   : > { %v4445_v3 = vpop.trf.xlu1 }
0x10ec   : > { %v4493_v4 = vpop.trf.xlu0 }
0x10ed   : > { %v4677_v39 = vcombine.low %v4429_v0, %v4493_v4 }
0x10ee   : > { %v4509_v58 = vpop.trf.xlu1 }
0x10ef   : > { %v4727_v13 = vcombine.low %v4445_v3, %v4509_v58  ;;  %v4684_v35 = vrot.slane %v4677_v39, %v7938_v6 }
0x10f0   : > { %v4557_v5 = vpop.trf.xlu0 }
0x10f1   : > { %v4734_v56 = vrot.slane %v4727_v13, %v7938_v6 }
0x10f2   : > { %v4573_v7 = vpop.trf.xlu1 }
0x10f4   : > { %v4621_v8 = vpop.trf.xlu0 }
0x10f5   : > { %v4693_v14 = vcombine.low %v4557_v5, %v4621_v8 }
0x10f6   : > { %v4637_v30 = vpop.trf.xlu1 }
0x10f7   : > { %v4743_v59 = vcombine.low %v4573_v7, %v4637_v30  ;;  %v4700_v16 = vrot.slane %v4693_v14, %v7938_v6 }
0x10f8   : > { %v4461_v9 = vpop.trf.xlu0 }
0x10f9   : > { %v4750_v20 = vrot.slane %v4743_v59, %v7938_v6 }
0x10fa   : > { %v4477_v34 = vpop.trf.xlu1 }
0x10fc   : > { %v4525_v10 = vpop.trf.xlu0 }
0x10fd   : > { %v4685_v27 = vcombine.low %v4461_v9, %v4525_v10 }
0x10fe   : > { %v4541_v17 = vpop.trf.xlu1 }
0x10ff   : > { %v4735_v31 = vcombine.low %v4477_v34, %v4541_v17  ;;  %v4692_v24 = vrot.slane %v4685_v27, %v7938_v6 }
0x1100   : > { %v4589_v11 = vpop.trf.xlu0 }
0x1101   : > { %v4742_v32 = vrot.slane %v4735_v31, %v7938_v6  ;;  %v4709_v55 = vcombine.low %v4684_v35, %v4692_v24 }
0x1102   : > { %v4605_v43 = vpop.trf.xlu1 }
0x1103   : > { %v4759_v22 = vcombine.low %v4734_v56, %v4742_v32  ;;  %v4716_v42 = vrot.slane %v4709_v55, %v7945_v15 }
0x1104   : > { %v4653_v54 = vpop.trf.xlu0 }
0x1105   : > { %v4701_v33 = vcombine.low %v4589_v11, %v4653_v54  ;;  %v4766_v44 = vrot.slane %v4759_v22, %v7945_v15 }
0x1106   : > { %v4669_v36 = vpop.trf.xlu1 }
0x1107   : > { %v4708_v18 = vrot.slane %v4701_v33, %v7938_v6  ;;  %v4751_v19 = vcombine.low %v4605_v43, %v4669_v36 }
0x1109   : > { %v4717_v51 = vcombine.low %v4700_v16, %v4708_v18  ;;  %v4758_v25 = vrot.slane %v4751_v19, %v7938_v6 }
0x110b   : > { %v4724_v26 = vrot.slane %v4717_v51, %v7945_v15  ;;  %v4767_v38 = vcombine.low %v4750_v20, %v4758_v25 }
0x110d   : > { %v4774_v49 = vrot.slane %v4767_v38, %v7945_v15  ;;  %v4725_v53 = vcombine.low %v4716_v42, %v4724_v26  ;;  %v4726_v57 = vcombine.high %v4716_v42, %v4724_v26 }
0x110f   : > { %v4775_v60 = vcombine.low %v4766_v44, %v4774_v49  ;;  %v4776_v61 = vcombine.high %v4766_v44, %v4774_v49  ;;  %v4781_v3 = vshrl.u32 %v4725_v53, 16  ;;  %v4789_v7 = vshrl.u32 %v4726_v57, 16 }
0x1111   : > { %v4779_v47 = vpack.i.b16 %v4775_v60, %v4725_v53  ;;  %v4787_v62 = vpack.i.b16 %v4776_v61, %v4726_v57  ;;  %v4782_v0 = vshrl.u32 %v4775_v60, 16  ;;  %v4790_v58 = vshrl.u32 %v4776_v61, 16 }
0x1113   : > { %7285 = vmatpush3.bf16.msra.mxu1 %v4779_v47  ;;  %7297 = vmatpush3.bf16.msra.mxu0 %v4787_v62  ;;  %v4783_v4 = vpack.i.b16 %v4782_v0, %v4781_v3 }
0x1114   : > { %7290 = vmatprep.subr.bf16.mxu1 %v7640_v2  ;;  %7308 = vmatprep.subr.bf16.mxu0 %v7640_v2 }
0x1116   : > { %7287 = vmatmul.mubr.msk.bf16.vlgmr.msra.gmra.mxu1 %vm1886_vm4, %v4115_v28  ;;  %7299 = vmatmul.mubr.msk.bf16.vlgmr.msra.gmra.mxu0 %vm1886_vm4, %v4121_v40  ;;  %v4791_v28 = vpack.i.b16 %v4790_v58, %v4789_v7 }
0x1117   : > { %7291 = vmatpush3.bf16.msra.mxu1 %v4783_v4  ;;  %7292 = vmatprep.mubr.msk.bf16.mxu1 %vm7641_vm0, %v7640_v2 }
0x1118   : > { %7302 = vmatprep.subr.bf16.mxu1 %v7640_v2  ;;  %7310 = vmatprep.mubr.msk.bf16.mxu0 %vm7641_vm0, %v7640_v2 }
0x111a   : > { %v3974_v5 = vpop.permute.xlu1 %3973 }
0x111b   : > { %v3979_v29 = vcombine.low %v8445_v63, %v3974_v5  ;;  %v3980_v21 = vcombine.high %v8445_v63, %v3974_v5 }
0x111d   : > { %v3971_v50 = vpop.permute.xlu0 %3970  ;;  %v3987_v30 = vrot.slane %v3979_v29, %v7938_v6  ;;  %v3994_v10 = vrot.slane %v3980_v21, %v7938_v6  ;;  %v7576_v29 = vld [vmem:[%s8907_s3] sm:$0xff]  ;;  %s7581_s3 = sshll.u32 %s7652_s27, 4  ;;  %s7582_s3 = int_to_ptr.vmem [resolvable:$false] %s7581_s3 }
0x111e   : > { %v3977_v8 = vpop.permute.xlu1 %3976  ;;  %7293 = vmatmul.mubr.msk.bf16.vlgmr.msra.gmra.mxu1 %vm1886_vm4, %v8400_v41 }
0x111f   : > { %v3995_v23 = vcombine.low %v3971_v50, %v3977_v8  ;;  %v3996_v40 = vcombine.high %v3971_v50, %v3977_v8  ;;  %7303 = vmatpush3.bf16.msra.mxu1 %v4791_v28  ;;  %7304 = vmatprep.mubr.msk.bf16.mxu1 %vm7641_vm0, %v7640_v2 }
0x1120   : > { %7314 = vmatprep.subr.bf16.mxu1 %v7640_v2 }
0x1121   : > { %v4003_v9 = vrot.slane %v3995_v23, %v7938_v6  ;;  %v4010_v34 = vrot.slane %v3996_v40, %v7938_v6 }
0x1123   : > { %v4011_v17 = vcombine.low %v3987_v30, %v4003_v9  ;;  %v4012_v41 = vcombine.high %v3987_v30, %v4003_v9  ;;  %v4027_v11 = vcombine.low %v3994_v10, %v4010_v34  ;;  %v4028_v43 = vcombine.high %v3994_v10, %v4010_v34 }
0x1125   : > { %v4019_v63 = vrot.slane %v4011_v17, %v7945_v15  ;;  %v4026_v27 = vrot.slane %v4012_v41, %v7945_v15  ;;  %v4035_v14 = vrot.slane %v4027_v11, %v7945_v15 }
0x1126   : > { %7305 = vmatmul.mubr.msk.bf16.vlgmr.msra.gmra.mxu1 %vm1886_vm4, %v8404_v48  ;;  %v4042_v48 = vrot.slane %v4028_v43, %v7945_v15 }
0x1127   : > { %v5021_v31 = vpack.c.bf16 %v4019_v63, %v4019_v63  ;;  %v4043_v39 = vcombine.high %v4019_v63, %v7640_v2  ;;  %7316 = vmatprep.mubr.msk.bf16.mxu1 %vm7641_vm0, %v7640_v2  ;;  %v5023_v59 = vpack.c.bf16 %v4026_v27, %v4026_v27  ;;  %v4044_v54 = vcombine.high %v4026_v27, %v7640_v2 }
0x1128   : > { %v5025_v24 = vpack.c.bf16 %v4035_v14, %v4035_v14  ;;  %v4045_v33 = vcombine.high %v4035_v14, %v7640_v2  ;;  %v5027_v35 = vpack.c.bf16 %v4042_v48, %v4042_v48  ;;  %v4046_v56 = vcombine.high %v4042_v48, %v7640_v2 }
0x1129   : > { %5029 = vxpose.xlu0.c.b16.start.end [1/1] (short) (narrow) %v5021_v31, 16  ;;  %v5022_v13 = vpack.c.bf16 %v4043_v39, %v4043_v39  ;;  %v5024_v32 = vpack.c.bf16 %v4044_v54, %v4044_v54 }
0x112a   : > { %v5026_v36 = vpack.c.bf16 %v4045_v33, %v4045_v33  ;;  %v5028_v16 = vpack.c.bf16 %v4046_v56, %v4046_v56 }
0x112b   : > { %5045 = vxpose.xlu1.c.b16.start.end [1/1] (short) (narrow) %v5022_v13, 16 }
0x112d   : > { %5061 = vxpose.xlu0.c.b16.start.end [1/1] (short) (narrow) %v5023_v59, 16 }
0x112f   : > { %5093 = vxpose.xlu1.c.b16.start.end [1/1] (short) (narrow) %v5025_v24, 16 }
0x1131   : > { %5077 = vxpose.xlu0.c.b16.start.end [1/1] (short) (narrow) %v5024_v32, 16 }
0x1133   : > { %5125 = vxpose.xlu1.c.b16.start.end [1/1] (short) (narrow) %v5027_v35, 16 }
0x1135   : > { %5109 = vxpose.xlu0.c.b16.start.end [1/1] (short) (narrow) %v5026_v36, 16 }
0x1139   : > { %5141 = vxpose.xlu0.c.b16.start.end [1/1] (short) (narrow) %v5028_v16, 16 }
0x118b   : > { %v5037_v18 = vpop.trf.xlu0 }
0x118c   : > { %v5161_v14 = vshrl.u32 %v5037_v18, 16 }
0x118d   : > { %v5053_v19 = vpop.trf.xlu1 }
0x118e   : > { %v5159_v51 = vpack.i.b16 %v5053_v19, %v5037_v18  ;;  %v5162_v54 = vshrl.u32 %v5053_v19, 16 }
0x118f   : > { %v5069_v20 = vpop.trf.xlu0 }
0x1190   : > { %v5169_v59 = vshrl.u32 %v5069_v20, 16  ;;  %v5163_v56 = vpack.i.b16 %v5162_v54, %v5161_v14 }
0x1191   : > { %v5101_v22 = vpop.trf.xlu1 }
0x1192   : > { %v5177_v24 = vshrl.u32 %v5101_v22, 16 }
0x1193   : > { %v5085_v55 = vpop.trf.xlu0 }
0x1194   : > { %v5167_v44 = vpack.i.b16 %v5085_v55, %v5069_v20  ;;  %v5170_v48 = vshrl.u32 %v5085_v55, 16 }
0x1195   : > { %v5133_v42 = vpop.trf.xlu1 }
0x1196   : > { %v5185_v35 = vshrl.u32 %v5133_v42, 16  ;;  %v5171_v36 = vpack.i.b16 %v5170_v48, %v5169_v59 }
0x1197   : > { %v5117_v25 = vpop.trf.xlu0 }
0x1198   : > { %v5175_v26 = vpack.i.b16 %v5117_v25, %v5101_v22  ;;  %v5178_v32 = vshrl.u32 %v5117_v25, 16 }
0x119a   : > { %v5190_v38 = vcombine.high %v5159_v51, %v5175_v26  ;;  %v5179_v16 = vpack.i.b16 %v5178_v32, %v5177_v24 }
0x119b   : > { %v5149_v49 = vpop.trf.xlu0 }
0x119c   : > { %v5183_v53 = vpack.i.b16 %v5149_v49, %v5133_v42  ;;  %v8504_v60 = vrot.slane %v5190_v38, %v7938_v6  ;;  %v5186_v33 = vshrl.u32 %v5149_v49, 16  ;;  %v5258_v25 = vcombine.high %v5163_v56, %v5179_v16 }
0x119e   : > { %v5206_v57 = vcombine.high %v5167_v44, %v5183_v53  ;;  %v5187_v38 = vpack.i.b16 %v5186_v33, %v5185_v35 }
0x11a0   : > { %v8507_v61 = vrot.slane %v5206_v57, %v7938_v6  ;;  %v5257_v57 = vcombine.low %v5163_v56, %v5179_v16  ;;  %v5274_v42 = vcombine.high %v5171_v36, %v5187_v38 }
0x11a2   : > { %v5237_v47 = vcombine.low %v8504_v60, %v8507_v61  ;;  %v5238_v62 = vcombine.high %v8504_v60, %v8507_v61 }
0x11d6   : > { %v4830_v0 = vpop.f32.mrf.mxu1  ;;  %v4916_v3 = vpop.f32.mrf.mxu0 }
0x11d7   : > { %v4965_v4 = vmul.f32 0.25, %v4830_v0  ;;  %v4967_v58 = vmul.f32 0.25, %v4916_v3  ;;  %v5273_v0 = vcombine.low %v5171_v36, %v5187_v38  ;;  %v5189_v3 = vcombine.low %v5159_v51, %v5175_v26 }
0x11d8   : > { %v7288_v5 = vpop.f32.mrf.mxu1  ;;  %v7300_v7 = vpop.f32.mrf.mxu0 }
0x11d9   : > { %v8516_v50 = vadd.f32 %v7576_v29, %v4965_v4  ;;  %v8518_v21 = vadd.f32 %v7576_v29, %v4967_v58  ;;  %v5265_v4 = vrot.slane %v5257_v57, %v7938_v6  ;;  %v5205_v58 = vcombine.low %v5167_v44, %v5183_v53 }
0x11da   : > { %v4833_v28 = vpop.f32.mrf.mxu1  ;;  %v4919_v8 = vpop.f32.mrf.mxu0  ;;  %v5281_v5 = vrot.slane %v5273_v0, %v7938_v6  ;;  %v5197_v18 = vrot.slane %v5189_v3, %v7938_v6  ;;  %v5272_v44 = vrot.slane %v5258_v25, %v7938_v6  ;;  %v5288_v53 = vrot.slane %v5274_v42, %v7938_v6 }
0x11db   : > { %v4973_v23 = vsel %vm2067_vm5, %v8516_v50, -inf  ;;  %v4979_v10 = vsel %vm2067_vm5, %v8518_v21, -inf  ;;  %v5213_v19 = vrot.slane %v5205_v58, %v7938_v6 }
0x11dc   : > { %v7289_v40 = vpop.f32.mrf.mxu1  ;;  %v7301_v30 = vpop.f32.mrf.mxu0  ;;  %4974 = vmax.xlane.f32.xlu0 %v4973_v23  ;;  %v5289_v20 = vcombine.low %v5265_v4, %v5281_v5  ;;  %v5290_v26 = vcombine.high %v5265_v4, %v5281_v5  ;;  %v5305_v23 = vcombine.low %v5272_v44, %v5288_v53 }
0x11dd   : > { %v5221_v55 = vcombine.low %v5197_v18, %v5213_v19 }
0x11de   : > { %v4873_v9 = vpop.f32.mrf.mxu1  ;;  %v5297_v22 = vrot.slane %v5289_v20, %v7945_v15  ;;  %v5304_v7 = vrot.slane %v5290_v26, %v7945_v15  ;;  %v5313_v30 = vrot.slane %v5305_v23, %v7945_v15 }
0x11df   : > { %v4966_v34 = vmul.f32 0.25, %v4873_v9  ;;  %v5229_v51 = vrot.slane %v5221_v55, %v7945_v15 }
0x11e0   : > { %v7294_v17 = vpop.f32.mrf.mxu1  ;;  %4980 = vmax.xlane.f32.xlu0 %v4979_v10  ;;  %v5321_v49 = vcombine.high %v5297_v22, %v7639_v1  ;;  %v5322_v8 = vcombine.high %v5304_v7, %v7639_v1  ;;  %v5306_v10 = vcombine.high %v5272_v44, %v5288_v53 }
0x11e1   : > { %v8524_v41 = vadd.f32 %v7576_v29, %v4966_v34  ;;  %v5323_v34 = vcombine.high %v5313_v30, %v7639_v1 }
0x11e2   : > { %v4876_v63 = vpop.f32.mrf.mxu1  ;;  %v8543_v17 = vrot.slane %v5306_v10, %v7945_v15 }
0x11e3   : > { %v4976_v11 = vsel %vm2067_vm5, %v8524_v41, -inf  ;;  %v5253_v63 = vcombine.high %v5229_v51, %v7639_v1 }
0x11e4   : > { %v7295_v27 = vpop.f32.mrf.mxu1  ;;  %4977 = vmax.xlane.f32.xlu1 %v4976_v11  ;;  %v5222_v11 = vcombine.high %v5197_v18, %v5213_v19 }
0x11e6   : > { %v4959_v31 = vpop.f32.mrf.mxu1 }
0x11e7   : > { %v4968_v28 = vmul.f32 0.25, %v4959_v31  ;;  %v5245_v31 = vrot.slane %v5237_v47, %v7945_v15 }
0x11e8   : > { %v7306_v39 = vpop.f32.mrf.mxu1 }
0x11e9   : > { %v4972_v40 = vadd.f32 %v7576_v29, %v4968_v28  ;;  %v5236_v29 = vrot.slane %v5222_v11, %v7945_v15  ;;  %v5255_v39 = vcombine.high %v5245_v31, %v7639_v1 }
0x11ea   : > { %v4962_v43 = vpop.f32.mrf.mxu1 }
0x11eb   : > { %v4982_v9 = vsel %vm2067_vm5, %v4972_v40, -inf  ;;  %v5254_v27 = vcombine.high %v5236_v29, %v7639_v1  ;;  %v5252_v43 = vrot.slane %v5238_v62, %v7945_v15 }
0x11ec   : > { %v7307_v13 = vpop.f32.mrf.mxu1 }
0x11ed   : > { %v5256_v18 = vcombine.high %v5252_v43, %v7639_v1 }
0x120d   : > { %5341 = vxpose.xlu0.c.b16.start.end [1/1] (short) (narrow) %v5297_v22, 16 }
0x1211   : > { %5373 = vxpose.xlu0.c.b16.start.end [1/1] (short) (narrow) %v5321_v49, 16  ;;  %5325 = vxpose.xlu1.c.b16.start.end [1/1] (short) (narrow) %v5229_v51, 16 }
0x1215   : > { %5405 = vxpose.xlu0.c.b16.start.end [1/1] (short) (narrow) %v5304_v7, 16 }
0x1219   : > { %5437 = vxpose.xlu0.c.b16.start.end [1/1] (short) (narrow) %v5322_v8, 16 }
0x121d   : > { %5469 = vxpose.xlu0.c.b16.start.end [1/1] (short) (narrow) %v5313_v30, 16  ;;  %v5324_v30 = vcombine.high %v8543_v17, %v7639_v1 }
0x121e   : > { %4983 = vmax.xlane.f32.xlu1 %v4982_v9 }
0x1221   : > { %5501 = vxpose.xlu0.c.b16.start.end [1/1] (short) (narrow) %v5323_v34, 16 }
0x1225   : > { %5533 = vxpose.xlu0.c.b16.start.end [1/1] (short) (narrow) %v8543_v17, 16 }
0x124b   : > { %5357 = vxpose.xlu1.c.b16.start.end [1/1] (short) (narrow) %v5253_v63, 16 }
0x124f   : > { %5389 = vxpose.xlu1.c.b16.start.end [1/1] (short) (narrow) %v5236_v29, 16 }
0x1253   : > { %5421 = vxpose.xlu1.c.b16.start.end [1/1] (short) (narrow) %v5254_v27, 16 }
0x1257   : > { %5453 = vxpose.xlu1.c.b16.start.end [1/1] (short) (narrow) %v5245_v31, 16 }
0x125b   : > { %5485 = vxpose.xlu1.c.b16.start.end [1/1] (short) (narrow) %v5255_v39, 16 }
0x125f   : > { %5517 = vxpose.xlu1.c.b16.start.end [1/1] (short) (narrow) %v5252_v43, 16 }
0x1265   : > { %v4975_v13 = vpop.xlane.xlu0 %4974 }
0x1266   : > { %v4985_v14 = vsub.f32 %v8516_v50, %v4975_v13 }
0x1268   : > { %v4989_v59 = vmul.f32 1.442695, %v4985_v14 }
0x1269   : > { %v4981_v54 = vpop.xlane.xlu0 %4980 }
0x126a   : > { %7548 = vpow2.f32 %v4989_v59  ;;  %v4987_v24 = vsub.f32 %v8518_v21, %v4981_v54 }
0x126c   : > { %v4993_v48 = vmul.f32 1.442695, %v4987_v24 }
0x126d   : > { %v4978_v47 = vpop.xlane.xlu1 %4977 }
0x126e   : > { %7550 = vpow2.f32 %v4993_v48  ;;  %v4986_v32 = vsub.f32 %v8524_v41, %v4978_v47 }
0x126f   : > { %v5349_v33 = vpop.trf.xlu0 }
0x1270   : > { %v4991_v35 = vmul.f32 1.442695, %v4986_v32 }
0x1272   : > { %7552 = vpow2.f32 %v4991_v35 }
0x1273   : > { %v5381_v36 = vpop.trf.xlu0  ;;  %v5333_v58 = vpop.trf.xlu1 }
0x1277   : > { %v7549_v60 = vpop.eup %7548  ;;  %v5413_v61 = vpop.trf.xlu0 }
0x1278   : > { %v4997_v62 = vsel %vm2067_vm5, %v7549_v60, 0.0  ;;  %v5631_v56 = vcombine.low %v5349_v33, %v5413_v61 }
0x1279   : > { %4998 = vadd.xlane.f32.xlu1 %v4997_v62 }
0x127a   : > { %v8567_v38 = vrot.slane %v5631_v56, %v7938_v6 }
0x127b   : > { %v8562_v50 = vpop.eup %7550  ;;  %v5445_v16 = vpop.trf.xlu0 }
0x127c   : > { %v5003_v21 = vsel %vm2067_vm5, %v8562_v50, 0.0  ;;  %v5639_v41 = vcombine.low %v5381_v36, %v5445_v16 }
0x127d   : > { %5004 = vadd.xlane.f32.xlu1 %v5003_v21 }
0x127e   : > { %v8570_v57 = vrot.slane %v5639_v41, %v7938_v6 }
0x127f   : > { %v7553_v0 = vpop.eup %7552  ;;  %v5477_v9 = vpop.trf.xlu0 }
0x1280   : > { %v5000_v3 = vsel %vm2067_vm5, %v7553_v0, 0.0  ;;  %v5663_v4 = vcombine.low %v8567_v38, %v8570_v57 }
0x1281   : > { %5001 = vadd.xlane.f32.xlu0 %v5000_v3 }
0x1283   : > { %v5509_v34 = vpop.trf.xlu0 }
0x1287   : > { %v5541_v63 = vpop.trf.xlu0 }
0x1288   : > { %v5647_v62 = vcombine.low %v5477_v9, %v5541_v63 }
0x128a   : > { %v5654_v41 = vrot.slane %v5647_v62, %v7938_v6 }
0x12a7   : > { %v4984_v5 = vpop.xlane.xlu1 %4983 }
0x12a8   : > { %v4988_v19 = vsub.f32 %v4972_v40, %v4984_v5  ;;  %v5670_v5 = vrot.slane %v5663_v4, %v7945_v15 }
0x12aa   : > { %v4995_v20 = vmul.f32 1.442695, %v4988_v19  ;;  %5549 = vxpose.xlu1.c.b16.start.end [1/1] (short) (narrow) %v5256_v18, 16 }
0x12ac   : > { %7554 = vpow2.f32 %v4995_v20 }
0x12ad   : > { %v5365_v55 = vpop.trf.xlu1 }
0x12b1   : > { %v5397_v22 = vpop.trf.xlu1 }
0x12b2   : > { %v5581_v25 = vcombine.low %v5333_v58, %v5397_v22 }
0x12b4   : > { %v5588_v51 = vrot.slane %v5581_v25, %v7938_v6 }
0x12b5   : > { %v5429_v42 = vpop.trf.xlu1 }
0x12b6   : > { %v5589_v49 = vcombine.low %v5365_v55, %v5429_v42 }
0x12b8   : > { %v5596_v26 = vrot.slane %v5589_v49, %v7938_v6 }
0x12b9   : > { %v7555_v44 = vpop.eup %7554  ;;  %v5461_v53 = vpop.trf.xlu1 }
0x12ba   : > { %v5613_v7 = vcombine.low %v5588_v51, %v5596_v26  ;;  %v5006_v28 = vsel %vm2067_vm5, %v7555_v44, 0.0 }
0x12bb   : > { %5007 = vadd.xlane.f32.xlu0 %v5006_v28 }
0x12bc   : > { %v5620_v17 = vrot.slane %v5613_v7, %v7945_v15 }
0x12bd   : > { %v5493_v8 = vpop.trf.xlu1 }
0x12c1   : > { %v5525_v23 = vpop.trf.xlu1 }
0x12c2   : > { %v5597_v40 = vcombine.low %v5461_v53, %v5525_v23 }
0x12c4   : > { %v5604_v31 = vrot.slane %v5597_v40, %v7938_v6 }
0x12e8   : > { %5565 = vxpose.xlu0.c.b16.start.end [1/1] (short) (narrow) %v5324_v30, 16 }
0x1302   : > { %v4999_v10 = vpop.xlane.xlu1 %4998 }
0x1303   : > { %7556 = vrcp.f32 %v4999_v10 }
0x1306   : > { %v5005_v11 = vpop.xlane.xlu1 %5004 }
0x130a   : > { %v5002_v29 = vpop.xlane.xlu0 %5001 }
0x130b   : > { %7558 = vrcp.f32 %v5002_v29 }
0x130c   : > { %v5557_v27 = vpop.trf.xlu1  ;;  %7560 = vrcp.f32 %v5005_v11 }
0x130d   : > { %v5605_v39 = vcombine.low %v5493_v8, %v5557_v27 }
0x130f   : > { %v5612_v43 = vrot.slane %v5605_v39, %v7938_v6 }
0x1310   : > { %v7557_v13 = vpop.eup %7556 }
0x1311   : > { %v5621_v14 = vcombine.low %v5604_v31, %v5612_v43  ;;  %v5010_v59 = vmul.f32 %v7557_v13, %v7549_v60 }
0x1313   : > { %v5628_v54 = vrot.slane %v5621_v14, %v7945_v15  ;;  %v5017_v24 = vpack.c.bf16 %v5010_v59, %v5010_v59  ;;  %v7482_v14 = vld [vmem:[%s8857_s11 + $0x38] sm:$0xff]   ;;  %v7483_v59 = vld [vmem:[%s8857_s11 + $0x30] sm:$0xff]  }
0x1315   : > { %v5629_v48 = vcombine.low %v5620_v17, %v5628_v54  ;;  %v5630_v47 = vcombine.high %v5620_v17, %v5628_v54  ;;  %v5697_v32 = vsel %vm2067_vm5, %v5017_v24, 0 }
0x1316   : > { %7309 = vmatpush3.bf16.xpose.msra.mxu0 %v5697_v32 }
0x1317   : > { %7320 = vmatprep.subr.bf16.mxu0 %v7640_v2  ;;  %v5684_v42 = vshrl.u32 %v5629_v48, 16  ;;  %v5690_v49 = vshrl.u32 %v5630_v47, 16 }
0x1318   : > { %v7559_v33 = vpop.eup %7558 }
0x1319   : > { %v5012_v35 = vmul.f32 %v7559_v33, %v7553_v0  ;;  %v7561_v21 = vpop.eup %7560 }
0x131a   : > { %v5014_v0 = vmul.f32 %v7561_v21, %v8562_v50 }
0x131b   : > { %v5018_v36 = vpack.c.bf16 %v5012_v35, %v5012_v35 }
0x131c   : > { %v5019_v22 = vpack.c.bf16 %v5014_v0, %v5014_v0 }
0x131d   : > { %v5744_v61 = vsel %vm2067_vm5, %v5018_v36, 0 }
0x131e   : > { %7315 = vmatpush3.bf16.xpose.msra.mxu1 %v5744_v61  ;;  %v5791_v50 = vsel %vm2067_vm5, %v5019_v22, 0  ;;  %v7485_v22 = vld [vmem:[%s8857_s11 + $0x20] sm:$0xff]  }
0x131f   : > { %7326 = vmatprep.subr.bf16.mxu1 %v7640_v2 }
0x1344   : > { %v5008_v60 = vpop.xlane.xlu0 %5007 }
0x1345   : > { %7562 = vrcp.f32 %v5008_v60 }
0x134a   : > { %v5573_v56 = vpop.trf.xlu0 }
0x134b   : > { %v5655_v16 = vcombine.low %v5509_v34, %v5573_v56 }
0x134d   : > { %v5662_v3 = vrot.slane %v5655_v16, %v7938_v6 }
0x134f   : > { %v5671_v58 = vcombine.low %v5654_v41, %v5662_v3  ;;  %v7484_v41 = vld [vmem:[%s8857_s11 + $0x28] sm:$0xff]  }
0x1351   : > { %v5678_v18 = vrot.slane %v5671_v58, %v7945_v15 }
0x1352   : > { %v7563_v19 = vpop.eup %7562 }
0x1353   : > { %v5679_v20 = vcombine.low %v5670_v5, %v5678_v18  ;;  %v5680_v55 = vcombine.high %v5670_v5, %v5678_v18  ;;  %v5016_v25 = vmul.f32 %v7563_v19, %v7555_v44 }
0x1355   : > { %v5683_v51 = vpack.i.b16 %v5679_v20, %v5629_v48  ;;  %v5685_v26 = vshrl.u32 %v5679_v20, 16  ;;  %v5689_v53 = vpack.i.b16 %v5680_v55, %v5630_v47  ;;  %v5691_v7 = vshrl.u32 %v5680_v55, 16 }
0x1356   : > { %v5020_v28 = vpack.c.bf16 %v5016_v25, %v5016_v25 }
0x1357   : > { %7311 = vmatmul.mubr.msk.bf16.vlgmr.msra.gmra.mxu0 %vm2067_vm5, %v5683_v51  ;;  %v5686_v38 = vpack.i.b16 %v5685_v26, %v5684_v42  ;;  %v5692_v57 = vpack.i.b16 %v5691_v7, %v5690_v49 }
0x1358   : > { %7321 = vmatpush3.bf16.xpose.msra.mxu0 %v5791_v50  ;;  %v5838_v4 = vsel %vm2067_vm5, %v5020_v28, 0  ;;  %7322 = vmatprep.mubr.msk.bf16.mxu0 %vm7641_vm0, %v7640_v2 }
0x1359   : > { %7317 = vmatmul.mubr.msk.bf16.vlgmr.msra.gmra.mxu1 %vm2067_vm5, %v5686_v38  ;;  %7332 = vmatprep.subr.bf16.mxu0 %v7640_v2 }
0x135a   : > { %7327 = vmatpush3.bf16.xpose.msra.mxu1 %v5838_v4  ;;  %7328 = vmatprep.mubr.msk.bf16.mxu1 %vm7641_vm0, %v7640_v2 }
0x135f   : > { %7323 = vmatmul.mubr.msk.bf16.vlgmr.msra.gmra.mxu0 %vm2067_vm5, %v5689_v53 }
0x1360   : > { %7340 = vmatprep.mubr.msk.bf16.mxu0 %vm7641_vm0, %v7640_v2  ;;  %7333 = vmatpush3.bf16.msra.mxu0 %v7482_v14 }
0x1361   : > { %7329 = vmatmul.mubr.msk.bf16.vlgmr.msra.gmra.mxu1 %vm2067_vm5, %v5692_v57  ;;  %7334 = vmatprep.subr.bf16.mxu0 %v7640_v2 }
0x1362   : > { %6376 = vmatprep.mubr.bf16.mxu1 %v7639_v1 }
0x1364   : > { %7335 = vmatpush3.bf16.msra.mxu0 %v7483_v59 }
0x1365   : > { %7336 = vmatprep.subr.bf16.mxu0 %v7640_v2 }
0x1368   : > { %7337 = vmatpush3.bf16.msra.mxu0 %v7484_v41 }
0x1369   : > { %7338 = vmatprep.subr.bf16.mxu0 %v7640_v2 }
0x136c   : > { %7339 = vmatpush3.bf16.msra.mxu0 %v7485_v22  ;;  %v7502_v22 = vld [vmem:[%s8863_s17 + $0xe8] sm:$0xff]  }
0x1417   : > { %v5733_v44 = vpop.f32.mrf.mxu0 }
0x1418   : > { %5881 = vxpose.xlu1.b32.start [1/2] (short) (narrow) %v5733_v44, 8 }
0x1419   : > { %v7312_v8 = vpop.f32.mrf.mxu0  ;;  %v5780_v23 = vpop.f32.mrf.mxu1 }
0x141a   : > { %5913 = vxpose.xlu0.b32.start [1/2] (short) (narrow) %v5780_v23, 8 }
0x141b   : > { %v5736_v40 = vpop.f32.mrf.mxu0  ;;  %v7318_v30 = vpop.f32.mrf.mxu1 }
0x141c   : > { %5882 = vxpose.xlu1.b32.end [2/2] (short) (narrow) %v5736_v40, 8 }
0x141d   : > { %v7313_v9 = vpop.f32.mrf.mxu0  ;;  %v5783_v34 = vpop.f32.mrf.mxu1 }
0x141e   : > { %5914 = vxpose.xlu0.b32.end [2/2] (short) (narrow) %v5783_v34, 8 }
0x141f   : > { %v7319_v10 = vpop.f32.mrf.mxu1  ;;  %v5827_v63 = vpop.f32.mrf.mxu0 }
0x1421   : > { %v7324_v11 = vpop.f32.mrf.mxu0  ;;  %v5874_v29 = vpop.f32.mrf.mxu1 }
0x1422   : > { %5977 = vxpose.xlu1.b32.start [1/2] (short) (narrow) %v5874_v29, 8  ;;  %5945 = vxpose.xlu0.b32.start [1/2] (short) (narrow) %v5827_v63, 8  ;;  %v7010_v29 = vld [vmem:[%s8858_s12 + $0x1] ss:$0 sm:$0xff] }
0x1423   : > { %v5830_v27 = vpop.f32.mrf.mxu0  ;;  %v7330_v31 = vpop.f32.mrf.mxu1 }
0x1425   : > { %v7325_v39 = vpop.f32.mrf.mxu0  ;;  %v5877_v43 = vpop.f32.mrf.mxu1 }
0x1426   : > { %5978 = vxpose.xlu1.b32.end [2/2] (short) (narrow) %v5877_v43, 8  ;;  %5946 = vxpose.xlu0.b32.end [2/2] (short) (narrow) %v5830_v27, 8 }
0x1427   : > { %v7331_v13 = vpop.f32.mrf.mxu1 }
0x1444   : > { %7417 = vset.pattern.permute.xlu1 %v7639_v1 }
0x1494   : > { %v5897_v54 = vpop.trf.xlu1 }
0x1496   : > { %v5929_v17 = vpop.trf.xlu0 }
0x149e   : > { %v5993_v24 = vpop.trf.xlu1  ;;  %v5961_v48 = vpop.trf.xlu0 }
0x149f   : > { %v6025_v47 = vcombine.low %v5929_v17, %v5993_v24  ;;  %v6026_v32 = vcombine.high %v5929_v17, %v5993_v24  ;;  %v6009_v33 = vcombine.low %v5897_v54, %v5961_v48  ;;  %v6010_v35 = vcombine.high %v5897_v54, %v5961_v48 }
0x14a1   : > { %v6033_v36 = vrot.slane %v6025_v47, %v7938_v6  ;;  %v6040_v61 = vrot.slane %v6026_v32, %v7938_v6  ;;  %v6017_v60 = vrot.slane %v6009_v33, %v7938_v6  ;;  %v6024_v62 = vrot.slane %v6010_v35, %v7938_v6  ;;  %v7486_v47 = vld [vmem:[%s8861_s15 + $0x70] ss:$8 sps:$4 sm:$0xff]   ;;  %v7491_v32 = vld [vmem:[%s8861_s15 + $0x64] ss:$8 sps:$4 sm:$0xff]   ;;  %v7489_v33 = vld [vmem:[%s8861_s15 + $0x60] ss:$8 sps:$4 sm:$0xff]  }
0x14a2   : > { %v7494_v35 = vld [vmem:[%s8861_s15 + $0x54] ss:$8 sps:$4 sm:$0xff]  }
0x14a3   : > { %v6041_v56 = vcombine.low %v6017_v60, %v6033_v36  ;;  %v6042_v16 = vcombine.high %v6017_v60, %v6033_v36  ;;  %v6057_v21 = vcombine.low %v6024_v62, %v6040_v61  ;;  %v6058_v1 = vcombine.high %v6024_v62, %v6040_v61  ;;  %v7492_v36 = vld [vmem:[%s8861_s15 + $0x50] ss:$8 sps:$4 sm:$0xff]   ;;  %v7497_v61 = vld [vmem:[%s8861_s15 + $0x44] ss:$8 sps:$4 sm:$0xff]   ;;  %v7495_v60 = vld [vmem:[%s8861_s15 + $0x40] ss:$8 sps:$4 sm:$0xff]  }
0x14a5   : > { %v6049_v3 = vrot.slane %v6041_v56, %v7945_v15  ;;  %v6056_v58 = vrot.slane %v6042_v16, %v7945_v15  ;;  %v6065_v0 = vrot.slane %v6057_v21, %v7945_v15  ;;  %v6072_v5 = vrot.slane %v6058_v1, %v7945_v15  ;;  %v7013_v1 = vld [vmem:[%s8859_s13 + $0x1] ss:$0 sm:$0xff] }
0x14a7   : > { %v6077_v18 = vcombine.low %v6049_v3, %v6056_v58  ;;  %v6994_v19 = vcombine.high %v6049_v3, %v6056_v58  ;;  %v6093_v20 = vcombine.low %v6065_v0, %v6072_v5  ;;  %v6995_v55 = vcombine.high %v6065_v0, %v6072_v5  ;;  %v7014_v3 = vld [vmem:[%s8860_s14 + $0x1] ss:$0 sm:$0xff] }
0x14a9   : > { %v6084_v25 = vrot.slane %v6077_v18, %v7938_v6  ;;  %v6092_v42 = vrot.slane %v6994_v19, %v7938_v6  ;;  %v6100_v49 = vrot.slane %v6093_v20, %v7938_v6  ;;  %v6108_v51 = vrot.slane %v6995_v55, %v7938_v6  ;;  %v7498_v18 = vld [vmem:[%s8863_s17 + $0xf8] sm:$0xff]   ;;  %v7500_v20 = vld [vmem:[%s8863_s17 + $0xf0] sm:$0xff]  }
0x14aa   : > { %v7499_v19 = vld [vmem:[%s8863_s17 + $0xb8] sm:$0xff]   ;;  %7173 = vmatprep.subr.bf16.mxu0 %v7498_v18  ;;  %v7501_v55 = vld [vmem:[%s8863_s17 + $0xb0] sm:$0xff]  }
0x14ab   : > { %v6110_v26 = vcombine.high %v6084_v25, %v6092_v42  ;;  %v6126_v53 = vcombine.high %v6100_v49, %v6108_v51  ;;  %v6109_v7 = vcombine.low %v6084_v25, %v6092_v42  ;;  %v6125_v28 = vcombine.low %v6100_v49, %v6108_v51  ;;  %v7503_v25 = vld [vmem:[%s8863_s17 + $0xa8] sm:$0xff]   ;;  %v7504_v42 = vld [vmem:[%s8863_s17 + $0xe0] sm:$0xff]   ;;  %v7506_v51 = vld [vmem:[%s8863_s17 + $0xd8] sm:$0xff]  }
0x14ac   : > { %v7505_v49 = vld [vmem:[%s8863_s17 + $0xa0] sm:$0xff]  }
0x14ad   : > { %v6124_v50 = vrot.slane %v6110_v26, %v7945_v15  ;;  %v6140_v38 = vrot.slane %v6126_v53, %v7945_v15  ;;  %v6117_v57 = vrot.slane %v6109_v7, %v7945_v15  ;;  %v6133_v4 = vrot.slane %v6125_v28, %v7945_v15  ;;  %v7507_v26 = vld [vmem:[%s8863_s17 + $0x98] sm:$0xff]   ;;  %v7508_v53 = vld [vmem:[%s8863_s17 + $0xd0] sm:$0xff]   ;;  %v7510_v28 = vld [vmem:[%s8863_s17 + $0xc8] sm:$0xff]  }
0x14ae   : > { %v7509_v7 = vld [vmem:[%s8863_s17 + $0x90] sm:$0xff]  }
0x14af   : > { %v6143_v44 = vcombine.low %v6124_v50, %v6140_v38  ;;  %v6142_v8 = vcombine.high %v6117_v57, %v6133_v4  ;;  %v6141_v23 = vcombine.low %v6117_v57, %v6133_v4  ;;  %v6144_v6 = vcombine.high %v6124_v50, %v6140_v38  ;;  %v7511_v50 = vld [vmem:[%s8863_s17 + $0x88] sm:$0xff]   ;;  %v7512_v38 = vld [vmem:[%s8863_s17 + $0xc0] sm:$0xff]  }
0x14b0   : > { %v7513_v57 = vld [vmem:[%s8863_s17 + $0x80] sm:$0xff]  }
0x14b1   : > { %6150 = vrot.lane.b32.xlu1 %v6143_v44, %s8912_s1  ;;  %6146 = vrot.lane.b32.xlu0 %v6142_v8, %s8913_s28  ;;  %v7023_v4 = vld [vmem:[%s8862_s16 + $0x2] sm:$0x3]  ;;  %s8915_s28 = sshll.u32 %s7813_s25, 3  ;;  %s6790_s1 = sshll.u32 %s634_s29, 4  ;;  %s6791_s1 = int_to_ptr.vmem [resolvable:$true] %s6790_s1 }
0x14b2   : > { %v6294_v44 = vrot.slane %v7023_v4, %v7904_v46  ;;  %v6298_v8 = vrot.slane %v7023_v4, %v7976_v52  ;;  %s647_s0 = scalar_lea.vmem %s8916_s20, %s8915_s28  ;;  %s6774_s20 = scalar_lea.sflag [#allocation3], %s632_s26 }
0x14b3   : > { %p7584_p0 = scmp.lt.s32.totalorder %s6791_s1, %s7582_s3 }
0x14b5   : > { %6154 = vrot.lane.b32.xlu1 %v6144_v6, %s8914_s23 }
0x1523   : > { %v6151_v40 = vpop.permute.xlu1 %6150  ;;  %v6147_v30 = vpop.permute.xlu0 %6146 }
0x1524   : > { %v6157_v9 = vsel %vm1886_vm4, %v6141_v23, %v6147_v30 }
0x1525   : > { %v6158_v10 = vsel %vm3253_vm6, %v6157_v9, %v6151_v40 }
0x1527   : > { %v6155_v34 = vpop.permute.xlu1 %6154 }
0x1528   : > { %v6159_v63 = vsel %vm3255_vm7, %v6158_v10, %v6155_v34 }
0x1529   : > { %v6160_v15 = vpack.c.bf16 %v6159_v63, %v6159_v63 }
0x152b   : > { %7341 = vmatmul.mubr.msk.bf16.vlgmr.msra.gmra.mxu0 %vm770_vm3, %v6160_v15 }
0x152c   : > { %7174 = vmatpush3.bf16.msra.mxu0 %v7499_v19  ;;  %v7518_v19 = vld [vmem:[%s8903_s21 + $0x18] sm:$0xff]  }
0x152d   : > { %7175 = vmatprep.subr.bf16.mxu0 %v7500_v20  ;;  %v6683_v20 = vsel %vm770_vm3, %v7518_v19, 0 }
0x1530   : > { %7176 = vmatpush3.bf16.msra.mxu0 %v7501_v55 }
0x1531   : > { %7177 = vmatprep.subr.bf16.mxu0 %v7502_v22 }
0x1534   : > { %7178 = vmatpush3.bf16.msra.mxu0 %v7503_v25 }
0x1535   : > { %7179 = vmatprep.subr.bf16.mxu0 %v7504_v42 }
0x1538   : > { %7180 = vmatpush3.bf16.msra.mxu0 %v7505_v49 }
0x1539   : > { %7181 = vmatprep.subr.bf16.mxu0 %v7506_v51  ;;  %v7519_v51 = vld [vmem:[%s8903_s21 + $0x10] sm:$0xff]  }
0x153c   : > { %7182 = vmatpush3.bf16.msra.mxu0 %v7507_v26  ;;  %v6680_v26 = vsel %vm770_vm3, %v7519_v51, 0 }
0x153d   : > { %7183 = vmatprep.subr.bf16.mxu0 %v7508_v53  ;;  %v6738_v53 = vld [vmem:[%s647_s0] sm:$0xff]  ;;  %s7577_s0 = scalar_lea.vmem %s6791_s1, 128 }
0x153e   : > { %p7578_p11 = scmp.ne.s32.totalorder %s6791_s1, %s7577_s0 }
0x1540   : > { %7184 = vmatpush3.bf16.msra.mxu0 %v7509_v7  ;;  %v7520_v7 = vld [vmem:[%s8903_s21 + $0x8] sm:$0xff]   ;;  %p7579_p12 = pnand %p7578_p11, %p7796_p5 }
0x1541   : > { %7185 = vmatprep.subr.bf16.mxu0 %v7510_v28  ;;  %v6677_v28 = vsel %vm770_vm3, %v7520_v7, 0 }
0x1542   : > { %p7580_p13 = pneg %p7579_p12 }
0x1544   : > { %7186 = vmatpush3.bf16.msra.mxu0 %v7511_v50  ;;  %v7521_v50 = vld [vmem:[%s8903_s21] sm:$0xff]  }
0x1545   : > { %7187 = vmatprep.subr.bf16.mxu0 %v7512_v38  ;;  %v6674_v38 = vsel %vm770_vm3, %v7521_v50, 0 }
0x1548   : > { %7188 = vmatpush3.bf16.msra.mxu0 %v7513_v57 }
0x15eb   : > { %v6231_v11 = vpop.f32.mrf.mxu0 }
0x15ec   : > { %v6237_v27 = vadd.f32 %v6231_v11, %v8308_v37  ;;  %v7488_v37 = vld [vmem:[%s8861_s15 + $0x74] ss:$8 sps:$4 sm:$0xff]  }
0x15ed   : > { %v7342_v31 = vpop.f32.mrf.mxu0  ;;  %6352 = vmatprep.subr.bf16.mxu1 %v7488_v37 }
0x15ee   : > { %v8654_v39 = vadd.f32 %v7010_v29, %v6237_v27  ;;  %6353 = vmatpush1.bf16.msra.mxu1 %v7486_v47 }
0x15ef   : > { %v6234_v43 = vpop.f32.mrf.mxu0  ;;  %6354 = vmatprep.subr.bf16.mxu1 %v7491_v32 }
0x15f0   : > { %v6251_v13 = vsel %vm770_vm3, %v8654_v39, 0.0 }
0x15f1   : > { %6252 = vadd.xlane.f32.xlu1 %v6251_v13  ;;  %v7343_v14 = vpop.f32.mrf.mxu0 }
0x15f2   : > { %6355 = vmatpush1.bf16.msra.mxu1 %v7489_v33 }
0x15f3   : > { %6356 = vmatprep.subr.bf16.mxu1 %v7494_v35 }
0x15f6   : > { %6357 = vmatpush1.bf16.msra.mxu1 %v7492_v36 }
0x15f7   : > { %6358 = vmatprep.subr.bf16.mxu1 %v7497_v61 }
0x15fa   : > { %6359 = vmatpush1.bf16.msra.mxu1 %v7495_v60  ;;  %v7082_v60 = vld [vmem:[%s8864_s18 + $0x1] ss:$0 sm:$0xff] }
0x15fb   : > { %7344 = vmatprep.subr.bf16.mxu1 %v7640_v2 }
0x167a   : > { %v6253_v59 = vpop.xlane.xlu1 %6252 }
0x167b   : > { %v6254_v17 = vmul.f32 0.015625, %v6253_v59 }
0x167d   : > { %v6255_v54 = vsub.f32 %v8654_v39, %v6254_v17 }
0x167f   : > { %v6256_v24 = vmul.f32 %v6255_v54, %v6255_v54 }
0x1681   : > { %v6257_v48 = vsel %vm770_vm3, %v6256_v24, 0.0 }
0x1682   : > { %6258 = vadd.xlane.f32.xlu0 %v6257_v48 }
0x170b   : > { %v6259_v62 = vpop.xlane.xlu0 %6258 }
0x170c   : > { %v6260_v56 = vmul.f32 0.015625, %v6259_v62 }
0x170e   : > { %v6261_v16 = vadd.f32 1e-05, %v6260_v56 }
0x1710   : > { %7564 = vrsqrt.f32 %v6261_v16 }
0x171d   : > { %v7565_v21 = vpop.eup %7564 }
0x171e   : > { %v6263_v41 = vmul.f32 %v7565_v21, %v6255_v54 }
0x1720   : > { %v6270_v58 = vmul.f32 %v7013_v1, %v6263_v41  ;;  %v7514_v1 = vld [vmem:[%s8903_s21 + $0x38] sm:$0xff]  }
0x1721   : > { %v6695_v41 = vsel %vm770_vm3, %v7514_v1, 0 }
0x1722   : > { %v6277_v0 = vadd.f32 %v7014_v3, %v6270_v58  ;;  %v7515_v3 = vld [vmem:[%s8903_s21 + $0x30] sm:$0xff]   ;;  %v7516_v58 = vld [vmem:[%s8903_s21 + $0x28] sm:$0xff]  }
0x1724   : > { %v6278_v5 = vpack.c.bf16 %v6277_v0, %v6277_v0  ;;  %v6689_v0 = vsel %vm770_vm3, %v7516_v58, 0 }
0x1726   : > { %7032 = vmatmul.mubr.msk.bf16.vlgmr.msra.gmra.mxu1 %vm770_vm3, %v6278_v5  ;;  %v7517_v5 = vld [vmem:[%s8903_s21 + $0x20] sm:$0xff]  }
0x1727   : > { %7360 = vmatprep.mubr.msk.bf16.mxu1 %vm7641_vm0, %v7640_v2  ;;  %7345 = vmatpush3.bf16.xpose.msra.mxu1 %v6695_v41  ;;  %v6686_v18 = vsel %vm770_vm3, %v7517_v5, 0 }
0x1728   : > { %7346 = vmatprep.subr.bf16.mxu1 %v7640_v2 }
0x17e6   : > { %v6378_v23 = vpop.f32.mrf.mxu1 }
0x17e7   : > { %v6379_v6 = vadd.f32 %v6378_v23, %v6294_v44  ;;  %v7083_v23 = vld [vmem:[%s8917_s5] ss:$0 sm:$0xff]  ;;  %s7583_s5 = scalar_lea.vmem %s7582_s3, 256 }
0x17e8   : > { %v6380_v40 = vpop.f32.mrf.mxu1  ;;  %p7585_p1 = scmp.lt.s32.totalorder %s7583_s5, %s7577_s0 }
0x17e9   : > { %v6387_v30 = vmul.f32 0.044715, %v6379_v6  ;;  %v6381_v9 = vadd.f32 %v6380_v40, %v6298_v8  ;;  %v6385_v17 = vmul.f32 0.5, %v6379_v6  ;;  %v7084_v40 = vld [vmem:[%s8852_s6] ss:$0 sm:$0xff] }
0x17ea   : > { %v6382_v34 = vpop.f32.mrf.mxu1  ;;  %p7586_p2 = por %p7585_p1, %p7584_p0 }
0x17eb   : > { %v6389_v10 = vmul.f32 %v6387_v30, %v6379_v6  ;;  %v6388_v63 = vmul.f32 0.044715, %v6381_v9  ;;  %v6386_v54 = vmul.f32 0.5, %v6381_v9 }
0x17ec   : > { %v6383_v15 = vpop.f32.mrf.mxu1  ;;  %p7587_p3 = pnand %p7586_p2, %p7580_p13 }
0x17ed   : > { %v6391_v11 = vmul.f32 %v6389_v10, %v6379_v6  ;;  %v6390_v29 = vmul.f32 %v6388_v63, %v6381_v9 }
0x17ef   : > { %v6393_v27 = vadd.f32 %v6391_v11, %v6379_v6  ;;  %v6392_v31 = vmul.f32 %v6390_v29, %v6381_v9 }
0x17f1   : > { %v6395_v43 = vmul.f32 0.7978846, %v6393_v27  ;;  %v6394_v13 = vadd.f32 %v6392_v31, %v6381_v9 }
0x17f3   : > { %v6396_v14 = vmul.f32 0.7978846, %v6394_v13  ;;  %7566 = vtanh.f32 %v6395_v43 }
0x17f5   : > { %7568 = vtanh.f32 %v6396_v14 }
0x1800   : > { %v7567_v46 = vpop.eup %7566 }
0x1801   : > { %v6399_v52 = vadd.f32 1.0, %v7567_v46 }
0x1802   : > { %v7569_v59 = vpop.eup %7568 }
0x1803   : > { %v6400_v24 = vadd.f32 1.0, %v7569_v59  ;;  %v6401_v48 = vmul.f32 %v6399_v52, %v6385_v17 }
0x1805   : > { %v6402_v37 = vmul.f32 %v6400_v24, %v6386_v54  ;;  %v6403_v32 = vpack.c.bf16 %v6401_v48, %v6401_v48 }
0x1807   : > { %v6404_v47 = vpack.c.bf16 %v6402_v37, %v6402_v37 }
0x1809   : > { %6566 = vmatprep.mubr.bf16.mxu0 %v6404_v47 }
0x180a   : > { %6567 = vmatmul.mubr.bf16.vlgmr.msra.gmra.mxu0 %v6403_v32 }
0x18ca   : > { %v7189_v33 = vpop.f32.mrf.mxu0 }
0x18cc   : > { %v7190_v35 = vpop.f32.mrf.mxu0 }
0x18cd   : > { %v7191_v36 = vadd.f32 %v7190_v35, %v7189_v33 }
0x18ce   : > { %v7192_v61 = vpop.f32.mrf.mxu0 }
0x18cf   : > { %v6574_v62 = vadd.f32 %v7191_v36, %v8654_v39  ;;  %v6692_v39 = vsel %vm770_vm3, %v7515_v3, 0 }
0x18d0   : > { %v7193_v56 = vpop.f32.mrf.mxu0  ;;  %7347 = vmatpush3.bf16.xpose.msra.mxu1 %v6692_v39 }
0x18d1   : > { %v6583_v16 = vadd.f32 %v7082_v60, %v6574_v62  ;;  %7348 = vmatprep.subr.bf16.mxu1 %v7640_v2 }
0x18d3   : > { %v6586_v21 = vsel %vm770_vm3, %v6583_v16, 0.0 }
0x18d4   : > { %6587 = vadd.xlane.f32.xlu0 %v6586_v21 }
0x18d8   : > { %7349 = vmatpush3.bf16.xpose.msra.mxu1 %v6689_v0 }
0x18d9   : > { %7350 = vmatprep.subr.bf16.mxu1 %v7640_v2 }
0x18e0   : > { %7351 = vmatpush3.bf16.xpose.msra.mxu1 %v6686_v18 }
0x18e1   : > { %7352 = vmatprep.subr.bf16.mxu1 %v7640_v2 }
0x18e8   : > { %7353 = vmatpush3.bf16.xpose.msra.mxu1 %v6683_v20 }
0x18e9   : > { %7354 = vmatprep.subr.bf16.mxu1 %v7640_v2 }
0x18f0   : > { %7355 = vmatpush3.bf16.xpose.msra.mxu1 %v6680_v26 }
0x18f1   : > { %7356 = vmatprep.subr.bf16.mxu1 %v7640_v2 }
0x18f8   : > { %7357 = vmatpush3.bf16.xpose.msra.mxu1 %v6677_v28 }
0x18f9   : > { %7358 = vmatprep.subr.bf16.mxu1 %v7640_v2 }
0x1900   : > { %7359 = vmatpush3.bf16.xpose.msra.mxu1 %v6674_v38 }
0x195d   : > { %v6588_v55 = vpop.xlane.xlu0 %6587 }
0x195e   : > { %v6589_v22 = vmul.f32 0.015625, %v6588_v55 }
0x1960   : > { %v6590_v25 = vsub.f32 %v6583_v16, %v6589_v22 }
0x1962   : > { %v6591_v42 = vmul.f32 %v6590_v25, %v6590_v25 }
0x1964   : > { %v6592_v49 = vsel %vm770_vm3, %v6591_v42, 0.0 }
0x1965   : > { %6593 = vadd.xlane.f32.xlu1 %v6592_v49 }
0x1976   : > { %6740 = vperm.xlu1 %7417, %v6738_v53  }
0x19ee   : > { %v6594_v57 = vpop.xlane.xlu1 %6593 }
0x19ef   : > { %v6595_v4 = vmul.f32 0.015625, %v6594_v57 }
0x19f1   : > { %v6596_v44 = vadd.f32 1e-05, %v6595_v4 }
0x19f2   : > { %v6741_v43 = vpop.permute.xlu1 %6740 }
0x19f3   : > { %7570 = vrsqrt.f32 %v6596_v44  ;;  %vm6742_vm8 = vcmp.eq.s32.totalorder %v7854_v12, %v6741_v43 }
0x19f4   : > { %v7094_v14 = vsel %vm6742_vm8, 1.0, %v7640_v2 }
0x1a00   : > { %v7571_v8 = vpop.eup %7570 }
0x1a01   : > { %v6598_v6 = vmul.f32 %v7571_v8, %v6590_v25 }
0x1a03   : > { %v6605_v30 = vmul.f32 %v7083_v23, %v6598_v6 }
0x1a05   : > { %v6612_v9 = vadd.f32 %v7084_v40, %v6605_v30 }
0x1a07   : > { %v6613_v34 = vpack.c.bf16 %v6612_v9, %v6612_v9 }
0x1a09   : > { %7361 = vmatmul.mubr.msk.bf16.vlgmr.msra.gmra.mxu1 %vm770_vm3, %v6613_v34 }
0x1ac9   : > { %v6731_v10 = vpop.f32.mrf.mxu1 }
0x1aca   : > { %6750 = vmax.xlane.f32.xlu0 %v6731_v10  ;;  %6737 = vst [vmem:[%s634_s29] sm:$0xff] %v6731_v10  ;;  %v6760_v46 = vmul.f32 %v7094_v14, %v6731_v10 }
0x1acb   : > { %v7362_v63 = vpop.f32.mrf.mxu1 }
0x1acd   : > { %v6734_v15 = vpop.f32.mrf.mxu1 }
0x1acf   : > { %v7363_v11 = vpop.f32.mrf.mxu1 }
0x1b53   : > { %v6751_v29 = vpop.xlane.xlu0 %6750 }
0x1b54   : > { %v6752_v27 = vsub.f32 %v6731_v10, %v6751_v29 }
0x1b56   : > { %v6753_v31 = vmul.f32 1.442695, %v6752_v27 }
0x1b58   : > { %7572 = vpow2.f32 %v6753_v31 }
0x1b65   : > { %v7573_v13 = vpop.eup %7572 }
0x1b66   : > { %6755 = vadd.xlane.f32.xlu0 %v7573_v13 }
0x1b6a   : > { %6761 = vadd.xlane.f32.xlu0 %v6760_v46 }
0x1b6b   : > { %7590 = shalt.err (!%p7587_p3)
}
0x1b6c   : > { %s7591_s2 = scalar_lea.hbm %s6788_s30, 128  ;;  %s7595_s24 = scalar_lea.hbm %s8865_s19, 256 }
0x1b6d   : > { %p7592_p4 = scmp.ne.s32.totalorder %s6788_s30, %s7591_s2  ;;  %p7596_p9 = scmp.lt.s32.totalorder %s6788_s30, %s8865_s19 }
0x1b6e   : > { %p7597_p10 = scmp.lt.s32.totalorder %s7595_s24, %s7591_s2 }
0x1b6f   : > { %p7593_p7 = pnand %p7592_p4, %p7796_p5 }
0x1b70   : > { %p7598_p11 = por %p7597_p10, %p7596_p9 }
0x1b71   : > { %p7594_p8 = pneg %p7593_p7 }
0x1b73   : > { %p7599_p12 = pnand %p7598_p11, %p7594_p8 }
0x1b75   : > { %7602 = shalt.err (!%p7599_p12)
}
0x1b76   : > { %7364 = dma.vmem_to_hbm [thread:$0]  (%p7796_p5), %s6791_s1, 128, %s6788_s30, %s6774_s20   ;;  %vm6747_vm9 = vcmp.lt.s32.totalorder %v7901_v45, 7  ;;  %vm6771_vm10 = vcmask 0  }
0x1b77   : > { %v7095_v54 = vsel %vm6747_vm9, 1.0, %v7640_v2  ;;  %s8918_s3 = sld [smem:[#allocation17_spill]] }
0x1b7d   : > { %s650_s1 = scalar_lea.vmem %s8918_s3, %s7813_s25 }
0x1bef   : > { %v6756_v12 = vpop.xlane.xlu0 %6755 }
0x1bf0   : > { %7574 = vlog2.f32 %v6756_v12 }
0x1bf3   : > { %v6762_v24 = vpop.xlane.xlu0 %6761 }
0x1bfd   : > { %v7575_v52 = vpop.eup %7574 }
0x1bfe   : > { %v6758_v59 = vmul.f32 0.6931472, %v7575_v52 }
0x1c00   : > { %v6759_v17 = vadd.f32 %v6758_v59, %v6751_v29 }
0x1c02   : > { %v6763_v48 = vsub.f32 %v6759_v17, %v6762_v24 }
0x1c04   : > { %v6764_v37 = vmul.f32 %v7095_v54, %v6763_v48 }
0x1c06   : > { %v6765_v47 = vrot.slane %v6764_v37, 4 }
0x1c08   : > { %v6766_v32 = vadd.f32 %v6765_v47, %v6764_v37 }
0x1c0a   : > { %v6767_v33 = vrot.slane %v6766_v32, 2 }
0x1c0c   : > { %v6768_v35 = vadd.f32 %v6767_v33, %v6766_v32 }
0x1c0e   : > { %v6769_v36 = vrot.slane %v6768_v35, 1 }
0x1c10   : > { %v6770_v61 = vadd.f32 %v6769_v36, %v6768_v35 }
0x1c12   : > { %6772 = vst.msk [vmem:[%s650_s1] sm:$0x1] %vm6771_vm10, %v6770_v61 }
0x1c13 PF: > { %s8919_s30 = sld [smem:[#allocation7_spill]] }
0x1c14   : > { %s8920_s20 = sld [smem:[#allocation5_spill]] }
0x1c19   : > { %p7370_p5 = scmp.ge.s32.totalorder %s8919_s30, 2 }
0x1c1a   : > { %s6805_s27 = sand.u32 1, %s8920_s20  }
0x1c1b   : > { %p7367_p13 = pnand %p7370_p5, %p7800_p6  ;;  %s6806_s2 = scalar_lea.sflag [#allocation3], %s6805_s27 }
0x1c1d   : > { %p7368_p0 = pneg %p7367_p13 }
0x1c1f   : > { %7620 = dma.done.wait (%p7368_p0), %s6806_s2, 128  }
0x1c20   : > { %7622 = vsyncadd (%p7368_p0), %s6806_s2, 4294967168  ;;  %s8922_s24 = sld [smem:[#allocation8_spill]]  ;;  %s8925_s1 = smov %s7629_s22 }
0x1c21   : > { %s8923_s26 = sld [smem:[#allocation6_spill]] }
0x1c22   : > { %s8924_s23 = sld [smem:[#allocation9_spill]] }
0x1c26   : > { %p31_p1 = scmp.ge.s32.totalorder %s8922_s24, 4  }
0x1c27   : > { %s8926_s22 = smov %s8923_s26 }
0x1c28   :  { %33 = sbr.rel (!%p31_p1) target bundleno = 11 (0xb), region = 158 }
0x1c2d   :  { %6817 = vsyncpa [#allocation3], 1 }
0x1c2e   :  { %6819 = vsyncpa [#allocation3 + $0x1], 1 }

</bundles_post_ra>
